<compile_context>
chip_gen: v5e
topology: v5e:2x2
jax: 0.10.0
libtpu: 0.0.40
codegen_flags: <defaults>
</compile_context>

<pallas_src>
import math
import functools

import jax
import jax.numpy as jnp
from jax.experimental import pallas as pl
from jax.experimental.pallas import tpu as pltpu

NEG_INF = -1e9  # finite "masked" value: a fully-masked row softmaxes to uniform, no NaN
LN_EPS = 1e-5   # torch nn.Transformer default layer_norm_eps


# ------------------------------ small helpers -------------------------------

def _round_up(x, m):
    return ((x + m - 1) // m) * m


def _row_grid(M, max_tile=256):
    """Row tiling: full extent if small, else 8-friendly tiles (padded)."""
    if M <= max_tile:
        return M, M, 1
    tm = max_tile
    Mp = _round_up(M, tm)
    return tm, Mp, Mp // tm


def _pad_rows(x, Mp):
    M = x.shape[0]
    return x if Mp == M else jnp.pad(x, ((0, Mp - M), (0, 0)))


# ----------------------------- Pallas kernels ------------------------------

def _linear_kernel(x_ref, wt_ref, b_ref, o_ref, *, relu):
    y = jnp.dot(x_ref[...], wt_ref[...], preferred_element_type=jnp.float32)
    y = y + b_ref[...]
    if relu:
        y = jnp.maximum(y, 0.0)
    o_ref[...] = y.astype(o_ref.dtype)


def linear_pallas(x2d, wT, b, relu=False):
    """x2d: (M, K) f32, wT: (K, N) pre-transposed, b: (N,) -> (M, N) f32.
    Tiled over M and N (K kept whole); both grid axes are 'parallel'."""
    M, K = x2d.shape
    N = wT.shape[1]
    tm = M if M <= 512 else 256
    tn = N if N <= 1024 else 512
    Mp, Np = _round_up(M, tm), _round_up(N, tn)
    xp = _pad_rows(x2d, Mp)
    wp = wT if Np == N else jnp.pad(wT, ((0, 0), (0, Np - N)))
    bp = b.reshape(1, N)
    if Np != N:
        bp = jnp.pad(bp, ((0, 0), (0, Np - N)))
    out = pl.pallas_call(
        functools.partial(_linear_kernel, relu=relu),
        out_shape=jax.ShapeDtypeStruct((Mp, Np), jnp.float32),
        grid=(Mp // tm, Np // tn),
        in_specs=[pl.BlockSpec((tm, K), lambda i, j: (i, 0)),
                  pl.BlockSpec((K, tn), lambda i, j: (0, j)),
                  pl.BlockSpec((1, tn), lambda i, j: (0, j))],
        out_specs=pl.BlockSpec((tm, tn), lambda i, j: (i, j)),
        compiler_params=pltpu.CompilerParams(
            dimension_semantics=("parallel", "parallel")),
    )(xp, wp, bp)
    if Mp != M or Np != N:
        out = out[:M, :N]
    return out


def _ln_math(y, g, beta, eps):
    mu = jnp.mean(y, axis=-1, keepdims=True)
    var = jnp.mean(jnp.square(y - mu), axis=-1, keepdims=True)
    return (y - mu) * jax.lax.rsqrt(var + eps) * g + beta


def _ln_kernel(x_ref, g_ref, b_ref, o_ref, *, eps):
    o_ref[...] = _ln_math(x_ref[...].astype(jnp.float32),
                          g_ref[...], b_ref[...], eps).astype(o_ref.dtype)


def layernorm_pallas(x2d, g, beta, eps=LN_EPS):
    M, E = x2d.shape
    tm, Mp, gm = _row_grid(M)
    out = pl.pallas_call(
        functools.partial(_ln_kernel, eps=eps),
        out_shape=jax.ShapeDtypeStruct((Mp, E), jnp.float32),
        grid=(gm,),
        in_specs=[pl.BlockSpec((tm, E), lambda i: (i, 0)),
                  pl.BlockSpec((1, E), lambda i: (0, 0)),
                  pl.BlockSpec((1, E), lambda i: (0, 0))],
        out_specs=pl.BlockSpec((tm, E), lambda i: (i, 0)),
        compiler_params=pltpu.CompilerParams(dimension_semantics=("parallel",)),
    )(_pad_rows(x2d, Mp), g.reshape(1, E), beta.reshape(1, E))
    return out[:M] if Mp != M else out


def _proj_add_ln_kernel(x_ref, wt_ref, b_ref, r_ref, g_ref, beta_ref, o_ref, *, eps):
    # LayerNorm(residual + x @ W + b)
    y = jnp.dot(x_ref[...], wt_ref[...], preferred_element_type=jnp.float32)
    y = y + b_ref[...] + r_ref[...]
    o_ref[...] = _ln_math(y, g_ref[...], beta_ref[...], eps).astype(o_ref.dtype)


def proj_add_ln_pallas(x2d, wT, b, res2d, g, beta, eps=LN_EPS):
    """x2d: (M, K); wT: (K, E); res2d: (M, E) -> LayerNorm(res + x@W + b)."""
    M, K = x2d.shape
    E = wT.shape[1]
    tm, Mp, gm = _row_grid(M)
    out = pl.pallas_call(
        functools.partial(_proj_add_ln_kernel, eps=eps),
        out_shape=jax.ShapeDtypeStruct((Mp, E), jnp.float32),
        grid=(gm,),
        in_specs=[pl.BlockSpec((tm, K), lambda i: (i, 0)),
                  pl.BlockSpec((K, E), lambda i: (0, 0)),
                  pl.BlockSpec((1, E), lambda i: (0, 0)),
                  pl.BlockSpec((tm, E), lambda i: (i, 0)),
                  pl.BlockSpec((1, E), lambda i: (0, 0)),
                  pl.BlockSpec((1, E), lambda i: (0, 0))],
        out_specs=pl.BlockSpec((tm, E), lambda i: (i, 0)),
        compiler_params=pltpu.CompilerParams(dimension_semantics=("parallel",)),
    )(_pad_rows(x2d, Mp), wT, b.reshape(1, E), _pad_rows(res2d, Mp),
      g.reshape(1, E), beta.reshape(1, E))
    return out[:M] if Mp != M else out


def _ffn_add_ln_kernel(x_ref, w1_ref, b1_ref, w2_ref, b2_ref, g_ref, beta_ref,
                       o_ref, *, eps):
    # LayerNorm(x + ReLU(x@W1 + b1) @ W2 + b2) -- whole FFN fused, hidden stays in VMEM
    x = x_ref[...].astype(jnp.float32)
    h = jnp.dot(x, w1_ref[...], preferred_element_type=jnp.float32) + b1_ref[...]
    h = jnp.maximum(h, 0.0)
    y = x + jnp.dot(h, w2_ref[...], preferred_element_type=jnp.float32) + b2_ref[...]
    o_ref[...] = _ln_math(y, g_ref[...], beta_ref[...], eps).astype(o_ref.dtype)


def ffn_add_ln_pallas(x2d, w1T, b1, w2T, b2, g, beta, eps=LN_EPS):
    M, E = x2d.shape
    F = w1T.shape[1]
    tm, Mp, gm = _row_grid(M)
    out = pl.pallas_call(
        functools.partial(_ffn_add_ln_kernel, eps=eps),
        out_shape=jax.ShapeDtypeStruct((Mp, E), jnp.float32),
        grid=(gm,),
        in_specs=[pl.BlockSpec((tm, E), lambda i: (i, 0)),
                  pl.BlockSpec((E, F), lambda i: (0, 0)),
                  pl.BlockSpec((1, F), lambda i: (0, 0)),
                  pl.BlockSpec((F, E), lambda i: (0, 0)),
                  pl.BlockSpec((1, E), lambda i: (0, 0)),
                  pl.BlockSpec((1, E), lambda i: (0, 0)),
                  pl.BlockSpec((1, E), lambda i: (0, 0))],
        out_specs=pl.BlockSpec((tm, E), lambda i: (i, 0)),
        compiler_params=pltpu.CompilerParams(dimension_semantics=("parallel",)),
    )(_pad_rows(x2d, Mp), w1T, b1.reshape(1, F), w2T, b2.reshape(1, E),
      g.reshape(1, E), beta.reshape(1, E))
    return out[:M] if Mp != M else out


def _attn_kernel(q_ref, k_ref, v_ref, m_ref, o_ref, *, scale):
    # All heads of one batch element per grid step.
    q = q_ref[0]            # (H, Lq, dh)
    k = k_ref[0]            # (H, Lk, dh)
    v = v_ref[0]            # (H, Lk, dh)
    m = m_ref[0]            # (Lq, Lk) additive, finite
    s = jnp.einsum('hqd,hkd->hqk', q, k,
                   preferred_element_type=jnp.float32) * scale + m[None, :, :]
    s = s - jnp.max(s, axis=-1, keepdims=True)
    p = jnp.exp(s)
    p = p * pl.reciprocal(jnp.sum(p, axis=-1, keepdims=True), approx=True)
    o_ref[0] = jnp.einsum('hqk,hkd->hqd', p, v,
                          preferred_element_type=jnp.float32).astype(o_ref.dtype)


def attention_pallas(q, k, v, mask, scale):
    """q: (B, H, Lq, dh), k/v: (B, H, Lk, dh), mask: (B, Lq, Lk) additive float."""
    B, H, Lq, dh = q.shape
    Lk = k.shape[2]
    return pl.pallas_call(
        functools.partial(_attn_kernel, scale=scale),
        out_shape=jax.ShapeDtypeStruct((B, H, Lq, dh), jnp.float32),
        grid=(B,),
        in_specs=[pl.BlockSpec((1, H, Lq, dh), lambda b: (b, 0, 0, 0)),
                  pl.BlockSpec((1, H, Lk, dh), lambda b: (b, 0, 0, 0)),
                  pl.BlockSpec((1, H, Lk, dh), lambda b: (b, 0, 0, 0)),
                  pl.BlockSpec((1, Lq, Lk), lambda b: (b, 0, 0))],
        out_specs=pl.BlockSpec((1, H, Lq, dh), lambda b: (b, 0, 0, 0)),
        compiler_params=pltpu.CompilerParams(dimension_semantics=("parallel",)),
    )(q, k, v, mask)


# --------------------------- model building blocks --------------------------

def _split_heads(x2d, B, L, H, dh):
    return x2d.reshape(B, L, H, dh).transpose(0, 2, 1, 3)       # (B, H, L, dh)


def _merge_heads(x4d, B, L, E):
    return x4d.transpose(0, 2, 1, 3).reshape(B * L, E)


def self_attention_block(x, qkv_wT, qkv_b, out_wT, out_b, ln_w, ln_b,
                         mask_b, nhead):
    """Post-LN self-attention: LayerNorm(x + MHA(x)). mask_b: (B, L, L) additive."""
    B, L, E = x.shape
    dh = E // nhead
    x2d = x.reshape(B * L, E)
    qkv = linear_pallas(x2d, qkv_wT, qkv_b)                     # (B*L, 3E) fused QKV
    qkv = qkv.reshape(B, L, 3, nhead, dh).transpose(2, 0, 3, 1, 4)   # (3, B, H, L, dh)
    o = attention_pallas(qkv[0], qkv[1], qkv[2], mask_b, 1.0 / math.sqrt(dh))
    o2d = _merge_heads(o, B, L, E)
    y = proj_add_ln_pallas(o2d, out_wT, out_b, x2d, ln_w, ln_b)  # fused proj+res+LN
    return y.reshape(B, L, E)


def cross_attention_block(x, memory, q_wT, q_b, kv_wT, kv_b, out_wT, out_b,
                          ln_w, ln_b, mask_b, nhead):
    """Post-LN cross-attention: LayerNorm(x + MHA(x, memory))."""
    B, T, E = x.shape
    S = memory.shape[1]
    dh = E // nhead
    x2d = x.reshape(B * T, E)
    m2d = memory.reshape(B * S, E)
    q = _split_heads(linear_pallas(x2d, q_wT, q_b), B, T, nhead, dh)
    kv = linear_pallas(m2d, kv_wT, kv_b)                        # (B*S, 2E) fused KV
    kv = kv.reshape(B, S, 2, nhead, dh).transpose(2, 0, 3, 1, 4)
    o = attention_pallas(q, kv[0], kv[1], mask_b, 1.0 / math.sqrt(dh))
    o2d = _merge_heads(o, B, T, E)
    y = proj_add_ln_pallas(o2d, out_wT, out_b, x2d, ln_w, ln_b)
    return y.reshape(B, T, E)


def encoder_layer(x, p, src_mask_b, nhead):
    B, S, E = x.shape
    x = self_attention_block(x, p['sa_qkv_wT'], p['sa_qkv_b'],
                             p['sa_out_wT'], p['sa_out_b'],
                             p['ln1_w'], p['ln1_b'], src_mask_b, nhead)
    x = ffn_add_ln_pallas(x.reshape(B * S, E), p['ff1_wT'], p['ff1_b'],
                          p['ff2_wT'], p['ff2_b'],
                          p['ln2_w'], p['ln2_b']).reshape(B, S, E)
    return x


def decoder_layer(x, memory, p, tgt_mask_b, mem_mask_b, nhead):
    B, T, E = x.shape
    x = self_attention_block(x, p['sa_qkv_wT'], p['sa_qkv_b'],
                             p['sa_out_wT'], p['sa_out_b'],
                             p['ln1_w'], p['ln1_b'], tgt_mask_b, nhead)
    x = cross_attention_block(x, memory, p['ca_q_wT'], p['ca_q_b'],
                              p['ca_kv_wT'], p['ca_kv_b'],
                              p['ca_out_wT'], p['ca_out_b'],
                              p['ln2_w'], p['ln2_b'], mem_mask_b, nhead)
    x = ffn_add_ln_pallas(x.reshape(B * T, E), p['ff1_wT'], p['ff1_b'],
                          p['ff2_wT'], p['ff2_b'],
                          p['ln3_w'], p['ln3_b']).reshape(B, T, E)
    return x


def make_positional_encoding(emb_size, maxlen=512):
    den = jnp.exp(-jnp.arange(0, emb_size, 2, dtype=jnp.float32)
                  * math.log(10000.0) / emb_size)
    pos = jnp.arange(0, maxlen, dtype=jnp.float32).reshape(maxlen, 1)
    pe = jnp.zeros((maxlen, emb_size), jnp.float32)
    pe = pe.at[:, 0::2].set(jnp.sin(pos * den))
    pe = pe.at[:, 1::2].set(jnp.cos(pos * den))
    return pe


def embed_and_pos(tokens, emb_table, pe, emb_size):
    """tokens: (L, B) int -> (B, L, E) (TokenEmbedding*sqrt(E) + PE, dropout=id, transpose)."""
    L = tokens.shape[0]
    x = emb_table[tokens] * math.sqrt(emb_size)        # (L, B, E)
    x = x + pe[:L][:, None, :]
    # TODO(synk): dropout (p=0.1) omitted -- inference-mode identity.
    return jnp.transpose(x, (1, 0, 2))                  # (B, L, E)


def _combine_masks(attn_mask, key_padding_mask, B, Lq, Lk):
    """Build per-batch additive mask (B, Lq, Lk) with finite NEG_INF; no per-head repeat."""
    if attn_mask is not None:
        am = jnp.maximum(attn_mask.astype(jnp.float32), NEG_INF)   # clamp any -inf
    else:
        am = jnp.zeros((Lq, Lk), jnp.float32)
    if key_padding_mask is not None:
        kp = jnp.where(key_padding_mask, NEG_INF, 0.0).astype(jnp.float32)  # (B, Lk)
    else:
        kp = jnp.zeros((B, Lk), jnp.float32)
    return am[None, :, :] + kp[:, None, :]                         # (B, Lq, Lk)


def seq2seq_transformer_forward(params, src, trg, src_mask, tgt_mask,
                                src_padding_mask, tgt_padding_mask,
                                memory_key_padding_mask, *, emb_size, nhead):
    src_x = embed_and_pos(src, params['src_emb'], params['pos'], emb_size)
    tgt_x = embed_and_pos(trg, params['tgt_emb'], params['pos'], emb_size)

    B, S, E = src_x.shape
    T = tgt_x.shape[1]

    src_mask_b = _combine_masks(src_mask, src_padding_mask, B, S, S)
    tgt_mask_b = _combine_masks(tgt_mask, tgt_padding_mask, B, T, T)
    mem_mask_b = _combine_masks(None, memory_key_padding_mask, B, T, S)

    mem = src_x
    for lp in params['enc_layers']:
        mem = encoder_layer(mem, lp, src_mask_b, nhead)
    mem = layernorm_pallas(mem.reshape(B * S, E),
                           params['enc_norm_w'], params['enc_norm_b']).reshape(B, S, E)

    x = tgt_x
    for lp in params['dec_layers']:
        x = decoder_layer(x, mem, lp, tgt_mask_b, mem_mask_b, nhead)
    x = layernorm_pallas(x.reshape(B * T, E),
                         params['dec_norm_w'], params['dec_norm_b']).reshape(B, T, E)

    logits = linear_pallas(x.reshape(B * T, E), params['gen_wT'], params['gen_b'])
    return logits.reshape(B, T, -1)


# ------------------------------ initialization ------------------------------

def _init_linear_T(key, out_dim, in_dim, scale=0.05):
    """Return weight pre-transposed to (in_dim, out_dim) and bias (out_dim,)."""
    kw, kb = jax.random.split(key)
    w = jax.random.normal(kw, (out_dim, in_dim), jnp.float32) * scale  # torch layout
    b = jax.random.normal(kb, (out_dim,), jnp.float32) * scale
    return jnp.asarray(w.T), b                                         # transposed once


def init_params(key, num_enc, num_dec, emb, nhead, src_vocab, tgt_vocab, dff):
    keys = jax.random.split(key, 5)
    p = {}
    p['src_emb'] = jax.random.normal(keys[0], (src_vocab, emb), jnp.float32) * 0.05
    p['tgt_emb'] = jax.random.normal(keys[1], (tgt_vocab, emb), jnp.float32) * 0.05
    p['gen_wT'], p['gen_b'] = _init_linear_T(keys[2], tgt_vocab, emb)

    def _ln(lp, names):
        for n in names:
            lp[n + '_w'] = jnp.ones((emb,), jnp.float32)
            lp[n + '_b'] = jnp.zeros((emb,), jnp.float32)

    enc_keys = jax.random.split(keys[3], num_enc)
    enc_layers = []
    for i in range(num_enc):
        ks = jax.random.split(enc_keys[i], 4)
        lp = {}
        lp['sa_qkv_wT'], lp['sa_qkv_b'] = _init_linear_T(ks[0], 3 * emb, emb)
        lp['sa_out_wT'], lp['sa_out_b'] = _init_linear_T(ks[1], emb, emb)
        lp['ff1_wT'], lp['ff1_b'] = _init_linear_T(ks[2], dff, emb)
        lp['ff2_wT'], lp['ff2_b'] = _init_linear_T(ks[3], emb, dff)
        _ln(lp, ('ln1', 'ln2'))
        enc_layers.append(lp)
    p['enc_layers'] = enc_layers
    p['enc_norm_w'] = jnp.ones((emb,), jnp.float32)
    p['enc_norm_b'] = jnp.zeros((emb,), jnp.float32)

    dec_keys = jax.random.split(keys[4], num_dec)
    dec_layers = []
    for i in range(num_dec):
        ks = jax.random.split(dec_keys[i], 6)
        lp = {}
        lp['sa_qkv_wT'], lp['sa_qkv_b'] = _init_linear_T(ks[0], 3 * emb, emb)
        lp['sa_out_wT'], lp['sa_out_b'] = _init_linear_T(ks[1], emb, emb)
        # cross-attn: Q-proj (E->E) and fused KV-proj (E->2E)
        lp['ca_q_wT'], lp['ca_q_b'] = _init_linear_T(ks[2], emb, emb)
        lp['ca_kv_wT'], lp['ca_kv_b'] = _init_linear_T(ks[3], 2 * emb, emb)
        lp['ca_out_wT'], lp['ca_out_b'] = _init_linear_T(ks[4], emb, emb)
        ksf = jax.random.split(ks[5], 2)
        lp['ff1_wT'], lp['ff1_b'] = _init_linear_T(ksf[0], dff, emb)
        lp['ff2_wT'], lp['ff2_b'] = _init_linear_T(ksf[1], emb, dff)
        _ln(lp, ('ln1', 'ln2', 'ln3'))
        dec_layers.append(lp)
    p['dec_layers'] = dec_layers
    p['dec_norm_w'] = jnp.ones((emb,), jnp.float32)
    p['dec_norm_b'] = jnp.zeros((emb,), jnp.float32)

    p['pos'] = make_positional_encoding(emb, maxlen=512)
    return p


# ----------------------------------- main -----------------------------------

if __name__ == "__main__":
    # Small config: Seq2SeqTransformer(2, 2, emb_size=32, nhead=4,
    #                                  src_vocab=50, tgt_vocab=60, dim_feedforward=64)
    NUM_ENC, NUM_DEC = 2, 2
    EMB, NHEAD = 32, 4
    SRC_VOCAB, TGT_VOCAB = 50, 60
    DFF = 64
    S, T, B = 10, 8, 2

    key = jax.random.PRNGKey(0)
    pkey, skey, tkey = jax.random.split(key, 3)
    params = init_params(pkey, NUM_ENC, NUM_DEC, EMB, NHEAD, SRC_VOCAB, TGT_VOCAB, DFF)

    src = jax.random.randint(skey, (S, B), 0, SRC_VOCAB, dtype=jnp.int32)   # (seq, batch)
    trg = jax.random.randint(tkey, (T, B), 0, TGT_VOCAB, dtype=jnp.int32)   # (seq, batch)

    src_mask = jnp.zeros((S, S), jnp.float32)
    tgt_mask = jnp.where(jnp.triu(jnp.ones((T, T), dtype=bool), k=1),
                         NEG_INF, 0.0).astype(jnp.float32)                  # causal (finite)
    src_padding_mask = jnp.zeros((B, S), dtype=bool)
    tgt_padding_mask = jnp.zeros((B, T), dtype=bool)
    memory_key_padding_mask = jnp.zeros((B, S), dtype=bool)

    fwd = jax.jit(functools.partial(seq2seq_transformer_forward,
                                    emb_size=EMB, nhead=NHEAD))
    out = fwd(params, src, trg, src_mask, tgt_mask,
              src_padding_mask, tgt_padding_mask, memory_key_padding_mask)
    out = jax.block_until_ready(out)

    assert out.shape == (B, T, TGT_VOCAB), out.shape
    assert bool(jnp.all(jnp.isfinite(out)))
    print("KERNEL_OK")
</pallas_src>

<mosaic_0001>
module attributes {stable_mosaic.version = 11 : i64} {
  func.func @_linear_kernel(%arg0: i32, %arg1: i32, %arg2: memref<20x32xf32, #tpu.memory_space<vmem>>, %arg3: memref<32x96xf32, #tpu.memory_space<vmem>>, %arg4: memref<1x96xf32, #tpu.memory_space<vmem>>, %arg5: memref<20x96xf32, #tpu.memory_space<vmem>>) attributes {dimension_semantics = [#tpu.dimension_semantics<parallel>, #tpu.dimension_semantics<parallel>], iteration_bounds = array<i64: 1, 1>, scalar_prefetch = 0 : i64, scratch_operands = 0 : i64, tpu.core_type = #tpu.core_type<tc>, window_params = [{transform_indices = @transform_0, window_bounds = array<i64: 20, 32>}, {transform_indices = @transform_1, window_bounds = array<i64: 32, 96>}, {transform_indices = @transform_2, window_bounds = array<i64: 1, 96>}, {transform_indices = @transform_3, window_bounds = array<i64: 20, 96>}]} {
    %c0 = arith.constant 0 : index
    %c0_0 = arith.constant 0 : index
    %0 = vector.load %arg2[%c0, %c0_0] : memref<20x32xf32, #tpu.memory_space<vmem>>, vector<20x32xf32>
    %c0_1 = arith.constant 0 : index
    %c0_2 = arith.constant 0 : index
    %1 = vector.load %arg3[%c0_1, %c0_2] : memref<32x96xf32, #tpu.memory_space<vmem>>, vector<32x96xf32>
    %cst = arith.constant dense<0.000000e+00> : vector<20x96xf32>
    %2 = tpu.matmul %0, %1, %cst {dimension_numbers = #tpu.dot_dimension_numbers<[1], [0], [0], [1], [0, 0, 1, 1], [], []>} : vector<20x32xf32>, vector<32x96xf32>, vector<20x96xf32> -> vector<20x96xf32>
    %c0_3 = arith.constant 0 : index
    %c0_4 = arith.constant 0 : index
    %3 = vector.load %arg4[%c0_3, %c0_4] : memref<1x96xf32, #tpu.memory_space<vmem>>, vector<1x96xf32>
    %4 = vector.broadcast %3 : vector<1x96xf32> to vector<20x96xf32>
    %5 = arith.addf %2, %4 : vector<20x96xf32>
    %c0_5 = arith.constant 0 : index
    %c0_6 = arith.constant 0 : index
    %6 = vector.load %arg5[%c0_5, %c0_6] : memref<20x96xf32, #tpu.memory_space<vmem>>, vector<20x96xf32>
    tpu.vector_store %arg5[%c0_5, %c0_6], %5 {strides = array<i32>} : memref<20x96xf32, #tpu.memory_space<vmem>>, vector<20x96xf32>,
    return
  }
  func.func @transform_0(%arg0: i32, %arg1: i32) -> (i32, i32) {
    %c0_i32 = arith.constant 0 : i32
    %c0_i32_0 = arith.constant 0 : i32
    return %arg0, %c0_i32 : i32, i32
  }
  func.func @transform_1(%arg0: i32, %arg1: i32) -> (i32, i32) {
    %c0_i32 = arith.constant 0 : i32
    %c0_i32_0 = arith.constant 0 : i32
    return %c0_i32, %arg1 : i32, i32
  }
  func.func @transform_2(%arg0: i32, %arg1: i32) -> (i32, i32) {
    %c0_i32 = arith.constant 0 : i32
    %c0_i32_0 = arith.constant 0 : i32
    return %c0_i32, %arg1 : i32, i32
  }
  func.func @transform_3(%arg0: i32, %arg1: i32) -> (i32, i32) {
    %c0_i32 = arith.constant 0 : i32
    return %arg0, %arg1 : i32, i32
  }
}

module attributes {stable_mosaic.version = 11 : i64} {
  func.func @_attn_kernel(%arg0: i32, %arg1: memref<1x4x10x8xf32, #tpu.memory_space<vmem>>, %arg2: memref<1x4x10x8xf32, #tpu.memory_space<vmem>>, %arg3: memref<1x4x10x8xf32, #tpu.memory_space<vmem>>, %arg4: memref<1x10x10xf32, #tpu.memory_space<vmem>>, %arg5: memref<1x4x10x8xf32, #tpu.memory_space<vmem>>) attributes {dimension_semantics = [#tpu.dimension_semantics<parallel>], iteration_bounds = array<i64: 2>, scalar_prefetch = 0 : i64, scratch_operands = 0 : i64, tpu.core_type = #tpu.core_type<tc>, window_params = [{transform_indices = @transform_0, window_bounds = array<i64: 1, 4, 10, 8>}, {transform_indices = @transform_1, window_bounds = array<i64: 1, 4, 10, 8>}, {transform_indices = @transform_2, window_bounds = array<i64: 1, 4, 10, 8>}, {transform_indices = @transform_3, window_bounds = array<i64: 1, 10, 10>}, {transform_indices = @transform_4, window_bounds = array<i64: 1, 4, 10, 8>}]} {
    %c0 = arith.constant 0 : index
    %c0_0 = arith.constant 0 : index
    %c0_1 = arith.constant 0 : index
    %c0_2 = arith.constant 0 : index
    %0 = vector.load %arg1[%c0, %c0_0, %c0_1, %c0_2] : memref<1x4x10x8xf32, #tpu.memory_space<vmem>>, vector<1x4x10x8xf32>
    %1 = vector.shape_cast %0 : vector<1x4x10x8xf32> to vector<4x10x8xf32>
    %c0_3 = arith.constant 0 : index
    %c0_4 = arith.constant 0 : index
    %c0_5 = arith.constant 0 : index
    %c0_6 = arith.constant 0 : index
    %2 = vector.load %arg2[%c0_3, %c0_4, %c0_5, %c0_6] : memref<1x4x10x8xf32, #tpu.memory_space<vmem>>, vector<1x4x10x8xf32>
    %3 = vector.shape_cast %2 : vector<1x4x10x8xf32> to vector<4x10x8xf32>
    %c0_7 = arith.constant 0 : index
    %c0_8 = arith.constant 0 : index
    %c0_9 = arith.constant 0 : index
    %c0_10 = arith.constant 0 : index
    %4 = vector.load %arg3[%c0_7, %c0_8, %c0_9, %c0_10] : memref<1x4x10x8xf32, #tpu.memory_space<vmem>>, vector<1x4x10x8xf32>
    %5 = vector.shape_cast %4 : vector<1x4x10x8xf32> to vector<4x10x8xf32>
    %c0_11 = arith.constant 0 : index
    %c0_12 = arith.constant 0 : index
    %c0_13 = arith.constant 0 : index
    %6 = vector.load %arg4[%c0_11, %c0_12, %c0_13] : memref<1x10x10xf32, #tpu.memory_space<vmem>>, vector<1x10x10xf32>
    %7 = vector.shape_cast %6 : vector<1x10x10xf32> to vector<10x10xf32>
    "tpu.trace_start"() <{level = 10 : i32, message = "hqd,hkd->hqk"}> : () -> ()
    %cst = arith.constant dense<0.000000e+00> : vector<4x10x10xf32>
    %8 = tpu.matmul %1, %3, %cst {dimension_numbers = #tpu.dot_dimension_numbers<[2], [2], [1], [1], [0, 0, 0, 1, 1, 1], [0], [0]>} : vector<4x10x8xf32>, vector<4x10x8xf32>, vector<4x10x10xf32> -> vector<4x10x10xf32>
    "tpu.trace_stop"() : () -> ()
    %cst_14 = arith.constant 0.353553385 : f32
    %9 = vector.broadcast %cst_14 : f32 to vector<4x10x10xf32>
    %10 = arith.mulf %8, %9 : vector<4x10x10xf32>
    %11 = vector.shape_cast %7 : vector<10x10xf32> to vector<1x10x10xf32>
    %12 = vector.broadcast %11 : vector<1x10x10xf32> to vector<4x10x10xf32>
    %13 = arith.addf %10, %12 : vector<4x10x10xf32>
    %cst_15 = arith.constant dense<0xFF800000> : vector<4x10xf32>
    %14 = vector.multi_reduction <maximumf>, %13, %cst_15 [2] : vector<4x10x10xf32> to vector<4x10xf32>
    %15 = vector.shape_cast %14 : vector<4x10xf32> to vector<4x10x1xf32>
    %16 = vector.broadcast %15 : vector<4x10x1xf32> to vector<4x10x10xf32>
    %17 = arith.subf %13, %16 : vector<4x10x10xf32>
    %18 = math.exp %17 : vector<4x10x10xf32>
    %cst_16 = arith.constant dense<0.000000e+00> : vector<4x10xf32>
    %19 = vector.multi_reduction <add>, %18, %cst_16 [2] : vector<4x10x10xf32> to vector<4x10xf32>
    %20 = vector.shape_cast %19 : vector<4x10xf32> to vector<4x10x1xf32>
    %21 = tpu.reciprocal %20 {approx = true} : vector<4x10x1xf32> -> vector<4x10x1xf32>
    %22 = vector.broadcast %21 : vector<4x10x1xf32> to vector<4x10x10xf32>
    %23 = arith.mulf %18, %22 : vector<4x10x10xf32>
    "tpu.trace_start"() <{level = 10 : i32, message = "hqk,hkd->hqd"}> : () -> ()
    %cst_17 = arith.constant dense<0.000000e+00> : vector<4x10x8xf32>
    %24 = tpu.matmul %23, %5, %cst_17 {dimension_numbers = #tpu.dot_dimension_numbers<[2], [1], [1], [2], [0, 0, 0, 1, 1, 2], [0], [0]>} : vector<4x10x10xf32>, vector<4x10x8xf32>, vector<4x10x8xf32> -> vector<4x10x8xf32>
    "tpu.trace_stop"() : () -> ()
    %c0_18 = arith.constant 0 : index
    %c0_19 = arith.constant 0 : index
    %c0_20 = arith.constant 0 : index
    %c0_21 = arith.constant 0 : index
    %25 = vector.load %arg5[%c0_18, %c0_19, %c0_20, %c0_21] : memref<1x4x10x8xf32, #tpu.memory_space<vmem>>, vector<1x4x10x8xf32>
    %26 = vector.shape_cast %25 : vector<1x4x10x8xf32> to vector<4x10x8xf32>
    %27 = vector.shape_cast %24 : vector<4x10x8xf32> to vector<1x4x10x8xf32>
    tpu.vector_store %arg5[%c0_18, %c0_19, %c0_20, %c0_21], %27 {strides = array<i32>} : memref<1x4x10x8xf32, #tpu.memory_space<vmem>>, vector<1x4x10x8xf32>,
    return
  }
  func.func @transform_0(%arg0: i32) -> (i32, i32, i32, i32) {
    %c0_i32 = arith.constant 0 : i32
    %c0_i32_0 = arith.constant 0 : i32
    %c0_i32_1 = arith.constant 0 : i32
    %c0_i32_2 = arith.constant 0 : i32
    return %arg0, %c0_i32, %c0_i32_0, %c0_i32_1 : i32, i32, i32, i32
  }
  func.func @transform_1(%arg0: i32) -> (i32, i32, i32, i32) {
    %c0_i32 = arith.constant 0 : i32
    %c0_i32_0 = arith.constant 0 : i32
    %c0_i32_1 = arith.constant 0 : i32
    %c0_i32_2 = arith.constant 0 : i32
    return %arg0, %c0_i32, %c0_i32_0, %c0_i32_1 : i32, i32, i32, i32
  }
  func.func @transform_2(%arg0: i32) -> (i32, i32, i32, i32) {
    %c0_i32 = arith.constant 0 : i32
    %c0_i32_0 = arith.constant 0 : i32
    %c0_i32_1 = arith.constant 0 : i32
    %c0_i32_2 = arith.constant 0 : i32
    return %arg0, %c0_i32, %c0_i32_0, %c0_i32_1 : i32, i32, i32, i32
  }
  func.func @transform_3(%arg0: i32) -> (i32, i32, i32) {
    %c0_i32 = arith.constant 0 : i32
    %c0_i32_0 = arith.constant 0 : i32
    %c0_i32_1 = arith.constant 0 : i32
    return %arg0, %c0_i32, %c0_i32_0 : i32, i32, i32
  }
  func.func @transform_4(%arg0: i32) -> (i32, i32, i32, i32) {
    %c0_i32 = arith.constant 0 : i32
    %c0_i32_0 = arith.constant 0 : i32
    %c0_i32_1 = arith.constant 0 : i32
    %c0_i32_2 = arith.constant 0 : i32
    return %arg0, %c0_i32, %c0_i32_0, %c0_i32_1 : i32, i32, i32, i32
  }
}

module attributes {stable_mosaic.version = 11 : i64} {
  func.func @_proj_add_ln_kernel(%arg0: i32, %arg1: memref<20x32xf32, #tpu.memory_space<vmem>>, %arg2: memref<32x32xf32, #tpu.memory_space<vmem>>, %arg3: memref<1x32xf32, #tpu.memory_space<vmem>>, %arg4: memref<20x32xf32, #tpu.memory_space<vmem>>, %arg5: memref<1x32xf32, #tpu.memory_space<vmem>>, %arg6: memref<1x32xf32, #tpu.memory_space<vmem>>, %arg7: memref<20x32xf32, #tpu.memory_space<vmem>>) attributes {dimension_semantics = [#tpu.dimension_semantics<parallel>], iteration_bounds = array<i64: 1>, scalar_prefetch = 0 : i64, scratch_operands = 0 : i64, tpu.core_type = #tpu.core_type<tc>, window_params = [{transform_indices = @transform_0, window_bounds = array<i64: 20, 32>}, {pipeline_mode = #tpu.pipeline_mode<synchronous>, transform_indices = @transform_1, window_bounds = array<i64: 32, 32>}, {pipeline_mode = #tpu.pipeline_mode<synchronous>, transform_indices = @transform_2, window_bounds = array<i64: 1, 32>}, {transform_indices = @transform_3, window_bounds = array<i64: 20, 32>}, {pipeline_mode = #tpu.pipeline_mode<synchronous>, transform_indices = @transform_4, window_bounds = array<i64: 1, 32>}, {pipeline_mode = #tpu.pipeline_mode<synchronous>, transform_indices = @transform_5, window_bounds = array<i64: 1, 32>}, {transform_indices = @transform_6, window_bounds = array<i64: 20, 32>}]} {
    %c0 = arith.constant 0 : index
    %c0_0 = arith.constant 0 : index
    %0 = vector.load %arg1[%c0, %c0_0] : memref<20x32xf32, #tpu.memory_space<vmem>>, vector<20x32xf32>
    %c0_1 = arith.constant 0 : index
    %c0_2 = arith.constant 0 : index
    %1 = vector.load %arg2[%c0_1, %c0_2] : memref<32x32xf32, #tpu.memory_space<vmem>>, vector<32x32xf32>
    %cst = arith.constant dense<0.000000e+00> : vector<20x32xf32>
    %2 = tpu.matmul %0, %1, %cst {dimension_numbers = #tpu.dot_dimension_numbers<[1], [0], [0], [1], [0, 0, 1, 1], [], []>} : vector<20x32xf32>, vector<32x32xf32>, vector<20x32xf32> -> vector<20x32xf32>
    %c0_3 = arith.constant 0 : index
    %c0_4 = arith.constant 0 : index
    %3 = vector.load %arg3[%c0_3, %c0_4] : memref<1x32xf32, #tpu.memory_space<vmem>>, vector<1x32xf32>
    %4 = vector.broadcast %3 : vector<1x32xf32> to vector<20x32xf32>
    %5 = arith.addf %2, %4 : vector<20x32xf32>
    %c0_5 = arith.constant 0 : index
    %c0_6 = arith.constant 0 : index
    %6 = vector.load %arg4[%c0_5, %c0_6] : memref<20x32xf32, #tpu.memory_space<vmem>>, vector<20x32xf32>
    %7 = arith.addf %5, %6 : vector<20x32xf32>
    %c0_7 = arith.constant 0 : index
    %c0_8 = arith.constant 0 : index
    %8 = vector.load %arg5[%c0_7, %c0_8] : memref<1x32xf32, #tpu.memory_space<vmem>>, vector<1x32xf32>
    %c0_9 = arith.constant 0 : index
    %c0_10 = arith.constant 0 : index
    %9 = vector.load %arg6[%c0_9, %c0_10] : memref<1x32xf32, #tpu.memory_space<vmem>>, vector<1x32xf32>
    %cst_11 = arith.constant dense<0.000000e+00> : vector<20xf32>
    %10 = vector.multi_reduction <add>, %7, %cst_11 [1] : vector<20x32xf32> to vector<20xf32>
    %11 = vector.shape_cast %10 : vector<20xf32> to vector<20x1xf32>
    %cst_12 = arith.constant 3.200000e+01 : f32
    %12 = vector.broadcast %cst_12 : f32 to vector<20x1xf32>
    %13 = arith.divf %11, %12 : vector<20x1xf32>
    %14 = vector.broadcast %13 : vector<20x1xf32> to vector<20x32xf32>
    %15 = arith.subf %7, %14 : vector<20x32xf32>
    %16 = arith.mulf %15, %15 : vector<20x32xf32>
    %cst_13 = arith.constant dense<0.000000e+00> : vector<20xf32>
    %17 = vector.multi_reduction <add>, %16, %cst_13 [1] : vector<20x32xf32> to vector<20xf32>
    %18 = vector.shape_cast %17 : vector<20xf32> to vector<20x1xf32>
    %cst_14 = arith.constant 3.200000e+01 : f32
    %19 = vector.broadcast %cst_14 : f32 to vector<20x1xf32>
    %20 = arith.divf %18, %19 : vector<20x1xf32>
    %21 = vector.broadcast %13 : vector<20x1xf32> to vector<20x32xf32>
    %22 = arith.subf %7, %21 : vector<20x32xf32>
    %cst_15 = arith.constant 9.99999974E-6 : f32
    %23 = vector.broadcast %cst_15 : f32 to vector<20x1xf32>
    %24 = arith.addf %20, %23 : vector<20x1xf32>
    %25 = math.rsqrt %24 : vector<20x1xf32>
    %26 = vector.broadcast %25 : vector<20x1xf32> to vector<20x32xf32>
    %27 = arith.mulf %22, %26 : vector<20x32xf32>
    %28 = vector.broadcast %8 : vector<1x32xf32> to vector<20x32xf32>
    %29 = arith.mulf %27, %28 : vector<20x32xf32>
    %30 = vector.broadcast %9 : vector<1x32xf32> to vector<20x32xf32>
    %31 = arith.addf %29, %30 : vector<20x32xf32>
    %c0_16 = arith.constant 0 : index
    %c0_17 = arith.constant 0 : index
    %32 = vector.load %arg7[%c0_16, %c0_17] : memref<20x32xf32, #tpu.memory_space<vmem>>, vector<20x32xf32>
    tpu.vector_store %arg7[%c0_16, %c0_17], %31 {strides = array<i32>} : memref<20x32xf32, #tpu.memory_space<vmem>>, vector<20x32xf32>,
    return
  }
  func.func @transform_0(%arg0: i32) -> (i32, i32) {
    %c0_i32 = arith.constant 0 : i32
    %c0_i32_0 = arith.constant 0 : i32
    return %arg0, %c0_i32 : i32, i32
  }
  func.func @transform_1(%arg0: i32) -> (i32, i32) {
    %c0_i32 = arith.constant 0 : i32
    %c0_i32_0 = arith.constant 0 : i32
    %c0_i32_1 = arith.constant 0 : i32
    return %c0_i32, %c0_i32_0 : i32, i32
  }
  func.func @transform_2(%arg0: i32) -> (i32, i32) {
    %c0_i32 = arith.constant 0 : i32
    %c0_i32_0 = arith.constant 0 : i32
    %c0_i32_1 = arith.constant 0 : i32
    return %c0_i32, %c0_i32_0 : i32, i32
  }
  func.func @transform_3(%arg0: i32) -> (i32, i32) {
    %c0_i32 = arith.constant 0 : i32
    %c0_i32_0 = arith.constant 0 : i32
    return %arg0, %c0_i32 : i32, i32
  }
  func.func @transform_4(%arg0: i32) -> (i32, i32) {
    %c0_i32 = arith.constant 0 : i32
    %c0_i32_0 = arith.constant 0 : i32
    %c0_i32_1 = arith.constant 0 : i32
    return %c0_i32, %c0_i32_0 : i32, i32
  }
  func.func @transform_5(%arg0: i32) -> (i32, i32) {
    %c0_i32 = arith.constant 0 : i32
    %c0_i32_0 = arith.constant 0 : i32
    %c0_i32_1 = arith.constant 0 : i32
    return %c0_i32, %c0_i32_0 : i32, i32
  }
  func.func @transform_6(%arg0: i32) -> (i32, i32) {
    %c0_i32 = arith.constant 0 : i32
    %c0_i32_0 = arith.constant 0 : i32
    return %arg0, %c0_i32 : i32, i32
  }
}

module attributes {stable_mosaic.version = 11 : i64} {
  func.func @_ffn_add_ln_kernel(%arg0: i32, %arg1: memref<20x32xf32, #tpu.memory_space<vmem>>, %arg2: memref<32x64xf32, #tpu.memory_space<vmem>>, %arg3: memref<1x64xf32, #tpu.memory_space<vmem>>, %arg4: memref<64x32xf32, #tpu.memory_space<vmem>>, %arg5: memref<1x32xf32, #tpu.memory_space<vmem>>, %arg6: memref<1x32xf32, #tpu.memory_space<vmem>>, %arg7: memref<1x32xf32, #tpu.memory_space<vmem>>, %arg8: memref<20x32xf32, #tpu.memory_space<vmem>>) attributes {dimension_semantics = [#tpu.dimension_semantics<parallel>], iteration_bounds = array<i64: 1>, scalar_prefetch = 0 : i64, scratch_operands = 0 : i64, tpu.core_type = #tpu.core_type<tc>, window_params = [{transform_indices = @transform_0, window_bounds = array<i64: 20, 32>}, {pipeline_mode = #tpu.pipeline_mode<synchronous>, transform_indices = @transform_1, window_bounds = array<i64: 32, 64>}, {pipeline_mode = #tpu.pipeline_mode<synchronous>, transform_indices = @transform_2, window_bounds = array<i64: 1, 64>}, {pipeline_mode = #tpu.pipeline_mode<synchronous>, transform_indices = @transform_3, window_bounds = array<i64: 64, 32>}, {pipeline_mode = #tpu.pipeline_mode<synchronous>, transform_indices = @transform_4, window_bounds = array<i64: 1, 32>}, {pipeline_mode = #tpu.pipeline_mode<synchronous>, transform_indices = @transform_5, window_bounds = array<i64: 1, 32>}, {pipeline_mode = #tpu.pipeline_mode<synchronous>, transform_indices = @transform_6, window_bounds = array<i64: 1, 32>}, {transform_indices = @transform_7, window_bounds = array<i64: 20, 32>}]} {
    %c0 = arith.constant 0 : index
    %c0_0 = arith.constant 0 : index
    %0 = vector.load %arg1[%c0, %c0_0] : memref<20x32xf32, #tpu.memory_space<vmem>>, vector<20x32xf32>
    %c0_1 = arith.constant 0 : index
    %c0_2 = arith.constant 0 : index
    %1 = vector.load %arg2[%c0_1, %c0_2] : memref<32x64xf32, #tpu.memory_space<vmem>>, vector<32x64xf32>
    %cst = arith.constant dense<0.000000e+00> : vector<20x64xf32>
    %2 = tpu.matmul %0, %1, %cst {dimension_numbers = #tpu.dot_dimension_numbers<[1], [0], [0], [1], [0, 0, 1, 1], [], []>} : vector<20x32xf32>, vector<32x64xf32>, vector<20x64xf32> -> vector<20x64xf32>
    %c0_3 = arith.constant 0 : index
    %c0_4 = arith.constant 0 : index
    %3 = vector.load %arg3[%c0_3, %c0_4] : memref<1x64xf32, #tpu.memory_space<vmem>>, vector<1x64xf32>
    %4 = vector.broadcast %3 : vector<1x64xf32> to vector<20x64xf32>
    %5 = arith.addf %2, %4 : vector<20x64xf32>
    %cst_5 = arith.constant 0.000000e+00 : f32
    %6 = vector.broadcast %cst_5 : f32 to vector<20x64xf32>
    %7 = arith.maximumf %5, %6 : vector<20x64xf32>
    %c0_6 = arith.constant 0 : index
    %c0_7 = arith.constant 0 : index
    %8 = vector.load %arg4[%c0_6, %c0_7] : memref<64x32xf32, #tpu.memory_space<vmem>>, vector<64x32xf32>
    %cst_8 = arith.constant dense<0.000000e+00> : vector<20x32xf32>
    %9 = tpu.matmul %7, %8, %cst_8 {dimension_numbers = #tpu.dot_dimension_numbers<[1], [0], [0], [1], [0, 0, 1, 1], [], []>} : vector<20x64xf32>, vector<64x32xf32>, vector<20x32xf32> -> vector<20x32xf32>
    %10 = arith.addf %0, %9 : vector<20x32xf32>
    %c0_9 = arith.constant 0 : index
    %c0_10 = arith.constant 0 : index
    %11 = vector.load %arg5[%c0_9, %c0_10] : memref<1x32xf32, #tpu.memory_space<vmem>>, vector<1x32xf32>
    %12 = vector.broadcast %11 : vector<1x32xf32> to vector<20x32xf32>
    %13 = arith.addf %10, %12 : vector<20x32xf32>
    %c0_11 = arith.constant 0 : index
    %c0_12 = arith.constant 0 : index
    %14 = vector.load %arg6[%c0_11, %c0_12] : memref<1x32xf32, #tpu.memory_space<vmem>>, vector<1x32xf32>
    %c0_13 = arith.constant 0 : index
    %c0_14 = arith.constant 0 : index
    %15 = vector.load %arg7[%c0_13, %c0_14] : memref<1x32xf32, #tpu.memory_space<vmem>>, vector<1x32xf32>
    %cst_15 = arith.constant dense<0.000000e+00> : vector<20xf32>
    %16 = vector.multi_reduction <add>, %13, %cst_15 [1] : vector<20x32xf32> to vector<20xf32>
    %17 = vector.shape_cast %16 : vector<20xf32> to vector<20x1xf32>
    %cst_16 = arith.constant 3.200000e+01 : f32
    %18 = vector.broadcast %cst_16 : f32 to vector<20x1xf32>
    %19 = arith.divf %17, %18 : vector<20x1xf32>
    %20 = vector.broadcast %19 : vector<20x1xf32> to vector<20x32xf32>
    %21 = arith.subf %13, %20 : vector<20x32xf32>
    %22 = arith.mulf %21, %21 : vector<20x32xf32>
    %cst_17 = arith.constant dense<0.000000e+00> : vector<20xf32>
    %23 = vector.multi_reduction <add>, %22, %cst_17 [1] : vector<20x32xf32> to vector<20xf32>
    %24 = vector.shape_cast %23 : vector<20xf32> to vector<20x1xf32>
    %cst_18 = arith.constant 3.200000e+01 : f32
    %25 = vector.broadcast %cst_18 : f32 to vector<20x1xf32>
    %26 = arith.divf %24, %25 : vector<20x1xf32>
    %27 = vector.broadcast %19 : vector<20x1xf32> to vector<20x32xf32>
    %28 = arith.subf %13, %27 : vector<20x32xf32>
    %cst_19 = arith.constant 9.99999974E-6 : f32
    %29 = vector.broadcast %cst_19 : f32 to vector<20x1xf32>
    %30 = arith.addf %26, %29 : vector<20x1xf32>
    %31 = math.rsqrt %30 : vector<20x1xf32>
    %32 = vector.broadcast %31 : vector<20x1xf32> to vector<20x32xf32>
    %33 = arith.mulf %28, %32 : vector<20x32xf32>
    %34 = vector.broadcast %14 : vector<1x32xf32> to vector<20x32xf32>
    %35 = arith.mulf %33, %34 : vector<20x32xf32>
    %36 = vector.broadcast %15 : vector<1x32xf32> to vector<20x32xf32>
    %37 = arith.addf %35, %36 : vector<20x32xf32>
    %c0_20 = arith.constant 0 : index
    %c0_21 = arith.constant 0 : index
    %38 = vector.load %arg8[%c0_20, %c0_21] : memref<20x32xf32, #tpu.memory_space<vmem>>, vector<20x32xf32>
    tpu.vector_store %arg8[%c0_20, %c0_21], %37 {strides = array<i32>} : memref<20x32xf32, #tpu.memory_space<vmem>>, vector<20x32xf32>,
    return
  }
  func.func @transform_0(%arg0: i32) -> (i32, i32) {
    %c0_i32 = arith.constant 0 : i32
    %c0_i32_0 = arith.constant 0 : i32
    return %arg0, %c0_i32 : i32, i32
  }
  func.func @transform_1(%arg0: i32) -> (i32, i32) {
    %c0_i32 = arith.constant 0 : i32
    %c0_i32_0 = arith.constant 0 : i32
    %c0_i32_1 = arith.constant 0 : i32
    return %c0_i32, %c0_i32_0 : i32, i32
  }
  func.func @transform_2(%arg0: i32) -> (i32, i32) {
    %c0_i32 = arith.constant 0 : i32
    %c0_i32_0 = arith.constant 0 : i32
    %c0_i32_1 = arith.constant 0 : i32
    return %c0_i32, %c0_i32_0 : i32, i32
  }
  func.func @transform_3(%arg0: i32) -> (i32, i32) {
    %c0_i32 = arith.constant 0 : i32
    %c0_i32_0 = arith.constant 0 : i32
    %c0_i32_1 = arith.constant 0 : i32
    return %c0_i32, %c0_i32_0 : i32, i32
  }
  func.func @transform_4(%arg0: i32) -> (i32, i32) {
    %c0_i32 = arith.constant 0 : i32
    %c0_i32_0 = arith.constant 0 : i32
    %c0_i32_1 = arith.constant 0 : i32
    return %c0_i32, %c0_i32_0 : i32, i32
  }
  func.func @transform_5(%arg0: i32) -> (i32, i32) {
    %c0_i32 = arith.constant 0 : i32
    %c0_i32_0 = arith.constant 0 : i32
    %c0_i32_1 = arith.constant 0 : i32
    return %c0_i32, %c0_i32_0 : i32, i32
  }
  func.func @transform_6(%arg0: i32) -> (i32, i32) {
    %c0_i32 = arith.constant 0 : i32
    %c0_i32_0 = arith.constant 0 : i32
    %c0_i32_1 = arith.constant 0 : i32
    return %c0_i32, %c0_i32_0 : i32, i32
  }
  func.func @transform_7(%arg0: i32) -> (i32, i32) {
    %c0_i32 = arith.constant 0 : i32
    %c0_i32_0 = arith.constant 0 : i32
    return %arg0, %c0_i32 : i32, i32
  }
}

module attributes {stable_mosaic.version = 11 : i64} {
  func.func @_ln_kernel(%arg0: i32, %arg1: memref<20x32xf32, #tpu.memory_space<vmem>>, %arg2: memref<1x32xf32, #tpu.memory_space<vmem>>, %arg3: memref<1x32xf32, #tpu.memory_space<vmem>>, %arg4: memref<20x32xf32, #tpu.memory_space<vmem>>) attributes {dimension_semantics = [#tpu.dimension_semantics<parallel>], iteration_bounds = array<i64: 1>, scalar_prefetch = 0 : i64, scratch_operands = 0 : i64, tpu.core_type = #tpu.core_type<tc>, window_params = [{transform_indices = @transform_0, window_bounds = array<i64: 20, 32>}, {pipeline_mode = #tpu.pipeline_mode<synchronous>, transform_indices = @transform_1, window_bounds = array<i64: 1, 32>}, {pipeline_mode = #tpu.pipeline_mode<synchronous>, transform_indices = @transform_2, window_bounds = array<i64: 1, 32>}, {transform_indices = @transform_3, window_bounds = array<i64: 20, 32>}]} {
    %c0 = arith.constant 0 : index
    %c0_0 = arith.constant 0 : index
    %0 = vector.load %arg1[%c0, %c0_0] : memref<20x32xf32, #tpu.memory_space<vmem>>, vector<20x32xf32>
    %c0_1 = arith.constant 0 : index
    %c0_2 = arith.constant 0 : index
    %1 = vector.load %arg2[%c0_1, %c0_2] : memref<1x32xf32, #tpu.memory_space<vmem>>, vector<1x32xf32>
    %c0_3 = arith.constant 0 : index
    %c0_4 = arith.constant 0 : index
    %2 = vector.load %arg3[%c0_3, %c0_4] : memref<1x32xf32, #tpu.memory_space<vmem>>, vector<1x32xf32>
    %cst = arith.constant dense<0.000000e+00> : vector<20xf32>
    %3 = vector.multi_reduction <add>, %0, %cst [1] : vector<20x32xf32> to vector<20xf32>
    %4 = vector.shape_cast %3 : vector<20xf32> to vector<20x1xf32>
    %cst_5 = arith.constant 3.200000e+01 : f32
    %5 = vector.broadcast %cst_5 : f32 to vector<20x1xf32>
    %6 = arith.divf %4, %5 : vector<20x1xf32>
    %7 = vector.broadcast %6 : vector<20x1xf32> to vector<20x32xf32>
    %8 = arith.subf %0, %7 : vector<20x32xf32>
    %9 = arith.mulf %8, %8 : vector<20x32xf32>
    %cst_6 = arith.constant dense<0.000000e+00> : vector<20xf32>
    %10 = vector.multi_reduction <add>, %9, %cst_6 [1] : vector<20x32xf32> to vector<20xf32>
    %11 = vector.shape_cast %10 : vector<20xf32> to vector<20x1xf32>
    %cst_7 = arith.constant 3.200000e+01 : f32
    %12 = vector.broadcast %cst_7 : f32 to vector<20x1xf32>
    %13 = arith.divf %11, %12 : vector<20x1xf32>
    %14 = vector.broadcast %6 : vector<20x1xf32> to vector<20x32xf32>
    %15 = arith.subf %0, %14 : vector<20x32xf32>
    %cst_8 = arith.constant 9.99999974E-6 : f32
    %16 = vector.broadcast %cst_8 : f32 to vector<20x1xf32>
    %17 = arith.addf %13, %16 : vector<20x1xf32>
    %18 = math.rsqrt %17 : vector<20x1xf32>
    %19 = vector.broadcast %18 : vector<20x1xf32> to vector<20x32xf32>
    %20 = arith.mulf %15, %19 : vector<20x32xf32>
    %21 = vector.broadcast %1 : vector<1x32xf32> to vector<20x32xf32>
    %22 = arith.mulf %20, %21 : vector<20x32xf32>
    %23 = vector.broadcast %2 : vector<1x32xf32> to vector<20x32xf32>
    %24 = arith.addf %22, %23 : vector<20x32xf32>
    %c0_9 = arith.constant 0 : index
    %c0_10 = arith.constant 0 : index
    %25 = vector.load %arg4[%c0_9, %c0_10] : memref<20x32xf32, #tpu.memory_space<vmem>>, vector<20x32xf32>
    tpu.vector_store %arg4[%c0_9, %c0_10], %24 {strides = array<i32>} : memref<20x32xf32, #tpu.memory_space<vmem>>, vector<20x32xf32>,
    return
  }
  func.func @transform_0(%arg0: i32) -> (i32, i32) {
    %c0_i32 = arith.constant 0 : i32
    %c0_i32_0 = arith.constant 0 : i32
    return %arg0, %c0_i32 : i32, i32
  }
  func.func @transform_1(%arg0: i32) -> (i32, i32) {
    %c0_i32 = arith.constant 0 : i32
    %c0_i32_0 = arith.constant 0 : i32
    %c0_i32_1 = arith.constant 0 : i32
    return %c0_i32, %c0_i32_0 : i32, i32
  }
  func.func @transform_2(%arg0: i32) -> (i32, i32) {
    %c0_i32 = arith.constant 0 : i32
    %c0_i32_0 = arith.constant 0 : i32
    %c0_i32_1 = arith.constant 0 : i32
    return %c0_i32, %c0_i32_0 : i32, i32
  }
  func.func @transform_3(%arg0: i32) -> (i32, i32) {
    %c0_i32 = arith.constant 0 : i32
    %c0_i32_0 = arith.constant 0 : i32
    return %arg0, %c0_i32 : i32, i32
  }
}

module attributes {stable_mosaic.version = 11 : i64} {
  func.func @_linear_kernel(%arg0: i32, %arg1: i32, %arg2: memref<20x32xf32, #tpu.memory_space<vmem>>, %arg3: memref<32x64xf32, #tpu.memory_space<vmem>>, %arg4: memref<1x64xf32, #tpu.memory_space<vmem>>, %arg5: memref<20x64xf32, #tpu.memory_space<vmem>>) attributes {dimension_semantics = [#tpu.dimension_semantics<parallel>, #tpu.dimension_semantics<parallel>], iteration_bounds = array<i64: 1, 1>, scalar_prefetch = 0 : i64, scratch_operands = 0 : i64, tpu.core_type = #tpu.core_type<tc>, window_params = [{transform_indices = @transform_0, window_bounds = array<i64: 20, 32>}, {transform_indices = @transform_1, window_bounds = array<i64: 32, 64>}, {transform_indices = @transform_2, window_bounds = array<i64: 1, 64>}, {transform_indices = @transform_3, window_bounds = array<i64: 20, 64>}]} {
    %c0 = arith.constant 0 : index
    %c0_0 = arith.constant 0 : index
    %0 = vector.load %arg2[%c0, %c0_0] : memref<20x32xf32, #tpu.memory_space<vmem>>, vector<20x32xf32>
    %c0_1 = arith.constant 0 : index
    %c0_2 = arith.constant 0 : index
    %1 = vector.load %arg3[%c0_1, %c0_2] : memref<32x64xf32, #tpu.memory_space<vmem>>, vector<32x64xf32>
    %cst = arith.constant dense<0.000000e+00> : vector<20x64xf32>
    %2 = tpu.matmul %0, %1, %cst {dimension_numbers = #tpu.dot_dimension_numbers<[1], [0], [0], [1], [0, 0, 1, 1], [], []>} : vector<20x32xf32>, vector<32x64xf32>, vector<20x64xf32> -> vector<20x64xf32>
    %c0_3 = arith.constant 0 : index
    %c0_4 = arith.constant 0 : index
    %3 = vector.load %arg4[%c0_3, %c0_4] : memref<1x64xf32, #tpu.memory_space<vmem>>, vector<1x64xf32>
    %4 = vector.broadcast %3 : vector<1x64xf32> to vector<20x64xf32>
    %5 = arith.addf %2, %4 : vector<20x64xf32>
    %c0_5 = arith.constant 0 : index
    %c0_6 = arith.constant 0 : index
    %6 = vector.load %arg5[%c0_5, %c0_6] : memref<20x64xf32, #tpu.memory_space<vmem>>, vector<20x64xf32>
    tpu.vector_store %arg5[%c0_5, %c0_6], %5 {strides = array<i32>} : memref<20x64xf32, #tpu.memory_space<vmem>>, vector<20x64xf32>,
    return
  }
  func.func @transform_0(%arg0: i32, %arg1: i32) -> (i32, i32) {
    %c0_i32 = arith.constant 0 : i32
    %c0_i32_0 = arith.constant 0 : i32
    return %arg0, %c0_i32 : i32, i32
  }
  func.func @transform_1(%arg0: i32, %arg1: i32) -> (i32, i32) {
    %c0_i32 = arith.constant 0 : i32
    %c0_i32_0 = arith.constant 0 : i32
    return %c0_i32, %arg1 : i32, i32
  }
  func.func @transform_2(%arg0: i32, %arg1: i32) -> (i32, i32) {
    %c0_i32 = arith.constant 0 : i32
    %c0_i32_0 = arith.constant 0 : i32
    return %c0_i32, %arg1 : i32, i32
  }
  func.func @transform_3(%arg0: i32, %arg1: i32) -> (i32, i32) {
    %c0_i32 = arith.constant 0 : i32
    return %arg0, %arg1 : i32, i32
  }
}

module attributes {stable_mosaic.version = 11 : i64} {
  func.func @_linear_kernel(%arg0: i32, %arg1: i32, %arg2: memref<16x32xf32, #tpu.memory_space<vmem>>, %arg3: memref<32x96xf32, #tpu.memory_space<vmem>>, %arg4: memref<1x96xf32, #tpu.memory_space<vmem>>, %arg5: memref<16x96xf32, #tpu.memory_space<vmem>>) attributes {dimension_semantics = [#tpu.dimension_semantics<parallel>, #tpu.dimension_semantics<parallel>], iteration_bounds = array<i64: 1, 1>, scalar_prefetch = 0 : i64, scratch_operands = 0 : i64, tpu.core_type = #tpu.core_type<tc>, window_params = [{transform_indices = @transform_0, window_bounds = array<i64: 16, 32>}, {transform_indices = @transform_1, window_bounds = array<i64: 32, 96>}, {transform_indices = @transform_2, window_bounds = array<i64: 1, 96>}, {transform_indices = @transform_3, window_bounds = array<i64: 16, 96>}]} {
    %c0 = arith.constant 0 : index
    %c0_0 = arith.constant 0 : index
    %0 = vector.load %arg2[%c0, %c0_0] : memref<16x32xf32, #tpu.memory_space<vmem>>, vector<16x32xf32>
    %c0_1 = arith.constant 0 : index
    %c0_2 = arith.constant 0 : index
    %1 = vector.load %arg3[%c0_1, %c0_2] : memref<32x96xf32, #tpu.memory_space<vmem>>, vector<32x96xf32>
    %cst = arith.constant dense<0.000000e+00> : vector<16x96xf32>
    %2 = tpu.matmul %0, %1, %cst {dimension_numbers = #tpu.dot_dimension_numbers<[1], [0], [0], [1], [0, 0, 1, 1], [], []>} : vector<16x32xf32>, vector<32x96xf32>, vector<16x96xf32> -> vector<16x96xf32>
    %c0_3 = arith.constant 0 : index
    %c0_4 = arith.constant 0 : index
    %3 = vector.load %arg4[%c0_3, %c0_4] : memref<1x96xf32, #tpu.memory_space<vmem>>, vector<1x96xf32>
    %4 = vector.broadcast %3 : vector<1x96xf32> to vector<16x96xf32>
    %5 = arith.addf %2, %4 : vector<16x96xf32>
    %c0_5 = arith.constant 0 : index
    %c0_6 = arith.constant 0 : index
    %6 = vector.load %arg5[%c0_5, %c0_6] : memref<16x96xf32, #tpu.memory_space<vmem>>, vector<16x96xf32>
    tpu.vector_store %arg5[%c0_5, %c0_6], %5 {strides = array<i32>} : memref<16x96xf32, #tpu.memory_space<vmem>>, vector<16x96xf32>,
    return
  }
  func.func @transform_0(%arg0: i32, %arg1: i32) -> (i32, i32) {
    %c0_i32 = arith.constant 0 : i32
    %c0_i32_0 = arith.constant 0 : i32
    return %arg0, %c0_i32 : i32, i32
  }
  func.func @transform_1(%arg0: i32, %arg1: i32) -> (i32, i32) {
    %c0_i32 = arith.constant 0 : i32
    %c0_i32_0 = arith.constant 0 : i32
    return %c0_i32, %arg1 : i32, i32
  }
  func.func @transform_2(%arg0: i32, %arg1: i32) -> (i32, i32) {
    %c0_i32 = arith.constant 0 : i32
    %c0_i32_0 = arith.constant 0 : i32
    return %c0_i32, %arg1 : i32, i32
  }
  func.func @transform_3(%arg0: i32, %arg1: i32) -> (i32, i32) {
    %c0_i32 = arith.constant 0 : i32
    return %arg0, %arg1 : i32, i32
  }
}

module attributes {stable_mosaic.version = 11 : i64} {
  func.func @_proj_add_ln_kernel(%arg0: i32, %arg1: memref<16x32xf32, #tpu.memory_space<vmem>>, %arg2: memref<32x32xf32, #tpu.memory_space<vmem>>, %arg3: memref<1x32xf32, #tpu.memory_space<vmem>>, %arg4: memref<16x32xf32, #tpu.memory_space<vmem>>, %arg5: memref<1x32xf32, #tpu.memory_space<vmem>>, %arg6: memref<1x32xf32, #tpu.memory_space<vmem>>, %arg7: memref<16x32xf32, #tpu.memory_space<vmem>>) attributes {dimension_semantics = [#tpu.dimension_semantics<parallel>], iteration_bounds = array<i64: 1>, scalar_prefetch = 0 : i64, scratch_operands = 0 : i64, tpu.core_type = #tpu.core_type<tc>, window_params = [{transform_indices = @transform_0, window_bounds = array<i64: 16, 32>}, {pipeline_mode = #tpu.pipeline_mode<synchronous>, transform_indices = @transform_1, window_bounds = array<i64: 32, 32>}, {pipeline_mode = #tpu.pipeline_mode<synchronous>, transform_indices = @transform_2, window_bounds = array<i64: 1, 32>}, {transform_indices = @transform_3, window_bounds = array<i64: 16, 32>}, {pipeline_mode = #tpu.pipeline_mode<synchronous>, transform_indices = @transform_4, window_bounds = array<i64: 1, 32>}, {pipeline_mode = #tpu.pipeline_mode<synchronous>, transform_indices = @transform_5, window_bounds = array<i64: 1, 32>}, {transform_indices = @transform_6, window_bounds = array<i64: 16, 32>}]} {
    %c0 = arith.constant 0 : index
    %c0_0 = arith.constant 0 : index
    %0 = vector.load %arg1[%c0, %c0_0] : memref<16x32xf32, #tpu.memory_space<vmem>>, vector<16x32xf32>
    %c0_1 = arith.constant 0 : index
    %c0_2 = arith.constant 0 : index
    %1 = vector.load %arg2[%c0_1, %c0_2] : memref<32x32xf32, #tpu.memory_space<vmem>>, vector<32x32xf32>
    %cst = arith.constant dense<0.000000e+00> : vector<16x32xf32>
    %2 = tpu.matmul %0, %1, %cst {dimension_numbers = #tpu.dot_dimension_numbers<[1], [0], [0], [1], [0, 0, 1, 1], [], []>} : vector<16x32xf32>, vector<32x32xf32>, vector<16x32xf32> -> vector<16x32xf32>
    %c0_3 = arith.constant 0 : index
    %c0_4 = arith.constant 0 : index
    %3 = vector.load %arg3[%c0_3, %c0_4] : memref<1x32xf32, #tpu.memory_space<vmem>>, vector<1x32xf32>
    %4 = vector.broadcast %3 : vector<1x32xf32> to vector<16x32xf32>
    %5 = arith.addf %2, %4 : vector<16x32xf32>
    %c0_5 = arith.constant 0 : index
    %c0_6 = arith.constant 0 : index
    %6 = vector.load %arg4[%c0_5, %c0_6] : memref<16x32xf32, #tpu.memory_space<vmem>>, vector<16x32xf32>
    %7 = arith.addf %5, %6 : vector<16x32xf32>
    %c0_7 = arith.constant 0 : index
    %c0_8 = arith.constant 0 : index
    %8 = vector.load %arg5[%c0_7, %c0_8] : memref<1x32xf32, #tpu.memory_space<vmem>>, vector<1x32xf32>
    %c0_9 = arith.constant 0 : index
    %c0_10 = arith.constant 0 : index
    %9 = vector.load %arg6[%c0_9, %c0_10] : memref<1x32xf32, #tpu.memory_space<vmem>>, vector<1x32xf32>
    %cst_11 = arith.constant dense<0.000000e+00> : vector<16xf32>
    %10 = vector.multi_reduction <add>, %7, %cst_11 [1] : vector<16x32xf32> to vector<16xf32>
    %11 = vector.shape_cast %10 : vector<16xf32> to vector<16x1xf32>
    %cst_12 = arith.constant 3.200000e+01 : f32
    %12 = vector.broadcast %cst_12 : f32 to vector<16x1xf32>
    %13 = arith.divf %11, %12 : vector<16x1xf32>
    %14 = vector.broadcast %13 : vector<16x1xf32> to vector<16x32xf32>
    %15 = arith.subf %7, %14 : vector<16x32xf32>
    %16 = arith.mulf %15, %15 : vector<16x32xf32>
    %cst_13 = arith.constant dense<0.000000e+00> : vector<16xf32>
    %17 = vector.multi_reduction <add>, %16, %cst_13 [1] : vector<16x32xf32> to vector<16xf32>
    %18 = vector.shape_cast %17 : vector<16xf32> to vector<16x1xf32>
    %cst_14 = arith.constant 3.200000e+01 : f32
    %19 = vector.broadcast %cst_14 : f32 to vector<16x1xf32>
    %20 = arith.divf %18, %19 : vector<16x1xf32>
    %21 = vector.broadcast %13 : vector<16x1xf32> to vector<16x32xf32>
    %22 = arith.subf %7, %21 : vector<16x32xf32>
    %cst_15 = arith.constant 9.99999974E-6 : f32
    %23 = vector.broadcast %cst_15 : f32 to vector<16x1xf32>
    %24 = arith.addf %20, %23 : vector<16x1xf32>
    %25 = math.rsqrt %24 : vector<16x1xf32>
    %26 = vector.broadcast %25 : vector<16x1xf32> to vector<16x32xf32>
    %27 = arith.mulf %22, %26 : vector<16x32xf32>
    %28 = vector.broadcast %8 : vector<1x32xf32> to vector<16x32xf32>
    %29 = arith.mulf %27, %28 : vector<16x32xf32>
    %30 = vector.broadcast %9 : vector<1x32xf32> to vector<16x32xf32>
    %31 = arith.addf %29, %30 : vector<16x32xf32>
    %c0_16 = arith.constant 0 : index
    %c0_17 = arith.constant 0 : index
    %32 = vector.load %arg7[%c0_16, %c0_17] : memref<16x32xf32, #tpu.memory_space<vmem>>, vector<16x32xf32>
    tpu.vector_store %arg7[%c0_16, %c0_17], %31 {strides = array<i32>} : memref<16x32xf32, #tpu.memory_space<vmem>>, vector<16x32xf32>,
    return
  }
  func.func @transform_0(%arg0: i32) -> (i32, i32) {
    %c0_i32 = arith.constant 0 : i32
    %c0_i32_0 = arith.constant 0 : i32
    return %arg0, %c0_i32 : i32, i32
  }
  func.func @transform_1(%arg0: i32) -> (i32, i32) {
    %c0_i32 = arith.constant 0 : i32
    %c0_i32_0 = arith.constant 0 : i32
    %c0_i32_1 = arith.constant 0 : i32
    return %c0_i32, %c0_i32_0 : i32, i32
  }
  func.func @transform_2(%arg0: i32) -> (i32, i32) {
    %c0_i32 = arith.constant 0 : i32
    %c0_i32_0 = arith.constant 0 : i32
    %c0_i32_1 = arith.constant 0 : i32
    return %c0_i32, %c0_i32_0 : i32, i32
  }
  func.func @transform_3(%arg0: i32) -> (i32, i32) {
    %c0_i32 = arith.constant 0 : i32
    %c0_i32_0 = arith.constant 0 : i32
    return %arg0, %c0_i32 : i32, i32
  }
  func.func @transform_4(%arg0: i32) -> (i32, i32) {
    %c0_i32 = arith.constant 0 : i32
    %c0_i32_0 = arith.constant 0 : i32
    %c0_i32_1 = arith.constant 0 : i32
    return %c0_i32, %c0_i32_0 : i32, i32
  }
  func.func @transform_5(%arg0: i32) -> (i32, i32) {
    %c0_i32 = arith.constant 0 : i32
    %c0_i32_0 = arith.constant 0 : i32
    %c0_i32_1 = arith.constant 0 : i32
    return %c0_i32, %c0_i32_0 : i32, i32
  }
  func.func @transform_6(%arg0: i32) -> (i32, i32) {
    %c0_i32 = arith.constant 0 : i32
    %c0_i32_0 = arith.constant 0 : i32
    return %arg0, %c0_i32 : i32, i32
  }
}

module attributes {stable_mosaic.version = 11 : i64} {
  func.func @_attn_kernel(%arg0: i32, %arg1: memref<1x4x8x8xf32, #tpu.memory_space<vmem>>, %arg2: memref<1x4x8x8xf32, #tpu.memory_space<vmem>>, %arg3: memref<1x4x8x8xf32, #tpu.memory_space<vmem>>, %arg4: memref<1x8x8xf32, #tpu.memory_space<vmem>>, %arg5: memref<1x4x8x8xf32, #tpu.memory_space<vmem>>) attributes {dimension_semantics = [#tpu.dimension_semantics<parallel>], iteration_bounds = array<i64: 2>, scalar_prefetch = 0 : i64, scratch_operands = 0 : i64, tpu.core_type = #tpu.core_type<tc>, window_params = [{transform_indices = @transform_0, window_bounds = array<i64: 1, 4, 8, 8>}, {transform_indices = @transform_1, window_bounds = array<i64: 1, 4, 8, 8>}, {transform_indices = @transform_2, window_bounds = array<i64: 1, 4, 8, 8>}, {transform_indices = @transform_3, window_bounds = array<i64: 1, 8, 8>}, {transform_indices = @transform_4, window_bounds = array<i64: 1, 4, 8, 8>}]} {
    %c0 = arith.constant 0 : index
    %c0_0 = arith.constant 0 : index
    %c0_1 = arith.constant 0 : index
    %c0_2 = arith.constant 0 : index
    %0 = vector.load %arg1[%c0, %c0_0, %c0_1, %c0_2] : memref<1x4x8x8xf32, #tpu.memory_space<vmem>>, vector<1x4x8x8xf32>
    %1 = vector.shape_cast %0 : vector<1x4x8x8xf32> to vector<4x8x8xf32>
    %c0_3 = arith.constant 0 : index
    %c0_4 = arith.constant 0 : index
    %c0_5 = arith.constant 0 : index
    %c0_6 = arith.constant 0 : index
    %2 = vector.load %arg2[%c0_3, %c0_4, %c0_5, %c0_6] : memref<1x4x8x8xf32, #tpu.memory_space<vmem>>, vector<1x4x8x8xf32>
    %3 = vector.shape_cast %2 : vector<1x4x8x8xf32> to vector<4x8x8xf32>
    %c0_7 = arith.constant 0 : index
    %c0_8 = arith.constant 0 : index
    %c0_9 = arith.constant 0 : index
    %c0_10 = arith.constant 0 : index
    %4 = vector.load %arg3[%c0_7, %c0_8, %c0_9, %c0_10] : memref<1x4x8x8xf32, #tpu.memory_space<vmem>>, vector<1x4x8x8xf32>
    %5 = vector.shape_cast %4 : vector<1x4x8x8xf32> to vector<4x8x8xf32>
    %c0_11 = arith.constant 0 : index
    %c0_12 = arith.constant 0 : index
    %c0_13 = arith.constant 0 : index
    %6 = vector.load %arg4[%c0_11, %c0_12, %c0_13] : memref<1x8x8xf32, #tpu.memory_space<vmem>>, vector<1x8x8xf32>
    %7 = vector.shape_cast %6 : vector<1x8x8xf32> to vector<8x8xf32>
    "tpu.trace_start"() <{level = 10 : i32, message = "hqd,hkd->hqk"}> : () -> ()
    %cst = arith.constant dense<0.000000e+00> : vector<4x8x8xf32>
    %8 = tpu.matmul %1, %3, %cst {dimension_numbers = #tpu.dot_dimension_numbers<[2], [2], [1], [1], [0, 0, 0, 1, 1, 1], [0], [0]>} : vector<4x8x8xf32>, vector<4x8x8xf32>, vector<4x8x8xf32> -> vector<4x8x8xf32>
    "tpu.trace_stop"() : () -> ()
    %cst_14 = arith.constant 0.353553385 : f32
    %9 = vector.broadcast %cst_14 : f32 to vector<4x8x8xf32>
    %10 = arith.mulf %8, %9 : vector<4x8x8xf32>
    %11 = vector.shape_cast %7 : vector<8x8xf32> to vector<1x8x8xf32>
    %12 = vector.broadcast %11 : vector<1x8x8xf32> to vector<4x8x8xf32>
    %13 = arith.addf %10, %12 : vector<4x8x8xf32>
    %cst_15 = arith.constant dense<0xFF800000> : vector<4x8xf32>
    %14 = vector.multi_reduction <maximumf>, %13, %cst_15 [2] : vector<4x8x8xf32> to vector<4x8xf32>
    %15 = vector.shape_cast %14 : vector<4x8xf32> to vector<4x8x1xf32>
    %16 = vector.broadcast %15 : vector<4x8x1xf32> to vector<4x8x8xf32>
    %17 = arith.subf %13, %16 : vector<4x8x8xf32>
    %18 = math.exp %17 : vector<4x8x8xf32>
    %cst_16 = arith.constant dense<0.000000e+00> : vector<4x8xf32>
    %19 = vector.multi_reduction <add>, %18, %cst_16 [2] : vector<4x8x8xf32> to vector<4x8xf32>
    %20 = vector.shape_cast %19 : vector<4x8xf32> to vector<4x8x1xf32>
    %21 = tpu.reciprocal %20 {approx = true} : vector<4x8x1xf32> -> vector<4x8x1xf32>
    %22 = vector.broadcast %21 : vector<4x8x1xf32> to vector<4x8x8xf32>
    %23 = arith.mulf %18, %22 : vector<4x8x8xf32>
    "tpu.trace_start"() <{level = 10 : i32, message = "hqk,hkd->hqd"}> : () -> ()
    %cst_17 = arith.constant dense<0.000000e+00> : vector<4x8x8xf32>
    %24 = tpu.matmul %23, %5, %cst_17 {dimension_numbers = #tpu.dot_dimension_numbers<[2], [1], [1], [2], [0, 0, 0, 1, 1, 2], [0], [0]>} : vector<4x8x8xf32>, vector<4x8x8xf32>, vector<4x8x8xf32> -> vector<4x8x8xf32>
    "tpu.trace_stop"() : () -> ()
    %c0_18 = arith.constant 0 : index
    %c0_19 = arith.constant 0 : index
    %c0_20 = arith.constant 0 : index
    %c0_21 = arith.constant 0 : index
    %25 = vector.load %arg5[%c0_18, %c0_19, %c0_20, %c0_21] : memref<1x4x8x8xf32, #tpu.memory_space<vmem>>, vector<1x4x8x8xf32>
    %26 = vector.shape_cast %25 : vector<1x4x8x8xf32> to vector<4x8x8xf32>
    %27 = vector.shape_cast %24 : vector<4x8x8xf32> to vector<1x4x8x8xf32>
    tpu.vector_store %arg5[%c0_18, %c0_19, %c0_20, %c0_21], %27 {strides = array<i32>} : memref<1x4x8x8xf32, #tpu.memory_space<vmem>>, vector<1x4x8x8xf32>,
    return
  }
  func.func @transform_0(%arg0: i32) -> (i32, i32, i32, i32) {
    %c0_i32 = arith.constant 0 : i32
    %c0_i32_0 = arith.constant 0 : i32
    %c0_i32_1 = arith.constant 0 : i32
    %c0_i32_2 = arith.constant 0 : i32
    return %arg0, %c0_i32, %c0_i32_0, %c0_i32_1 : i32, i32, i32, i32
  }
  func.func @transform_1(%arg0: i32) -> (i32, i32, i32, i32) {
    %c0_i32 = arith.constant 0 : i32
    %c0_i32_0 = arith.constant 0 : i32
    %c0_i32_1 = arith.constant 0 : i32
    %c0_i32_2 = arith.constant 0 : i32
    return %arg0, %c0_i32, %c0_i32_0, %c0_i32_1 : i32, i32, i32, i32
  }
  func.func @transform_2(%arg0: i32) -> (i32, i32, i32, i32) {
    %c0_i32 = arith.constant 0 : i32
    %c0_i32_0 = arith.constant 0 : i32
    %c0_i32_1 = arith.constant 0 : i32
    %c0_i32_2 = arith.constant 0 : i32
    return %arg0, %c0_i32, %c0_i32_0, %c0_i32_1 : i32, i32, i32, i32
  }
  func.func @transform_3(%arg0: i32) -> (i32, i32, i32) {
    %c0_i32 = arith.constant 0 : i32
    %c0_i32_0 = arith.constant 0 : i32
    %c0_i32_1 = arith.constant 0 : i32
    return %arg0, %c0_i32, %c0_i32_0 : i32, i32, i32
  }
  func.func @transform_4(%arg0: i32) -> (i32, i32, i32, i32) {
    %c0_i32 = arith.constant 0 : i32
    %c0_i32_0 = arith.constant 0 : i32
    %c0_i32_1 = arith.constant 0 : i32
    %c0_i32_2 = arith.constant 0 : i32
    return %arg0, %c0_i32, %c0_i32_0, %c0_i32_1 : i32, i32, i32, i32
  }
}

module attributes {stable_mosaic.version = 11 : i64} {
  func.func @_linear_kernel(%arg0: i32, %arg1: i32, %arg2: memref<16x32xf32, #tpu.memory_space<vmem>>, %arg3: memref<32x32xf32, #tpu.memory_space<vmem>>, %arg4: memref<1x32xf32, #tpu.memory_space<vmem>>, %arg5: memref<16x32xf32, #tpu.memory_space<vmem>>) attributes {dimension_semantics = [#tpu.dimension_semantics<parallel>, #tpu.dimension_semantics<parallel>], iteration_bounds = array<i64: 1, 1>, scalar_prefetch = 0 : i64, scratch_operands = 0 : i64, tpu.core_type = #tpu.core_type<tc>, window_params = [{transform_indices = @transform_0, window_bounds = array<i64: 16, 32>}, {transform_indices = @transform_1, window_bounds = array<i64: 32, 32>}, {transform_indices = @transform_2, window_bounds = array<i64: 1, 32>}, {transform_indices = @transform_3, window_bounds = array<i64: 16, 32>}]} {
    %c0 = arith.constant 0 : index
    %c0_0 = arith.constant 0 : index
    %0 = vector.load %arg2[%c0, %c0_0] : memref<16x32xf32, #tpu.memory_space<vmem>>, vector<16x32xf32>
    %c0_1 = arith.constant 0 : index
    %c0_2 = arith.constant 0 : index
    %1 = vector.load %arg3[%c0_1, %c0_2] : memref<32x32xf32, #tpu.memory_space<vmem>>, vector<32x32xf32>
    %cst = arith.constant dense<0.000000e+00> : vector<16x32xf32>
    %2 = tpu.matmul %0, %1, %cst {dimension_numbers = #tpu.dot_dimension_numbers<[1], [0], [0], [1], [0, 0, 1, 1], [], []>} : vector<16x32xf32>, vector<32x32xf32>, vector<16x32xf32> -> vector<16x32xf32>
    %c0_3 = arith.constant 0 : index
    %c0_4 = arith.constant 0 : index
    %3 = vector.load %arg4[%c0_3, %c0_4] : memref<1x32xf32, #tpu.memory_space<vmem>>, vector<1x32xf32>
    %4 = vector.broadcast %3 : vector<1x32xf32> to vector<16x32xf32>
    %5 = arith.addf %2, %4 : vector<16x32xf32>
    %c0_5 = arith.constant 0 : index
    %c0_6 = arith.constant 0 : index
    %6 = vector.load %arg5[%c0_5, %c0_6] : memref<16x32xf32, #tpu.memory_space<vmem>>, vector<16x32xf32>
    tpu.vector_store %arg5[%c0_5, %c0_6], %5 {strides = array<i32>} : memref<16x32xf32, #tpu.memory_space<vmem>>, vector<16x32xf32>,
    return
  }
  func.func @transform_0(%arg0: i32, %arg1: i32) -> (i32, i32) {
    %c0_i32 = arith.constant 0 : i32
    %c0_i32_0 = arith.constant 0 : i32
    return %arg0, %c0_i32 : i32, i32
  }
  func.func @transform_1(%arg0: i32, %arg1: i32) -> (i32, i32) {
    %c0_i32 = arith.constant 0 : i32
    %c0_i32_0 = arith.constant 0 : i32
    return %c0_i32, %arg1 : i32, i32
  }
  func.func @transform_2(%arg0: i32, %arg1: i32) -> (i32, i32) {
    %c0_i32 = arith.constant 0 : i32
    %c0_i32_0 = arith.constant 0 : i32
    return %c0_i32, %arg1 : i32, i32
  }
  func.func @transform_3(%arg0: i32, %arg1: i32) -> (i32, i32) {
    %c0_i32 = arith.constant 0 : i32
    return %arg0, %arg1 : i32, i32
  }
}

module attributes {stable_mosaic.version = 11 : i64} {
  func.func @_attn_kernel(%arg0: i32, %arg1: memref<1x4x8x8xf32, #tpu.memory_space<vmem>>, %arg2: memref<1x4x10x8xf32, #tpu.memory_space<vmem>>, %arg3: memref<1x4x10x8xf32, #tpu.memory_space<vmem>>, %arg4: memref<1x8x10xf32, #tpu.memory_space<vmem>>, %arg5: memref<1x4x8x8xf32, #tpu.memory_space<vmem>>) attributes {dimension_semantics = [#tpu.dimension_semantics<parallel>], iteration_bounds = array<i64: 2>, scalar_prefetch = 0 : i64, scratch_operands = 0 : i64, tpu.core_type = #tpu.core_type<tc>, window_params = [{transform_indices = @transform_0, window_bounds = array<i64: 1, 4, 8, 8>}, {transform_indices = @transform_1, window_bounds = array<i64: 1, 4, 10, 8>}, {transform_indices = @transform_2, window_bounds = array<i64: 1, 4, 10, 8>}, {transform_indices = @transform_3, window_bounds = array<i64: 1, 8, 10>}, {transform_indices = @transform_4, window_bounds = array<i64: 1, 4, 8, 8>}]} {
    %c0 = arith.constant 0 : index
    %c0_0 = arith.constant 0 : index
    %c0_1 = arith.constant 0 : index
    %c0_2 = arith.constant 0 : index
    %0 = vector.load %arg1[%c0, %c0_0, %c0_1, %c0_2] : memref<1x4x8x8xf32, #tpu.memory_space<vmem>>, vector<1x4x8x8xf32>
    %1 = vector.shape_cast %0 : vector<1x4x8x8xf32> to vector<4x8x8xf32>
    %c0_3 = arith.constant 0 : index
    %c0_4 = arith.constant 0 : index
    %c0_5 = arith.constant 0 : index
    %c0_6 = arith.constant 0 : index
    %2 = vector.load %arg2[%c0_3, %c0_4, %c0_5, %c0_6] : memref<1x4x10x8xf32, #tpu.memory_space<vmem>>, vector<1x4x10x8xf32>
    %3 = vector.shape_cast %2 : vector<1x4x10x8xf32> to vector<4x10x8xf32>
    %c0_7 = arith.constant 0 : index
    %c0_8 = arith.constant 0 : index
    %c0_9 = arith.constant 0 : index
    %c0_10 = arith.constant 0 : index
    %4 = vector.load %arg3[%c0_7, %c0_8, %c0_9, %c0_10] : memref<1x4x10x8xf32, #tpu.memory_space<vmem>>, vector<1x4x10x8xf32>
    %5 = vector.shape_cast %4 : vector<1x4x10x8xf32> to vector<4x10x8xf32>
    %c0_11 = arith.constant 0 : index
    %c0_12 = arith.constant 0 : index
    %c0_13 = arith.constant 0 : index
    %6 = vector.load %arg4[%c0_11, %c0_12, %c0_13] : memref<1x8x10xf32, #tpu.memory_space<vmem>>, vector<1x8x10xf32>
    %7 = vector.shape_cast %6 : vector<1x8x10xf32> to vector<8x10xf32>
    "tpu.trace_start"() <{level = 10 : i32, message = "hqd,hkd->hqk"}> : () -> ()
    %cst = arith.constant dense<0.000000e+00> : vector<4x8x10xf32>
    %8 = tpu.matmul %1, %3, %cst {dimension_numbers = #tpu.dot_dimension_numbers<[2], [2], [1], [1], [0, 0, 0, 1, 1, 1], [0], [0]>} : vector<4x8x8xf32>, vector<4x10x8xf32>, vector<4x8x10xf32> -> vector<4x8x10xf32>
    "tpu.trace_stop"() : () -> ()
    %cst_14 = arith.constant 0.353553385 : f32
    %9 = vector.broadcast %cst_14 : f32 to vector<4x8x10xf32>
    %10 = arith.mulf %8, %9 : vector<4x8x10xf32>
    %11 = vector.shape_cast %7 : vector<8x10xf32> to vector<1x8x10xf32>
    %12 = vector.broadcast %11 : vector<1x8x10xf32> to vector<4x8x10xf32>
    %13 = arith.addf %10, %12 : vector<4x8x10xf32>
    %cst_15 = arith.constant dense<0xFF800000> : vector<4x8xf32>
    %14 = vector.multi_reduction <maximumf>, %13, %cst_15 [2] : vector<4x8x10xf32> to vector<4x8xf32>
    %15 = vector.shape_cast %14 : vector<4x8xf32> to vector<4x8x1xf32>
    %16 = vector.broadcast %15 : vector<4x8x1xf32> to vector<4x8x10xf32>
    %17 = arith.subf %13, %16 : vector<4x8x10xf32>
    %18 = math.exp %17 : vector<4x8x10xf32>
    %cst_16 = arith.constant dense<0.000000e+00> : vector<4x8xf32>
    %19 = vector.multi_reduction <add>, %18, %cst_16 [2] : vector<4x8x10xf32> to vector<4x8xf32>
    %20 = vector.shape_cast %19 : vector<4x8xf32> to vector<4x8x1xf32>
    %21 = tpu.reciprocal %20 {approx = true} : vector<4x8x1xf32> -> vector<4x8x1xf32>
    %22 = vector.broadcast %21 : vector<4x8x1xf32> to vector<4x8x10xf32>
    %23 = arith.mulf %18, %22 : vector<4x8x10xf32>
    "tpu.trace_start"() <{level = 10 : i32, message = "hqk,hkd->hqd"}> : () -> ()
    %cst_17 = arith.constant dense<0.000000e+00> : vector<4x8x8xf32>
    %24 = tpu.matmul %23, %5, %cst_17 {dimension_numbers = #tpu.dot_dimension_numbers<[2], [1], [1], [2], [0, 0, 0, 1, 1, 2], [0], [0]>} : vector<4x8x10xf32>, vector<4x10x8xf32>, vector<4x8x8xf32> -> vector<4x8x8xf32>
    "tpu.trace_stop"() : () -> ()
    %c0_18 = arith.constant 0 : index
    %c0_19 = arith.constant 0 : index
    %c0_20 = arith.constant 0 : index
    %c0_21 = arith.constant 0 : index
    %25 = vector.load %arg5[%c0_18, %c0_19, %c0_20, %c0_21] : memref<1x4x8x8xf32, #tpu.memory_space<vmem>>, vector<1x4x8x8xf32>
    %26 = vector.shape_cast %25 : vector<1x4x8x8xf32> to vector<4x8x8xf32>
    %27 = vector.shape_cast %24 : vector<4x8x8xf32> to vector<1x4x8x8xf32>
    tpu.vector_store %arg5[%c0_18, %c0_19, %c0_20, %c0_21], %27 {strides = array<i32>} : memref<1x4x8x8xf32, #tpu.memory_space<vmem>>, vector<1x4x8x8xf32>,
    return
  }
  func.func @transform_0(%arg0: i32) -> (i32, i32, i32, i32) {
    %c0_i32 = arith.constant 0 : i32
    %c0_i32_0 = arith.constant 0 : i32
    %c0_i32_1 = arith.constant 0 : i32
    %c0_i32_2 = arith.constant 0 : i32
    return %arg0, %c0_i32, %c0_i32_0, %c0_i32_1 : i32, i32, i32, i32
  }
  func.func @transform_1(%arg0: i32) -> (i32, i32, i32, i32) {
    %c0_i32 = arith.constant 0 : i32
    %c0_i32_0 = arith.constant 0 : i32
    %c0_i32_1 = arith.constant 0 : i32
    %c0_i32_2 = arith.constant 0 : i32
    return %arg0, %c0_i32, %c0_i32_0, %c0_i32_1 : i32, i32, i32, i32
  }
  func.func @transform_2(%arg0: i32) -> (i32, i32, i32, i32) {
    %c0_i32 = arith.constant 0 : i32
    %c0_i32_0 = arith.constant 0 : i32
    %c0_i32_1 = arith.constant 0 : i32
    %c0_i32_2 = arith.constant 0 : i32
    return %arg0, %c0_i32, %c0_i32_0, %c0_i32_1 : i32, i32, i32, i32
  }
  func.func @transform_3(%arg0: i32) -> (i32, i32, i32) {
    %c0_i32 = arith.constant 0 : i32
    %c0_i32_0 = arith.constant 0 : i32
    %c0_i32_1 = arith.constant 0 : i32
    return %arg0, %c0_i32, %c0_i32_0 : i32, i32, i32
  }
  func.func @transform_4(%arg0: i32) -> (i32, i32, i32, i32) {
    %c0_i32 = arith.constant 0 : i32
    %c0_i32_0 = arith.constant 0 : i32
    %c0_i32_1 = arith.constant 0 : i32
    %c0_i32_2 = arith.constant 0 : i32
    return %arg0, %c0_i32, %c0_i32_0, %c0_i32_1 : i32, i32, i32, i32
  }
}

module attributes {stable_mosaic.version = 11 : i64} {
  func.func @_ffn_add_ln_kernel(%arg0: i32, %arg1: memref<16x32xf32, #tpu.memory_space<vmem>>, %arg2: memref<32x64xf32, #tpu.memory_space<vmem>>, %arg3: memref<1x64xf32, #tpu.memory_space<vmem>>, %arg4: memref<64x32xf32, #tpu.memory_space<vmem>>, %arg5: memref<1x32xf32, #tpu.memory_space<vmem>>, %arg6: memref<1x32xf32, #tpu.memory_space<vmem>>, %arg7: memref<1x32xf32, #tpu.memory_space<vmem>>, %arg8: memref<16x32xf32, #tpu.memory_space<vmem>>) attributes {dimension_semantics = [#tpu.dimension_semantics<parallel>], iteration_bounds = array<i64: 1>, scalar_prefetch = 0 : i64, scratch_operands = 0 : i64, tpu.core_type = #tpu.core_type<tc>, window_params = [{transform_indices = @transform_0, window_bounds = array<i64: 16, 32>}, {pipeline_mode = #tpu.pipeline_mode<synchronous>, transform_indices = @transform_1, window_bounds = array<i64: 32, 64>}, {pipeline_mode = #tpu.pipeline_mode<synchronous>, transform_indices = @transform_2, window_bounds = array<i64: 1, 64>}, {pipeline_mode = #tpu.pipeline_mode<synchronous>, transform_indices = @transform_3, window_bounds = array<i64: 64, 32>}, {pipeline_mode = #tpu.pipeline_mode<synchronous>, transform_indices = @transform_4, window_bounds = array<i64: 1, 32>}, {pipeline_mode = #tpu.pipeline_mode<synchronous>, transform_indices = @transform_5, window_bounds = array<i64: 1, 32>}, {pipeline_mode = #tpu.pipeline_mode<synchronous>, transform_indices = @transform_6, window_bounds = array<i64: 1, 32>}, {transform_indices = @transform_7, window_bounds = array<i64: 16, 32>}]} {
    %c0 = arith.constant 0 : index
    %c0_0 = arith.constant 0 : index
    %0 = vector.load %arg1[%c0, %c0_0] : memref<16x32xf32, #tpu.memory_space<vmem>>, vector<16x32xf32>
    %c0_1 = arith.constant 0 : index
    %c0_2 = arith.constant 0 : index
    %1 = vector.load %arg2[%c0_1, %c0_2] : memref<32x64xf32, #tpu.memory_space<vmem>>, vector<32x64xf32>
    %cst = arith.constant dense<0.000000e+00> : vector<16x64xf32>
    %2 = tpu.matmul %0, %1, %cst {dimension_numbers = #tpu.dot_dimension_numbers<[1], [0], [0], [1], [0, 0, 1, 1], [], []>} : vector<16x32xf32>, vector<32x64xf32>, vector<16x64xf32> -> vector<16x64xf32>
    %c0_3 = arith.constant 0 : index
    %c0_4 = arith.constant 0 : index
    %3 = vector.load %arg3[%c0_3, %c0_4] : memref<1x64xf32, #tpu.memory_space<vmem>>, vector<1x64xf32>
    %4 = vector.broadcast %3 : vector<1x64xf32> to vector<16x64xf32>
    %5 = arith.addf %2, %4 : vector<16x64xf32>
    %cst_5 = arith.constant 0.000000e+00 : f32
    %6 = vector.broadcast %cst_5 : f32 to vector<16x64xf32>
    %7 = arith.maximumf %5, %6 : vector<16x64xf32>
    %c0_6 = arith.constant 0 : index
    %c0_7 = arith.constant 0 : index
    %8 = vector.load %arg4[%c0_6, %c0_7] : memref<64x32xf32, #tpu.memory_space<vmem>>, vector<64x32xf32>
    %cst_8 = arith.constant dense<0.000000e+00> : vector<16x32xf32>
    %9 = tpu.matmul %7, %8, %cst_8 {dimension_numbers = #tpu.dot_dimension_numbers<[1], [0], [0], [1], [0, 0, 1, 1], [], []>} : vector<16x64xf32>, vector<64x32xf32>, vector<16x32xf32> -> vector<16x32xf32>
    %10 = arith.addf %0, %9 : vector<16x32xf32>
    %c0_9 = arith.constant 0 : index
    %c0_10 = arith.constant 0 : index
    %11 = vector.load %arg5[%c0_9, %c0_10] : memref<1x32xf32, #tpu.memory_space<vmem>>, vector<1x32xf32>
    %12 = vector.broadcast %11 : vector<1x32xf32> to vector<16x32xf32>
    %13 = arith.addf %10, %12 : vector<16x32xf32>
    %c0_11 = arith.constant 0 : index
    %c0_12 = arith.constant 0 : index
    %14 = vector.load %arg6[%c0_11, %c0_12] : memref<1x32xf32, #tpu.memory_space<vmem>>, vector<1x32xf32>
    %c0_13 = arith.constant 0 : index
    %c0_14 = arith.constant 0 : index
    %15 = vector.load %arg7[%c0_13, %c0_14] : memref<1x32xf32, #tpu.memory_space<vmem>>, vector<1x32xf32>
    %cst_15 = arith.constant dense<0.000000e+00> : vector<16xf32>
    %16 = vector.multi_reduction <add>, %13, %cst_15 [1] : vector<16x32xf32> to vector<16xf32>
    %17 = vector.shape_cast %16 : vector<16xf32> to vector<16x1xf32>
    %cst_16 = arith.constant 3.200000e+01 : f32
    %18 = vector.broadcast %cst_16 : f32 to vector<16x1xf32>
    %19 = arith.divf %17, %18 : vector<16x1xf32>
    %20 = vector.broadcast %19 : vector<16x1xf32> to vector<16x32xf32>
    %21 = arith.subf %13, %20 : vector<16x32xf32>
    %22 = arith.mulf %21, %21 : vector<16x32xf32>
    %cst_17 = arith.constant dense<0.000000e+00> : vector<16xf32>
    %23 = vector.multi_reduction <add>, %22, %cst_17 [1] : vector<16x32xf32> to vector<16xf32>
    %24 = vector.shape_cast %23 : vector<16xf32> to vector<16x1xf32>
    %cst_18 = arith.constant 3.200000e+01 : f32
    %25 = vector.broadcast %cst_18 : f32 to vector<16x1xf32>
    %26 = arith.divf %24, %25 : vector<16x1xf32>
    %27 = vector.broadcast %19 : vector<16x1xf32> to vector<16x32xf32>
    %28 = arith.subf %13, %27 : vector<16x32xf32>
    %cst_19 = arith.constant 9.99999974E-6 : f32
    %29 = vector.broadcast %cst_19 : f32 to vector<16x1xf32>
    %30 = arith.addf %26, %29 : vector<16x1xf32>
    %31 = math.rsqrt %30 : vector<16x1xf32>
    %32 = vector.broadcast %31 : vector<16x1xf32> to vector<16x32xf32>
    %33 = arith.mulf %28, %32 : vector<16x32xf32>
    %34 = vector.broadcast %14 : vector<1x32xf32> to vector<16x32xf32>
    %35 = arith.mulf %33, %34 : vector<16x32xf32>
    %36 = vector.broadcast %15 : vector<1x32xf32> to vector<16x32xf32>
    %37 = arith.addf %35, %36 : vector<16x32xf32>
    %c0_20 = arith.constant 0 : index
    %c0_21 = arith.constant 0 : index
    %38 = vector.load %arg8[%c0_20, %c0_21] : memref<16x32xf32, #tpu.memory_space<vmem>>, vector<16x32xf32>
    tpu.vector_store %arg8[%c0_20, %c0_21], %37 {strides = array<i32>} : memref<16x32xf32, #tpu.memory_space<vmem>>, vector<16x32xf32>,
    return
  }
  func.func @transform_0(%arg0: i32) -> (i32, i32) {
    %c0_i32 = arith.constant 0 : i32
    %c0_i32_0 = arith.constant 0 : i32
    return %arg0, %c0_i32 : i32, i32
  }
  func.func @transform_1(%arg0: i32) -> (i32, i32) {
    %c0_i32 = arith.constant 0 : i32
    %c0_i32_0 = arith.constant 0 : i32
    %c0_i32_1 = arith.constant 0 : i32
    return %c0_i32, %c0_i32_0 : i32, i32
  }
  func.func @transform_2(%arg0: i32) -> (i32, i32) {
    %c0_i32 = arith.constant 0 : i32
    %c0_i32_0 = arith.constant 0 : i32
    %c0_i32_1 = arith.constant 0 : i32
    return %c0_i32, %c0_i32_0 : i32, i32
  }
  func.func @transform_3(%arg0: i32) -> (i32, i32) {
    %c0_i32 = arith.constant 0 : i32
    %c0_i32_0 = arith.constant 0 : i32
    %c0_i32_1 = arith.constant 0 : i32
    return %c0_i32, %c0_i32_0 : i32, i32
  }
  func.func @transform_4(%arg0: i32) -> (i32, i32) {
    %c0_i32 = arith.constant 0 : i32
    %c0_i32_0 = arith.constant 0 : i32
    %c0_i32_1 = arith.constant 0 : i32
    return %c0_i32, %c0_i32_0 : i32, i32
  }
  func.func @transform_5(%arg0: i32) -> (i32, i32) {
    %c0_i32 = arith.constant 0 : i32
    %c0_i32_0 = arith.constant 0 : i32
    %c0_i32_1 = arith.constant 0 : i32
    return %c0_i32, %c0_i32_0 : i32, i32
  }
  func.func @transform_6(%arg0: i32) -> (i32, i32) {
    %c0_i32 = arith.constant 0 : i32
    %c0_i32_0 = arith.constant 0 : i32
    %c0_i32_1 = arith.constant 0 : i32
    return %c0_i32, %c0_i32_0 : i32, i32
  }
  func.func @transform_7(%arg0: i32) -> (i32, i32) {
    %c0_i32 = arith.constant 0 : i32
    %c0_i32_0 = arith.constant 0 : i32
    return %arg0, %c0_i32 : i32, i32
  }
}

module attributes {stable_mosaic.version = 11 : i64} {
  func.func @_ln_kernel(%arg0: i32, %arg1: memref<16x32xf32, #tpu.memory_space<vmem>>, %arg2: memref<1x32xf32, #tpu.memory_space<vmem>>, %arg3: memref<1x32xf32, #tpu.memory_space<vmem>>, %arg4: memref<16x32xf32, #tpu.memory_space<vmem>>) attributes {dimension_semantics = [#tpu.dimension_semantics<parallel>], iteration_bounds = array<i64: 1>, scalar_prefetch = 0 : i64, scratch_operands = 0 : i64, tpu.core_type = #tpu.core_type<tc>, window_params = [{transform_indices = @transform_0, window_bounds = array<i64: 16, 32>}, {pipeline_mode = #tpu.pipeline_mode<synchronous>, transform_indices = @transform_1, window_bounds = array<i64: 1, 32>}, {pipeline_mode = #tpu.pipeline_mode<synchronous>, transform_indices = @transform_2, window_bounds = array<i64: 1, 32>}, {transform_indices = @transform_3, window_bounds = array<i64: 16, 32>}]} {
    %c0 = arith.constant 0 : index
    %c0_0 = arith.constant 0 : index
    %0 = vector.load %arg1[%c0, %c0_0] : memref<16x32xf32, #tpu.memory_space<vmem>>, vector<16x32xf32>
    %c0_1 = arith.constant 0 : index
    %c0_2 = arith.constant 0 : index
    %1 = vector.load %arg2[%c0_1, %c0_2] : memref<1x32xf32, #tpu.memory_space<vmem>>, vector<1x32xf32>
    %c0_3 = arith.constant 0 : index
    %c0_4 = arith.constant 0 : index
    %2 = vector.load %arg3[%c0_3, %c0_4] : memref<1x32xf32, #tpu.memory_space<vmem>>, vector<1x32xf32>
    %cst = arith.constant dense<0.000000e+00> : vector<16xf32>
    %3 = vector.multi_reduction <add>, %0, %cst [1] : vector<16x32xf32> to vector<16xf32>
    %4 = vector.shape_cast %3 : vector<16xf32> to vector<16x1xf32>
    %cst_5 = arith.constant 3.200000e+01 : f32
    %5 = vector.broadcast %cst_5 : f32 to vector<16x1xf32>
    %6 = arith.divf %4, %5 : vector<16x1xf32>
    %7 = vector.broadcast %6 : vector<16x1xf32> to vector<16x32xf32>
    %8 = arith.subf %0, %7 : vector<16x32xf32>
    %9 = arith.mulf %8, %8 : vector<16x32xf32>
    %cst_6 = arith.constant dense<0.000000e+00> : vector<16xf32>
    %10 = vector.multi_reduction <add>, %9, %cst_6 [1] : vector<16x32xf32> to vector<16xf32>
    %11 = vector.shape_cast %10 : vector<16xf32> to vector<16x1xf32>
    %cst_7 = arith.constant 3.200000e+01 : f32
    %12 = vector.broadcast %cst_7 : f32 to vector<16x1xf32>
    %13 = arith.divf %11, %12 : vector<16x1xf32>
    %14 = vector.broadcast %6 : vector<16x1xf32> to vector<16x32xf32>
    %15 = arith.subf %0, %14 : vector<16x32xf32>
    %cst_8 = arith.constant 9.99999974E-6 : f32
    %16 = vector.broadcast %cst_8 : f32 to vector<16x1xf32>
    %17 = arith.addf %13, %16 : vector<16x1xf32>
    %18 = math.rsqrt %17 : vector<16x1xf32>
    %19 = vector.broadcast %18 : vector<16x1xf32> to vector<16x32xf32>
    %20 = arith.mulf %15, %19 : vector<16x32xf32>
    %21 = vector.broadcast %1 : vector<1x32xf32> to vector<16x32xf32>
    %22 = arith.mulf %20, %21 : vector<16x32xf32>
    %23 = vector.broadcast %2 : vector<1x32xf32> to vector<16x32xf32>
    %24 = arith.addf %22, %23 : vector<16x32xf32>
    %c0_9 = arith.constant 0 : index
    %c0_10 = arith.constant 0 : index
    %25 = vector.load %arg4[%c0_9, %c0_10] : memref<16x32xf32, #tpu.memory_space<vmem>>, vector<16x32xf32>
    tpu.vector_store %arg4[%c0_9, %c0_10], %24 {strides = array<i32>} : memref<16x32xf32, #tpu.memory_space<vmem>>, vector<16x32xf32>,
    return
  }
  func.func @transform_0(%arg0: i32) -> (i32, i32) {
    %c0_i32 = arith.constant 0 : i32
    %c0_i32_0 = arith.constant 0 : i32
    return %arg0, %c0_i32 : i32, i32
  }
  func.func @transform_1(%arg0: i32) -> (i32, i32) {
    %c0_i32 = arith.constant 0 : i32
    %c0_i32_0 = arith.constant 0 : i32
    %c0_i32_1 = arith.constant 0 : i32
    return %c0_i32, %c0_i32_0 : i32, i32
  }
  func.func @transform_2(%arg0: i32) -> (i32, i32) {
    %c0_i32 = arith.constant 0 : i32
    %c0_i32_0 = arith.constant 0 : i32
    %c0_i32_1 = arith.constant 0 : i32
    return %c0_i32, %c0_i32_0 : i32, i32
  }
  func.func @transform_3(%arg0: i32) -> (i32, i32) {
    %c0_i32 = arith.constant 0 : i32
    %c0_i32_0 = arith.constant 0 : i32
    return %arg0, %c0_i32 : i32, i32
  }
}

module attributes {stable_mosaic.version = 11 : i64} {
  func.func @_linear_kernel(%arg0: i32, %arg1: i32, %arg2: memref<16x32xf32, #tpu.memory_space<vmem>>, %arg3: memref<32x60xf32, #tpu.memory_space<vmem>>, %arg4: memref<1x60xf32, #tpu.memory_space<vmem>>, %arg5: memref<16x60xf32, #tpu.memory_space<vmem>>) attributes {dimension_semantics = [#tpu.dimension_semantics<parallel>, #tpu.dimension_semantics<parallel>], iteration_bounds = array<i64: 1, 1>, scalar_prefetch = 0 : i64, scratch_operands = 0 : i64, tpu.core_type = #tpu.core_type<tc>, window_params = [{transform_indices = @transform_0, window_bounds = array<i64: 16, 32>}, {transform_indices = @transform_1, window_bounds = array<i64: 32, 60>}, {transform_indices = @transform_2, window_bounds = array<i64: 1, 60>}, {transform_indices = @transform_3, window_bounds = array<i64: 16, 60>}]} {
    %c0 = arith.constant 0 : index
    %c0_0 = arith.constant 0 : index
    %0 = vector.load %arg2[%c0, %c0_0] : memref<16x32xf32, #tpu.memory_space<vmem>>, vector<16x32xf32>
    %c0_1 = arith.constant 0 : index
    %c0_2 = arith.constant 0 : index
    %1 = vector.load %arg3[%c0_1, %c0_2] : memref<32x60xf32, #tpu.memory_space<vmem>>, vector<32x60xf32>
    %cst = arith.constant dense<0.000000e+00> : vector<16x60xf32>
    %2 = tpu.matmul %0, %1, %cst {dimension_numbers = #tpu.dot_dimension_numbers<[1], [0], [0], [1], [0, 0, 1, 1], [], []>} : vector<16x32xf32>, vector<32x60xf32>, vector<16x60xf32> -> vector<16x60xf32>
    %c0_3 = arith.constant 0 : index
    %c0_4 = arith.constant 0 : index
    %3 = vector.load %arg4[%c0_3, %c0_4] : memref<1x60xf32, #tpu.memory_space<vmem>>, vector<1x60xf32>
    %4 = vector.broadcast %3 : vector<1x60xf32> to vector<16x60xf32>
    %5 = arith.addf %2, %4 : vector<16x60xf32>
    %c0_5 = arith.constant 0 : index
    %c0_6 = arith.constant 0 : index
    %6 = vector.load %arg5[%c0_5, %c0_6] : memref<16x60xf32, #tpu.memory_space<vmem>>, vector<16x60xf32>
    tpu.vector_store %arg5[%c0_5, %c0_6], %5 {strides = array<i32>} : memref<16x60xf32, #tpu.memory_space<vmem>>, vector<16x60xf32>,
    return
  }
  func.func @transform_0(%arg0: i32, %arg1: i32) -> (i32, i32) {
    %c0_i32 = arith.constant 0 : i32
    %c0_i32_0 = arith.constant 0 : i32
    return %arg0, %c0_i32 : i32, i32
  }
  func.func @transform_1(%arg0: i32, %arg1: i32) -> (i32, i32) {
    %c0_i32 = arith.constant 0 : i32
    %c0_i32_0 = arith.constant 0 : i32
    return %c0_i32, %arg1 : i32, i32
  }
  func.func @transform_2(%arg0: i32, %arg1: i32) -> (i32, i32) {
    %c0_i32 = arith.constant 0 : i32
    %c0_i32_0 = arith.constant 0 : i32
    return %c0_i32, %arg1 : i32, i32
  }
  func.func @transform_3(%arg0: i32, %arg1: i32) -> (i32, i32) {
    %c0_i32 = arith.constant 0 : i32
    return %arg0, %arg1 : i32, i32
  }
}

</mosaic_0001>

<bundles_post_ra>
// kernel: seq2seq_transformer_forward.27
= control target key start
LH: loop header
LB: loop body
LE: loop exit
PB: predicated region body
PF: predicated region fallthrough
CT: control target
= control target key end

     0   :  { %vm25_vm0 = vcmask 261120   ;;  %vm61_vm1 = vcmask 785408   ;;  %vm64_vm2 = vcmask 781312   ;;  %s135_s1 = inlined_call_operand.vmem [shape: f32[32,96], index: 1, kind: input, shape index: {}]   ;;  %s136_s2 = inlined_call_operand.vmem [shape: f32[1,96], index: 2, kind: input, shape index: {}]   ;;  %s137_s0 = inlined_call_operand.vmem [shape: f32[20,32], index: 0, kind: input, shape index: {}]   ;;  %s138_s3 = inlined_call_operand.vmem [shape: f32[20,96], index: 3, kind: output, shape index: {}]  }
   0x1   :  { %v20_v0 = vld [vmem:[%s135_s1 + $0x18] sm:$0xff]  ;;  %v19_v1 = vld [vmem:[%s135_s1 + $0x10] sm:$0xff]  ;;  %v18_v2 = vld [vmem:[%s135_s1 + $0x8] sm:$0xff] }
   0x2   :  { %74 = vmatpush.msra.mxu2 %v20_v0  ;;  %47 = vmatpush.msra.mxu0 %v20_v0  ;;  %v17_v3 = vld [vmem:[%s135_s1] sm:$0xff]  ;;  %v16_v4 = vld [vmem:[%s137_s0 + $0x10] sm:$0xf]  ;;  %v15_v6 = vld [vmem:[%s137_s0 + $0x8] sm:$0xff] }
   0x3   :  { %73 = vmatpush.msra.mxu1 %v20_v0  ;;  %v14_v5 = vld [vmem:[%s137_s0] sm:$0xff] }
   0x4   :  { %76 = vmatpush.msra.mxu2 %v19_v1  ;;  %48 = vmatpush.msra.mxu0 %v19_v1  ;;  %v81_v7 = vld [vmem:[%s136_s2] ss:$0 sm:$0xff] }
   0x5   :  { %75 = vmatpush.msra.mxu1 %v19_v1 }
   0x6   :  { %78 = vmatpush.msra.mxu2 %v18_v2  ;;  %49 = vmatpush.msra.mxu0 %v18_v2 }
   0x7   :  { %77 = vmatpush.msra.mxu1 %v18_v2 }
   0x8   :  { %80 = vmatpush.msra.mxu2 %v17_v3  ;;  %50 = vmatpush.msra.mxu0 %v17_v3 }
   0x9   :  { %72 = vmatmul.msk.f32.vlgmr.msra.gmra.mxu2 %vm25_vm0, %v16_v4  ;;  %79 = vmatpush.msra.mxu1 %v17_v3 }
   0xa   :  { %70 = vmatmul.msk.f32.vlgmr.msra.gmra.mxu0 %vm25_vm0, %v14_v5  ;;  %71 = vmatmul.msk.f32.vlgmr.msra.gmra.mxu1 %vm25_vm0, %v15_v6 }
  0x87   :  { %v52_v8 = vpop.f32.mrf.mxu0  ;;  %v55_v9 = vpop.f32.mrf.mxu1 }
  0x88   :  { %v53_v10 = vadd.f32 %v81_v7, %v52_v8  ;;  %v56_v11 = vadd.f32 %v81_v7, %v55_v9 }
  0x8a   :  { %62 = vst.msk [vmem:[%s138_s3] sm:$0xff] %vm61_vm1, %v53_v10 }
  0x8b   :  { %63 = vst.msk [vmem:[%s138_s3 + $0x8] sm:$0xff] %vm61_vm1, %v56_v11 }
  0x8c   :  { %v58_v12 = vpop.f32.mrf.mxu2 }
  0x8d   :  { %v59_v13 = vadd.f32 %v81_v7, %v58_v12 }
  0x8f   :  { %65 = vst.msk [vmem:[%s138_s3 + $0x10] sm:$0xf] %vm64_vm2, %v59_v13 }

// kernel: seq2seq_transformer_forward.28
= control target key start
LH: loop header
LB: loop body
LE: loop exit
PB: predicated region body
PF: predicated region fallthrough
CT: control target
= control target key end

     0   :  { %s883_s15 = smov 0   ;;  %s983_s0 = inlined_call_operand.vmem [shape: f32[2,4,10,8], index: 0, kind: input, shape index: {}]   ;;  %s984_s1 = inlined_call_operand.vmem [shape: f32[2,4,10,8], index: 1, kind: input, shape index: {}]   ;;  %s985_s2 = inlined_call_operand.vmem [shape: f32[2,4,10,8], index: 2, kind: input, shape index: {}]   ;;  %s986_s3 = inlined_call_operand.vmem [shape: f32[2,10,10], index: 3, kind: input, shape index: {}]   ;;  %s987_s4 = inlined_call_operand.vmem [shape: f32[2,4,10,8], index: 4, kind: output, shape index: {}]  }
   0x1 LB: > { %s760_s16 = sadd.s32 4294967295, %s856_s15   ;;  %p764_p0 = scmp.ge.s32.totalorder %s856_s15, 1  ;;  %s856_s15 = sphi %s883_s15, %s14_s15  }
   0x2   : > { %p192_p1 = scmp.lt.s32.totalorder %s856_s15, 3 }
   0x4   : > { %p193_p2 = pnand %p764_p0, %p192_p1 }
   0x5   : > { %p233_p3 = scmp.lt.s32.totalorder (!%p193_p2), %s760_s16, 1 }
   0x6   : > { %196 = sbr.rel (%p193_p2) target bundleno = 565 (0x235), region = 36 }
   0xb   : > { %s989_s16 = smov (!%p233_p3, %s760_s16), 1  ;;  %vm284_vm0 = vcmask 64512   ;;  %vm441_vm1 = vcmask 80896   ;;  %vm445_vm2 = vcmask 74752   ;;  %vm537_vm3 = vcmask 1041408  }
   0xc   : > { %s894_s17 = sshll.u32 %s989_s16, 6  ;;  %s808_s24 = sshll.u32 %s989_s16, 4  ;;  %vm661_vm4 = vcmask 58368  }
   0xd   : > { %s242_s20 = scalar_lea.vmem %s984_s1, %s894_s17  ;;  %s237_s23 = scalar_lea.vmem %s983_s0, %s894_s17 }
   0xe   : > { %v267_v0 = vld [vmem:[%s242_s20 + $0x8] sm:$0x3]  ;;  %v266_v2 = vld [vmem:[%s242_s20] sm:$0xff]  ;;  %v269_v4 = vld [vmem:[%s242_s20 + $0x18] sm:$0x3]  ;;  %s252_s27 = scalar_lea.vmem %s986_s3, %s808_s24  ;;  %s247_s30 = scalar_lea.vmem %s985_s2, %s894_s17 }
   0xf   : > { %v271_v1 = vld [vmem:[%s242_s20 + $0x28] sm:$0x3]  ;;  %775 = vmatpush.xpose.msk.msra.mxu0 %vm284_vm0, %v267_v0  ;;  %v270_v3 = vld [vmem:[%s242_s20 + $0x20] sm:$0xff]  ;;  %v273_v5 = vld [vmem:[%s242_s20 + $0x38] sm:$0x3]  ;;  %779 = vmatpush.xpose.msk.msra.mxu1 %vm284_vm0, %v269_v4  ;;  %s257_s7 = scalar_lea.vmem %s987_s4, %s894_s17 }
  0x10   : > { %783 = vmatpush.xpose.msk.msra.mxu2 %vm284_vm0, %v271_v1  ;;  %787 = vmatpush.xpose.msk.msra.mxu3 %vm284_vm0, %v273_v5  ;;  %v268_v6 = vld [vmem:[%s242_s20 + $0x10] sm:$0xff]  ;;  %v258_v8 = vld [vmem:[%s237_s23] sm:$0xff]  ;;  %v263_v12 = vld [vmem:[%s237_s23 + $0x28] sm:$0x3] }
  0x11   : > { %v272_v7 = vld [vmem:[%s242_s20 + $0x30] sm:$0xff]  ;;  %v262_v9 = vld [vmem:[%s237_s23 + $0x20] sm:$0xff]  ;;  %v259_v13 = vld [vmem:[%s237_s23 + $0x8] sm:$0x3] }
  0x12   : > { %v260_v10 = vld [vmem:[%s237_s23 + $0x10] sm:$0xff]  ;;  %v261_v14 = vld [vmem:[%s237_s23 + $0x18] sm:$0x3]  ;;  %v282_v17 = vld [vmem:[%s252_s27] sm:$0xff] }
  0x13   : > { %776 = vmatpush.xpose.msk.msra.mxu0 %vm284_vm0, %v266_v2  ;;  %780 = vmatpush.xpose.msk.msra.mxu1 %vm284_vm0, %v268_v6  ;;  %v264_v11 = vld [vmem:[%s237_s23 + $0x30] sm:$0xff]  ;;  %v265_v15 = vld [vmem:[%s237_s23 + $0x38] sm:$0x3]  ;;  %v283_v35 = vld [vmem:[%s252_s27 + $0x8] sm:$0x3] }
  0x14   : > { %784 = vmatpush.xpose.msk.msra.mxu2 %vm284_vm0, %v270_v3  ;;  %788 = vmatpush.xpose.msk.msra.mxu3 %vm284_vm0, %v272_v7 }
  0x16   : > { %777 = vmatmul.msk.f32.vlgmr.msra.gmra.mxu0 %vm284_vm0, %v258_v8  ;;  %781 = vmatmul.msk.f32.vlgmr.msra.gmra.mxu1 %vm284_vm0, %v260_v10 }
  0x17   : > { %785 = vmatmul.msk.f32.vlgmr.msra.gmra.mxu2 %vm284_vm0, %v262_v9  ;;  %789 = vmatmul.msk.f32.vlgmr.msra.gmra.mxu3 %vm284_vm0, %v264_v11 }
  0x1e   : > { %778 = vmatmul.msk.f32.gmra.mxu0 %vm284_vm0, %v259_v13  ;;  %782 = vmatmul.msk.f32.gmra.mxu1 %vm284_vm0, %v261_v14 }
  0x1f   : > { %786 = vmatmul.msk.f32.gmra.mxu2 %vm284_vm0, %v263_v12  ;;  %790 = vmatmul.msk.f32.gmra.mxu3 %vm284_vm0, %v265_v15 }
  0x93   : > { %v314_v16 = vpop.f32.mrf.mxu0  ;;  %v349_v19 = vpop.f32.mrf.mxu1 }
  0x94   : > { %v425_v18 = vmul.f32 0.35355338, %v314_v16  ;;  %v427_v21 = vmul.f32 0.35355338, %v349_v19 }
  0x96   : > { %v433_v20 = vadd.f32 %v425_v18, %v282_v17  ;;  %v435_v25 = vadd.f32 %v427_v21, %v282_v17 }
  0x98   : > { %v442_v22 = vsel %vm441_vm1, %v433_v20, -inf  ;;  %v449_v31 = vsel %vm441_vm1, %v435_v25, -inf }
  0x99   : > { %443 = vmax.xlane.f32.xlu1 %v442_v22 }
  0x9a   : > { %v384_v23 = vpop.f32.mrf.mxu2  ;;  %v419_v26 = vpop.f32.mrf.mxu3 }
  0x9b   : > { %v429_v24 = vmul.f32 0.35355338, %v384_v23  ;;  %v431_v28 = vmul.f32 0.35355338, %v419_v26  ;;  %v352_v29 = vpop.f32.mrf.mxu1  ;;  %v317_v36 = vpop.f32.mrf.mxu0  ;;  %v275_v26 = vld [vmem:[%s247_s30 + $0x8] sm:$0x3] }
  0x9c   : > { %v428_v32 = vmul.f32 0.35355338, %v352_v29  ;;  %v426_v43 = vmul.f32 0.35355338, %v317_v36  ;;  %791 = vmatpush.msk.msrb.mxu0 %vm537_vm3, %v275_v26  ;;  %v281_v29 = vld [vmem:[%s247_s30 + $0x38] sm:$0x3] }
  0x9d   : > { %v437_v27 = vadd.f32 %v429_v24, %v282_v17  ;;  %v439_v33 = vadd.f32 %v431_v28, %v282_v17  ;;  %v279_v28 = vld [vmem:[%s247_s30 + $0x28] sm:$0x3]  ;;  %800 = vmatpush.msk.msrb.mxu3 %vm537_vm3, %v281_v29 }
  0x9e   : > { %v436_v38 = vadd.f32 %v428_v32, %v283_v35  ;;  %v434_v47 = vadd.f32 %v426_v43, %v283_v35  ;;  %797 = vmatpush.msk.msrb.mxu2 %vm537_vm3, %v279_v28  ;;  %v280_v32 = vld [vmem:[%s247_s30 + $0x30] sm:$0xff] }
  0x9f   : > { %v455_v30 = vsel %vm441_vm1, %v437_v27, -inf  ;;  %v461_v40 = vsel %vm441_vm1, %v439_v33, -inf  ;;  %652 = vmatpush.msrb.mxu3 %v280_v32 }
  0xa0   : > { %456 = vmax.xlane.f32.xlu0 %v455_v30  ;;  %v452_v45 = vsel %vm445_vm2, %v436_v38, -inf  ;;  %v446_v49 = vsel %vm445_vm2, %v434_v47, -inf  ;;  %v278_v30 = vld [vmem:[%s247_s30 + $0x20] sm:$0xff] }
  0xa1   : > { %450 = vmax.xlane.f32.xlu1 %v449_v31  ;;  %620 = vmatpush.msrb.mxu2 %v278_v30  ;;  %v277_v31 = vld [vmem:[%s247_s30 + $0x18] sm:$0x3] }
  0xa2   : > { %v387_v34 = vpop.f32.mrf.mxu2  ;;  %v422_v39 = vpop.f32.mrf.mxu3  ;;  %794 = vmatpush.msk.msrb.mxu1 %vm537_vm3, %v277_v31 }
  0xa3   : > { %v430_v37 = vmul.f32 0.35355338, %v387_v34  ;;  %v432_v42 = vmul.f32 0.35355338, %v422_v39 }
  0xa5   : > { %v438_v41 = vadd.f32 %v430_v37, %v283_v35  ;;  %v440_v46 = vadd.f32 %v432_v42, %v283_v35 }
  0xa7   : > { %v458_v44 = vsel %vm445_vm2, %v438_v41, -inf  ;;  %v464_v48 = vsel %vm445_vm2, %v440_v46, -inf }
  0xa8   : > { %462 = vmax.xlane.f32.xlu0 %v461_v40  ;;  %459 = vmax.xlane.f32.xlu2 %v458_v44 }
  0xa9   : > { %453 = vmax.xlane.f32.xlu1 %v452_v45 }
  0xb0   : > { %465 = vmax.xlane.f32.xlu2 %v464_v48  ;;  %447 = vmax.xlane.f32.xlu0 %v446_v49 }
 0x10c   : > { %v444_v50 = vpop.xlane.xlu1 %443 }
 0x10d   : > { %v467_v51 = vsub.f32 %v433_v20, %v444_v50 }
 0x10f   : > { %v475_v52 = vmul.f32 1.442695, %v467_v51 }
 0x111   : > { %818 = vpow2.f32 %v475_v52 }
 0x113   : > { %v457_v53 = vpop.xlane.xlu0 %456 }
 0x114   : > { %v471_v54 = vsub.f32 %v437_v27, %v457_v53  ;;  %v451_v55 = vpop.xlane.xlu1 %450  ;;  %v274_v27 = vld [vmem:[%s247_s30] sm:$0xff] }
 0x115   : > { %v469_v57 = vsub.f32 %v435_v25, %v451_v55  ;;  %556 = vmatpush.msrb.mxu0 %v274_v27 }
 0x116   : > { %v483_v56 = vmul.f32 1.442695, %v471_v54 }
 0x117   : > { %v932_v58 = vpop.eup %818  ;;  %v479_v60 = vmul.f32 1.442695, %v469_v57 }
 0x118   : > { %820 = vpow2.f32 %v483_v56  ;;  %v491_v59 = vsel %vm441_vm1, %v932_v58, 0.0 }
 0x119   : > { %492 = vadd.xlane.f32.xlu1 %v491_v59  ;;  %822 = vpow2.f32 %v479_v60 }
 0x11b   : > { %v463_v61 = vpop.xlane.xlu0 %462  ;;  %v460_v62 = vpop.xlane.xlu2 %459 }
 0x11c   : > { %v473_v63 = vsub.f32 %v439_v33, %v463_v61  ;;  %v472_v2 = vsub.f32 %v438_v41, %v460_v62  ;;  %v454_v5 = vpop.xlane.xlu1 %453  ;;  %v276_v33 = vld [vmem:[%s247_s30 + $0x10] sm:$0xff] }
 0x11d   : > { %v470_v12 = vsub.f32 %v436_v38, %v454_v5  ;;  %588 = vmatpush.msrb.mxu1 %v276_v33 }
 0x11e   : > { %v936_v0 = vpop.eup %820  ;;  %v487_v1 = vmul.f32 1.442695, %v473_v63  ;;  %v485_v4 = vmul.f32 1.442695, %v472_v2 }
 0x11f   : > { %v503_v3 = vsel %vm441_vm1, %v936_v0, 0.0  ;;  %v940_v8 = vpop.eup %822  ;;  %v481_v17 = vmul.f32 1.442695, %v470_v12 }
 0x120   : > { %824 = vpow2.f32 %v487_v1  ;;  %504 = vadd.xlane.f32.xlu2 %v503_v3  ;;  %v497_v15 = vsel %vm441_vm1, %v940_v8, 0.0 }
 0x121   : > { %826 = vpow2.f32 %v485_v4 }
 0x123   : > { %v466_v6 = vpop.xlane.xlu2 %465  ;;  %v448_v7 = vpop.xlane.xlu0 %447 }
 0x124   : > { %v474_v9 = vsub.f32 %v440_v46, %v466_v6  ;;  %v468_v10 = vsub.f32 %v434_v47, %v448_v7 }
 0x126   : > { %v942_v11 = vpop.eup %824  ;;  %v489_v13 = vmul.f32 1.442695, %v474_v9  ;;  %v477_v14 = vmul.f32 1.442695, %v468_v10 }
 0x127   : > { %v509_v16 = vsel %vm441_vm1, %v942_v11, 0.0  ;;  %v948_v18 = vpop.eup %826 }
 0x128   : > { %828 = vpow2.f32 %v489_v13  ;;  %498 = vadd.xlane.f32.xlu2 %v497_v15  ;;  %510 = vadd.xlane.f32.xlu0 %v509_v16  ;;  %v506_v22 = vsel %vm445_vm2, %v948_v18, 0.0 }
 0x129   : > { %830 = vpow2.f32 %v477_v14 }
 0x12a   : > { %832 = vpow2.f32 %v481_v17 }
 0x12e   : > { %v829_v19 = vpop.eup %828 }
 0x12f   : > { %v831_v20 = vpop.eup %830  ;;  %v512_v21 = vsel %vm445_vm2, %v829_v19, 0.0 }
 0x130   : > { %513 = vadd.xlane.f32.xlu1 %v512_v21  ;;  %507 = vadd.xlane.f32.xlu0 %v506_v22  ;;  %v494_v23 = vsel %vm445_vm2, %v831_v20, 0.0  ;;  %v833_v24 = vpop.eup %832 }
 0x131   : > { %495 = vadd.xlane.f32.xlu2 %v494_v23  ;;  %v500_v25 = vsel %vm445_vm2, %v833_v24, 0.0 }
 0x138   : > { %501 = vadd.xlane.f32.xlu0 %v500_v25 }
 0x18c   : > { %v493_v34 = vpop.xlane.xlu1 %492 }
 0x18d   : > { %834 = vrcp.f32 %v493_v34 }
 0x193   : > { %v505_v35 = vpop.xlane.xlu2 %504  ;;  %v835_v36 = vpop.eup %834 }
 0x194   : > { %836 = vrcp.f32 %v505_v35  ;;  %v523_v37 = vmul.f32 %v835_v36, %v932_v58 }
 0x196   : > { %792 = vmatmul.msk.f32.vlgmr.msrb.gmra.mxu0 %vm441_vm1, %v523_v37 }
 0x19a   : > { %v837_v38 = vpop.eup %836 }
 0x19b   : > { %v499_v39 = vpop.xlane.xlu2 %498  ;;  %v511_v40 = vpop.xlane.xlu0 %510  ;;  %v527_v41 = vmul.f32 %v837_v38, %v936_v0 }
 0x19c   : > { %838 = vrcp.f32 %v499_v39 }
 0x19d   : > { %840 = vrcp.f32 %v511_v40  ;;  %798 = vmatmul.msk.f32.vlgmr.msrb.gmra.mxu2 %vm441_vm1, %v527_v41 }
 0x1a2   : > { %v839_v42 = vpop.eup %838 }
 0x1a3   : > { %v841_v43 = vpop.eup %840  ;;  %v514_v44 = vpop.xlane.xlu1 %513  ;;  %v525_v46 = vmul.f32 %v839_v42, %v940_v8 }
 0x1a4   : > { %v508_v45 = vpop.xlane.xlu0 %507  ;;  %842 = vrcp.f32 %v514_v44  ;;  %v496_v47 = vpop.xlane.xlu2 %495  ;;  %v529_v48 = vmul.f32 %v841_v43, %v942_v11 }
 0x1a5   : > { %844 = vrcp.f32 %v496_v47  ;;  %795 = vmatmul.msk.f32.vlgmr.msrb.gmra.mxu1 %vm441_vm1, %v525_v46 }
 0x1a6   : > { %846 = vrcp.f32 %v508_v45  ;;  %801 = vmatmul.msk.f32.vlgmr.msrb.gmra.mxu3 %vm441_vm1, %v529_v48 }
 0x1aa   : > { %v843_v49 = vpop.eup %842 }
 0x1ab   : > { %v845_v50 = vpop.eup %844  ;;  %v530_v52 = vmul.f32 %v843_v49, %v829_v19 }
 0x1ac   : > { %v502_v51 = vpop.xlane.xlu0 %501  ;;  %v847_v53 = vpop.eup %846  ;;  %v524_v54 = vmul.f32 %v845_v50, %v831_v20 }
 0x1ad   : > { %848 = vrcp.f32 %v502_v51  ;;  %v528_v55 = vmul.f32 %v847_v53, %v948_v18 }
 0x1ae   : > { %793 = vmatmul.msk.f32.gmra.mxu0 %vm441_vm1, %v524_v54  ;;  %802 = vmatmul.msk.f32.gmra.mxu3 %vm441_vm1, %v530_v52 }
 0x1af   : > { %799 = vmatmul.msk.f32.gmra.mxu2 %vm441_vm1, %v528_v55 }
 0x1b3   : > { %v849_v56 = vpop.eup %848 }
 0x1b4   : > { %v526_v57 = vmul.f32 %v849_v56, %v833_v24 }
 0x1b6   : > { %796 = vmatmul.msk.f32.gmra.mxu1 %vm441_vm1, %v526_v57 }
 0x213   : > { %v558_v58 = vpop.f32.mrf.mxu0 }
 0x214   : > { %660 = vst.msk [vmem:[%s257_s7] sm:$0xff] %vm284_vm0, %v558_v58 }
 0x220   : > { %v622_v59 = vpop.f32.mrf.mxu2 }
 0x221   : > { %665 = vst.msk [vmem:[%s257_s7 + $0x20] sm:$0xff] %vm284_vm0, %v622_v59 }
 0x222   : > { %v590_v60 = vpop.f32.mrf.mxu1 }
 0x223   : > { %663 = vst.msk [vmem:[%s257_s7 + $0x10] sm:$0xff] %vm284_vm0, %v590_v60 }
 0x229   : > { %v654_v61 = vpop.f32.mrf.mxu3 }
 0x22a   : > { %667 = vst.msk [vmem:[%s257_s7 + $0x30] sm:$0xff] %vm284_vm0, %v654_v61 }
 0x22b   : > { %v561_v62 = vpop.f32.mrf.mxu0 }
 0x22c   : > { %662 = vst.msk [vmem:[%s257_s7 + $0x8] sm:$0x3] %vm661_vm4, %v561_v62 }
 0x231   : > { %v657_v63 = vpop.f32.mrf.mxu3 }
 0x232   : > { %v625_v0 = vpop.f32.mrf.mxu2  ;;  %668 = vst.msk [vmem:[%s257_s7 + $0x38] sm:$0x3] %vm661_vm4, %v657_v63 }
 0x233   : > { %v593_v1 = vpop.f32.mrf.mxu1  ;;  %666 = vst.msk [vmem:[%s257_s7 + $0x28] sm:$0x3] %vm661_vm4, %v625_v0 }
 0x234   : > { %664 = vst.msk [vmem:[%s257_s7 + $0x18] sm:$0x3] %vm661_vm4, %v593_v1 }
 0x235 PF: > { %s14_s15 = sadd.s32 1, %s856_s15  }
 0x236   : > { %p11_p4 = scmp.ge.s32.totalorder %s14_s15, 4  }
 0x238   :  { %13 = sbr.rel (!%p11_p4) target bundleno = 1 (0x1), region = 75 }

// kernel: seq2seq_transformer_forward.29
= control target key start
LH: loop header
LB: loop body
LE: loop exit
PB: predicated region body
PF: predicated region fallthrough
CT: control target
= control target key end

     0   :  { %vm34_vm0 = vcmask 261120   ;;  %vm84_vm1 = vcmask 257024   ;;  %v194_v23 = vmov 32.0   ;;  %s290_s1 = inlined_call_operand.vmem [shape: f32[32,32], index: 1, kind: input, shape index: {}]   ;;  %s291_s2 = inlined_call_operand.vmem [shape: f32[1,32], index: 2, kind: input, shape index: {}]   ;;  %s292_s0 = inlined_call_operand.vmem [shape: f32[20,32], index: 0, kind: input, shape index: {}]   ;;  %s293_s3 = inlined_call_operand.vmem [shape: f32[20,32], index: 3, kind: input, shape index: {}]   ;;  %s294_s4 = inlined_call_operand.vmem [shape: f32[1,32], index: 4, kind: input, shape index: {}]   ;;  %s295_s5 = inlined_call_operand.vmem [shape: f32[1,32], index: 5, kind: input, shape index: {}]   ;;  %s296_s6 = inlined_call_operand.vmem [shape: f32[20,32], index: 6, kind: output, shape index: {}]  }
   0x1   :  { %v29_v0 = vld [vmem:[%s290_s1 + $0x18] sm:$0xff]  ;;  %v28_v1 = vld [vmem:[%s290_s1 + $0x10] sm:$0xff]  ;;  %v27_v2 = vld [vmem:[%s290_s1 + $0x8] sm:$0xff]  ;;  %186 = vrcp.f32 %v194_v23 }
   0x2   :  { %56 = vmatpush.msra.mxu0 %v29_v0  ;;  %175 = vmatpush.msra.mxu2 %v29_v0  ;;  %v26_v3 = vld [vmem:[%s290_s1] sm:$0xff]  ;;  %v25_v5 = vld [vmem:[%s292_s0 + $0x10] sm:$0xf]  ;;  %v24_v6 = vld [vmem:[%s292_s0 + $0x8] sm:$0xff] }
   0x3   :  { %174 = vmatpush.msra.mxu1 %v29_v0  ;;  %v23_v4 = vld [vmem:[%s292_s0] sm:$0xff]  ;;  %v71_v14 = vld [vmem:[%s293_s3 + $0x8] sm:$0xff]  ;;  %v72_v17 = vld [vmem:[%s293_s3 + $0x10] sm:$0xf] }
   0x4   :  { %57 = vmatpush.msra.mxu0 %v28_v1  ;;  %177 = vmatpush.msra.mxu2 %v28_v1  ;;  %v183_v7 = vld [vmem:[%s291_s2] ss:$0 sm:$0xff] }
   0x5   :  { %176 = vmatpush.msra.mxu1 %v28_v1  ;;  %v70_v9 = vld [vmem:[%s293_s3] sm:$0xff] }
   0x6   :  { %58 = vmatpush.msra.mxu0 %v27_v2  ;;  %179 = vmatpush.msra.mxu2 %v27_v2  ;;  %v184_v62 = vld [vmem:[%s294_s4] ss:$0 sm:$0xff] }
   0x7   :  { %178 = vmatpush.msra.mxu1 %v27_v2  ;;  %v187_v24 = vpop.eup %186  ;;  %v185_v1 = vld [vmem:[%s295_s5] ss:$0 sm:$0xff] }
   0x8   :  { %59 = vmatpush.msra.mxu0 %v26_v3  ;;  %181 = vmatpush.msra.mxu2 %v26_v3  ;;  %v89_v25 = vmul.f32 32.0, %v187_v24  ;;  %vm93_vm2 = vweird.f32 %v187_v24 }
   0x9   :  { %171 = vmatmul.msk.f32.vlgmr.msra.gmra.mxu0 %vm34_vm0, %v23_v4  ;;  %173 = vmatmul.msk.f32.vlgmr.msra.gmra.mxu2 %vm34_vm0, %v25_v5 }
   0xa   :  { %180 = vmatpush.msra.mxu1 %v26_v3  ;;  %v90_v26 = vsub.f32 1.0, %v89_v25 }
   0xb   :  { %172 = vmatmul.msk.f32.vlgmr.msra.gmra.mxu1 %vm34_vm0, %v24_v6 }
   0xc   :  { %v91_v27 = vmul.f32 %v187_v24, %v90_v26 }
   0xe   :  { %v92_v28 = vadd.f32 %v187_v24, %v91_v27 }
  0x10   :  { %v94_v29 = vsel %vm93_vm2, %v187_v24, %v92_v28 }
  0x86   :  { %v61_v8 = vpop.f32.mrf.mxu0 }
  0x87   :  { %v62_v10 = vadd.f32 %v183_v7, %v61_v8 }
  0x88   :  { %v64_v11 = vpop.f32.mrf.mxu1 }
  0x89   :  { %v73_v12 = vadd.f32 %v70_v9, %v62_v10  ;;  %v65_v13 = vadd.f32 %v183_v7, %v64_v11 }
  0x8b   :  { %v78_v15 = vsel %vm34_vm0, %v73_v12, 0.0  ;;  %v74_v19 = vadd.f32 %v71_v14, %v65_v13 }
  0x8c   :  { %v67_v16 = vpop.f32.mrf.mxu2  ;;  %79 = vadd.xlane.f32.xlu0 %v78_v15 }
  0x8d   :  { %v68_v18 = vadd.f32 %v183_v7, %v67_v16  ;;  %v81_v22 = vsel %vm34_vm0, %v74_v19, 0.0 }
  0x8f   :  { %v75_v20 = vadd.f32 %v72_v17, %v68_v18 }
  0x91   :  { %v85_v21 = vsel %vm84_vm1, %v75_v20, 0.0 }
  0x92   :  { %86 = vadd.xlane.f32.xlu1 %v85_v21 }
  0x94   :  { %82 = vadd.xlane.f32.xlu0 %v81_v22 }
  0xff   :  { %v80_v30 = vpop.xlane.xlu0 %79 }
 0x100   :  { %v95_v31 = vmul.f32 %v94_v29, %v80_v30 }
 0x102   :  { %v98_v32 = vsub.f32 %v73_v12, %v95_v31 }
 0x104   :  { %v101_v33 = vmul.f32 %v98_v32, %v98_v32 }
 0x105   :  { %v87_v35 = vpop.xlane.xlu1 %86 }
 0x106   :  { %v104_v34 = vsel %vm34_vm0, %v101_v33, 0.0  ;;  %v97_v38 = vmul.f32 %v94_v29, %v87_v35 }
 0x107   :  { %105 = vadd.xlane.f32.xlu1 %v104_v34  ;;  %v83_v36 = vpop.xlane.xlu0 %82 }
 0x108   :  { %v96_v37 = vmul.f32 %v94_v29, %v83_v36  ;;  %v100_v41 = vsub.f32 %v75_v20, %v97_v38 }
 0x10a   :  { %v99_v39 = vsub.f32 %v74_v19, %v96_v37  ;;  %v103_v43 = vmul.f32 %v100_v41, %v100_v41 }
 0x10c   :  { %v102_v40 = vmul.f32 %v99_v39, %v99_v39  ;;  %v110_v44 = vsel %vm84_vm1, %v103_v43, 0.0 }
 0x10e   :  { %v107_v42 = vsel %vm34_vm0, %v102_v40, 0.0 }
 0x10f   :  { %108 = vadd.xlane.f32.xlu2 %v107_v42 }
 0x117   :  { %111 = vadd.xlane.f32.xlu2 %v110_v44 }
 0x17a   :  { %v106_v45 = vpop.xlane.xlu1 %105 }
 0x17b   :  { %v113_v46 = vmul.f32 %v106_v45, %v94_v29 }
 0x17d   :  { %v116_v47 = vadd.f32 1e-05, %v113_v46 }
 0x17f   :  { %188 = vrsqrt.f32 %v116_v47  ;;  %vm125_vm4 = vweird.f32 %v116_v47 }
 0x182   :  { %v109_v48 = vpop.xlane.xlu2 %108 }
 0x183   :  { %v114_v49 = vmul.f32 %v109_v48, %v94_v29 }
 0x185   :  { %v189_v50 = vpop.eup %188  ;;  %v117_v51 = vadd.f32 1e-05, %v114_v49 }
 0x186   :  { %v120_v52 = vmul.f32 %v189_v50, %v116_v47  ;;  %vm126_vm3 = vweird.f32 %v189_v50 }
 0x187   :  { %190 = vrsqrt.f32 %v117_v51  ;;  %vm127_vm5 = vmor %vm125_vm4, %vm126_vm3  ;;  %vm135_vm7 = vweird.f32 %v117_v51 }
 0x188   :  { %v121_v53 = vmul.f32 %v189_v50, %v120_v52 }
 0x18a   :  { %v122_v54 = vmul.f32 0.5, %v121_v53  ;;  %v112_v55 = vpop.xlane.xlu2 %111 }
 0x18b   :  { %v115_v56 = vmul.f32 %v112_v55, %v94_v29 }
 0x18c   :  { %v123_v57 = vsub.f32 1.5, %v122_v54 }
 0x18d   :  { %v191_v58 = vpop.eup %190  ;;  %v118_v59 = vadd.f32 1e-05, %v115_v56 }
 0x18e   :  { %v124_v60 = vmul.f32 %v189_v50, %v123_v57  ;;  %v130_v61 = vmul.f32 %v191_v58, %v117_v51  ;;  %vm136_vm6 = vweird.f32 %v191_v58 }
 0x18f   :  { %192 = vrsqrt.f32 %v118_v59  ;;  %vm137_vm8 = vmor %vm135_vm7, %vm136_vm6  ;;  %vm145_vm10 = vweird.f32 %v118_v59 }
 0x190   :  { %v128_v63 = vsel %vm127_vm5, %v189_v50, %v124_v60  ;;  %v131_v0 = vmul.f32 %v191_v58, %v130_v61 }
 0x191   :  { %v149_v2 = vmul.f32 %v128_v63, %v98_v32 }
 0x192   :  { %v132_v3 = vmul.f32 0.5, %v131_v0 }
 0x193   :  { %v155_v4 = vmul.f32 %v184_v62, %v149_v2 }
 0x194   :  { %v133_v5 = vsub.f32 1.5, %v132_v3 }
 0x195   :  { %v193_v6 = vpop.eup %192  ;;  %v161_v7 = vadd.f32 %v185_v1, %v155_v4 }
 0x196   :  { %v134_v8 = vmul.f32 %v191_v58, %v133_v5  ;;  %v140_v9 = vmul.f32 %v193_v6, %v118_v59  ;;  %vm146_vm9 = vweird.f32 %v193_v6 }
 0x197   :  { %164 = vst.msk [vmem:[%s296_s6] sm:$0xff] %vm34_vm0, %v161_v7  ;;  %vm147_vm11 = vmor %vm145_vm10, %vm146_vm9 }
 0x198   :  { %v138_v10 = vsel %vm137_vm8, %v191_v58, %v134_v8  ;;  %v141_v11 = vmul.f32 %v193_v6, %v140_v9 }
 0x199   :  { %v150_v12 = vmul.f32 %v138_v10, %v99_v39 }
 0x19a   :  { %v142_v13 = vmul.f32 0.5, %v141_v11 }
 0x19b   :  { %v156_v14 = vmul.f32 %v184_v62, %v150_v12 }
 0x19c   :  { %v143_v15 = vsub.f32 1.5, %v142_v13 }
 0x19d   :  { %v162_v16 = vadd.f32 %v185_v1, %v156_v14 }
 0x19e   :  { %v144_v17 = vmul.f32 %v193_v6, %v143_v15 }
 0x19f   :  { %165 = vst.msk [vmem:[%s296_s6 + $0x8] sm:$0xff] %vm34_vm0, %v162_v16 }
 0x1a0   :  { %v148_v18 = vsel %vm147_vm11, %v193_v6, %v144_v17 }
 0x1a1   :  { %v151_v19 = vmul.f32 %v148_v18, %v100_v41 }
 0x1a3   :  { %v157_v20 = vmul.f32 %v184_v62, %v151_v19 }
 0x1a5   :  { %v163_v21 = vadd.f32 %v185_v1, %v157_v20 }
 0x1a7   :  { %166 = vst.msk [vmem:[%s296_s6 + $0x10] sm:$0xf] %vm84_vm1, %v163_v21 }

// kernel: seq2seq_transformer_forward.30
= control target key start
LH: loop header
LB: loop body
LE: loop exit
PB: predicated region body
PF: predicated region fallthrough
CT: control target
= control target key end

     0   :  { %vm37_vm0 = vcmask 261120   ;;  %vm84_vm1 = vcmask 523264   ;;  %vm138_vm2 = vcmask 257024   ;;  %v256_v38 = vmov 32.0   ;;  %s375_s1 = inlined_call_operand.vmem [shape: f32[32,64], index: 1, kind: input, shape index: {}]   ;;  %s376_s3 = inlined_call_operand.vmem [shape: f32[64,32], index: 3, kind: input, shape index: {}]   ;;  %s377_s0 = inlined_call_operand.vmem [shape: f32[20,32], index: 0, kind: input, shape index: {}]   ;;  %s378_s2 = inlined_call_operand.vmem [shape: f32[1,64], index: 2, kind: input, shape index: {}]   ;;  %s379_s4 = inlined_call_operand.vmem [shape: f32[1,32], index: 4, kind: input, shape index: {}]   ;;  %s380_s5 = inlined_call_operand.vmem [shape: f32[1,32], index: 5, kind: input, shape index: {}]   ;;  %s381_s6 = inlined_call_operand.vmem [shape: f32[1,32], index: 6, kind: input, shape index: {}]   ;;  %s382_s7 = inlined_call_operand.vmem [shape: f32[20,32], index: 7, kind: output, shape index: {}]  }
   0x1   :  { %v32_v0 = vld [vmem:[%s375_s1 + $0x18] sm:$0xff]  ;;  %v31_v1 = vld [vmem:[%s375_s1 + $0x10] sm:$0xff]  ;;  %v30_v2 = vld [vmem:[%s375_s1 + $0x8] sm:$0xff]  ;;  %248 = vrcp.f32 %v256_v38 }
   0x2   :  { %59 = vmatpush.msra.mxu0 %v32_v0  ;;  %231 = vmatpush.msra.mxu3 %v32_v0  ;;  %v83_v3 = vld [vmem:[%s376_s3 + $0x38] sm:$0xff]  ;;  %v82_v4 = vld [vmem:[%s376_s3 + $0x30] sm:$0xff]  ;;  %v29_v5 = vld [vmem:[%s375_s1] sm:$0xff] }
   0x3   :  { %102 = vmatpush.msra.mxu1 %v83_v3  ;;  %235 = vmatpush.msra.mxu2 %v83_v3  ;;  %v26_v6 = vld [vmem:[%s377_s0] sm:$0xff]  ;;  %v27_v7 = vld [vmem:[%s377_s0 + $0x8] sm:$0xff]  ;;  %v79_v10 = vld [vmem:[%s376_s3 + $0x18] sm:$0xff] }
   0x4   :  { %60 = vmatpush.msra.mxu0 %v31_v1  ;;  %232 = vmatpush.msra.mxu3 %v31_v1  ;;  %v81_v8 = vld [vmem:[%s376_s3 + $0x28] sm:$0xff]  ;;  %v80_v9 = vld [vmem:[%s376_s3 + $0x20] sm:$0xff]  ;;  %v28_v11 = vld [vmem:[%s377_s0 + $0x10] sm:$0xf] }
   0x5   :  { %103 = vmatpush.msra.mxu1 %v82_v4  ;;  %236 = vmatpush.msra.mxu2 %v82_v4  ;;  %v78_v12 = vld [vmem:[%s376_s3 + $0x10] sm:$0xff]  ;;  %v77_v13 = vld [vmem:[%s376_s3 + $0x8] sm:$0xff]  ;;  %v76_v14 = vld [vmem:[%s376_s3] sm:$0xff] }
   0x6   :  { %61 = vmatpush.msra.mxu0 %v30_v2  ;;  %233 = vmatpush.msra.mxu3 %v30_v2  ;;  %v244_v15 = vld [vmem:[%s378_s2] ss:$0 sm:$0xff] }
   0x7   :  { %104 = vmatpush.msra.mxu1 %v81_v8  ;;  %237 = vmatpush.msra.mxu2 %v81_v8  ;;  %v245_v25 = vld [vmem:[%s379_s4] ss:$0 sm:$0xff]  ;;  %v249_v39 = vpop.eup %248 }
   0x8   :  { %62 = vmatpush.msra.mxu0 %v29_v5  ;;  %234 = vmatpush.msra.mxu3 %v29_v5  ;;  %v143_v40 = vmul.f32 32.0, %v249_v39  ;;  %vm147_vm3 = vweird.f32 %v249_v39 }
   0x9   :  { %225 = vmatmul.msk.f32.vlgmr.msra.gmra.mxu0 %vm37_vm0, %v26_v6  ;;  %226 = vmatmul.msk.f32.vlgmr.msra.gmra.mxu3 %vm37_vm0, %v27_v7 }
   0xa   :  { %105 = vmatpush.msra.mxu1 %v80_v9  ;;  %238 = vmatpush.msra.mxu2 %v80_v9  ;;  %v144_v41 = vsub.f32 1.0, %v143_v40  ;;  %v246_v9 = vld [vmem:[%s380_s5] ss:$0 sm:$0xff] }
   0xc   :  { %106 = vmatpush.msra.mxu1 %v79_v10  ;;  %239 = vmatpush.msra.mxu2 %v79_v10  ;;  %v145_v42 = vmul.f32 %v249_v39, %v144_v41 }
   0xe   :  { %107 = vmatpush.msra.mxu1 %v78_v12  ;;  %240 = vmatpush.msra.mxu2 %v78_v12  ;;  %v146_v43 = vadd.f32 %v249_v39, %v145_v42 }
  0x10   :  { %108 = vmatpush.msra.mxu1 %v77_v13  ;;  %241 = vmatpush.msra.mxu2 %v77_v13  ;;  %v148_v44 = vsel %vm147_vm3, %v249_v39, %v146_v43  ;;  %v247_v13 = vld [vmem:[%s381_s6] ss:$0 sm:$0xff] }
  0x11   :  { %227 = vmatmul.msk.f32.gmra.mxu3 %vm37_vm0, %v28_v11 }
  0x12   :  { %109 = vmatpush.msra.mxu1 %v76_v14  ;;  %242 = vmatpush.msra.mxu2 %v76_v14 }
  0x86   :  { %v64_v16 = vpop.f32.mrf.mxu0 }
  0x87   :  { %v65_v17 = vadd.f32 %v244_v15, %v64_v16 }
  0x89   :  { %v73_v18 = vmax.f32 %v65_v17, 0.0 }
  0x8b   :  { %228 = vmatmul.msk.f32.vlgmr.msra.gmra.mxu1 %vm84_vm1, %v73_v18 }
  0x8c   :  { %v67_v19 = vpop.f32.mrf.mxu3 }
  0x8d   :  { %v68_v20 = vadd.f32 %v244_v15, %v67_v19 }
  0x8f   :  { %v74_v21 = vmax.f32 %v68_v20, 0.0 }
  0x91   :  { %229 = vmatmul.msk.f32.vlgmr.msra.gmra.mxu2 %vm84_vm1, %v74_v21 }
  0x94   :  { %v70_v22 = vpop.f32.mrf.mxu3 }
  0x95   :  { %v71_v23 = vadd.f32 %v244_v15, %v70_v22 }
  0x97   :  { %v75_v24 = vmax.f32 %v71_v23, 0.0 }
  0x99   :  { %230 = vmatmul.msk.f32.gmra.mxu2 %vm84_vm1, %v75_v24 }
 0x108   :  { %v111_v26 = vpop.f32.mrf.mxu1 }
 0x109   :  { %v120_v27 = vadd.f32 %v111_v26, %v26_v6 }
 0x10b   :  { %v127_v28 = vadd.f32 %v245_v25, %v120_v27 }
 0x10d   :  { %v132_v29 = vsel %vm37_vm0, %v127_v28, 0.0 }
 0x10e   :  { %133 = vadd.xlane.f32.xlu0 %v132_v29 }
 0x114   :  { %v114_v30 = vpop.f32.mrf.mxu2 }
 0x115   :  { %v121_v31 = vadd.f32 %v114_v30, %v27_v7 }
 0x117   :  { %v128_v32 = vadd.f32 %v245_v25, %v121_v31 }
 0x119   :  { %v135_v33 = vsel %vm37_vm0, %v128_v32, 0.0 }
 0x11a   :  { %136 = vadd.xlane.f32.xlu0 %v135_v33 }
 0x11c   :  { %v117_v34 = vpop.f32.mrf.mxu2 }
 0x11d   :  { %v122_v35 = vadd.f32 %v117_v34, %v28_v11 }
 0x11f   :  { %v129_v36 = vadd.f32 %v245_v25, %v122_v35 }
 0x121   :  { %v139_v37 = vsel %vm138_vm2, %v129_v36, 0.0 }
 0x122   :  { %140 = vadd.xlane.f32.xlu1 %v139_v37 }
 0x181   :  { %v134_v45 = vpop.xlane.xlu0 %133 }
 0x182   :  { %v149_v46 = vmul.f32 %v148_v44, %v134_v45 }
 0x184   :  { %v152_v47 = vsub.f32 %v127_v28, %v149_v46 }
 0x186   :  { %v155_v48 = vmul.f32 %v152_v47, %v152_v47 }
 0x188   :  { %v158_v49 = vsel %vm37_vm0, %v155_v48, 0.0 }
 0x189   :  { %159 = vadd.xlane.f32.xlu1 %v158_v49 }
 0x18d   :  { %v137_v50 = vpop.xlane.xlu0 %136 }
 0x18e   :  { %v150_v51 = vmul.f32 %v148_v44, %v137_v50 }
 0x190   :  { %v153_v52 = vsub.f32 %v128_v32, %v150_v51 }
 0x192   :  { %v156_v53 = vmul.f32 %v153_v52, %v153_v52 }
 0x194   :  { %v161_v54 = vsel %vm37_vm0, %v156_v53, 0.0 }
 0x195   :  { %v141_v55 = vpop.xlane.xlu1 %140  ;;  %162 = vadd.xlane.f32.xlu2 %v161_v54 }
 0x196   :  { %v151_v56 = vmul.f32 %v148_v44, %v141_v55 }
 0x198   :  { %v154_v57 = vsub.f32 %v129_v36, %v151_v56 }
 0x19a   :  { %v157_v58 = vmul.f32 %v154_v57, %v154_v57 }
 0x19c   :  { %v164_v59 = vsel %vm138_vm2, %v157_v58, 0.0 }
 0x19d   :  { %165 = vadd.xlane.f32.xlu2 %v164_v59 }
 0x1fc   :  { %v160_v60 = vpop.xlane.xlu1 %159 }
 0x1fd   :  { %v167_v61 = vmul.f32 %v160_v60, %v148_v44 }
 0x1ff   :  { %v170_v62 = vadd.f32 1e-05, %v167_v61 }
 0x201   :  { %250 = vrsqrt.f32 %v170_v62  ;;  %vm179_vm5 = vweird.f32 %v170_v62 }
 0x207   :  { %v251_v63 = vpop.eup %250 }
 0x208   :  { %v174_v0 = vmul.f32 %v251_v63, %v170_v62  ;;  %v163_v1 = vpop.xlane.xlu2 %162  ;;  %vm180_vm4 = vweird.f32 %v251_v63 }
 0x209   :  { %v168_v2 = vmul.f32 %v163_v1, %v148_v44  ;;  %vm181_vm6 = vmor %vm179_vm5, %vm180_vm4 }
 0x20a   :  { %v175_v3 = vmul.f32 %v251_v63, %v174_v0 }
 0x20b   :  { %v171_v4 = vadd.f32 1e-05, %v168_v2 }
 0x20c   :  { %v176_v5 = vmul.f32 0.5, %v175_v3 }
 0x20d   :  { %252 = vrsqrt.f32 %v171_v4  ;;  %vm189_vm8 = vweird.f32 %v171_v4 }
 0x20e   :  { %v177_v6 = vsub.f32 1.5, %v176_v5 }
 0x210   :  { %v178_v7 = vmul.f32 %v251_v63, %v177_v6  ;;  %v166_v8 = vpop.xlane.xlu2 %165 }
 0x211   :  { %v169_v10 = vmul.f32 %v166_v8, %v148_v44 }
 0x212   :  { %v182_v11 = vsel %vm181_vm6, %v251_v63, %v178_v7 }
 0x213   :  { %v253_v12 = vpop.eup %252  ;;  %v203_v14 = vmul.f32 %v182_v11, %v152_v47  ;;  %v172_v15 = vadd.f32 1e-05, %v169_v10 }
 0x214   :  { %v184_v16 = vmul.f32 %v253_v12, %v171_v4  ;;  %vm190_vm7 = vweird.f32 %v253_v12 }
 0x215   :  { %v209_v17 = vmul.f32 %v246_v9, %v203_v14  ;;  %254 = vrsqrt.f32 %v172_v15  ;;  %vm191_vm9 = vmor %vm189_vm8, %vm190_vm7  ;;  %vm199_vm11 = vweird.f32 %v172_v15 }
 0x216   :  { %v185_v18 = vmul.f32 %v253_v12, %v184_v16 }
 0x217   :  { %v215_v19 = vadd.f32 %v247_v13, %v209_v17 }
 0x218   :  { %v186_v20 = vmul.f32 0.5, %v185_v18 }
 0x219   :  { %218 = vst.msk [vmem:[%s382_s7] sm:$0xff] %vm37_vm0, %v215_v19 }
 0x21a   :  { %v187_v21 = vsub.f32 1.5, %v186_v20 }
 0x21b   :  { %v255_v22 = vpop.eup %254 }
 0x21c   :  { %v188_v23 = vmul.f32 %v253_v12, %v187_v21  ;;  %v194_v24 = vmul.f32 %v255_v22, %v172_v15  ;;  %vm200_vm10 = vweird.f32 %v255_v22 }
 0x21d   :  { %vm201_vm12 = vmor %vm199_vm11, %vm200_vm10 }
 0x21e   :  { %v192_v25 = vsel %vm191_vm9, %v253_v12, %v188_v23  ;;  %v195_v26 = vmul.f32 %v255_v22, %v194_v24 }
 0x21f   :  { %v204_v27 = vmul.f32 %v192_v25, %v153_v52 }
 0x220   :  { %v196_v28 = vmul.f32 0.5, %v195_v26 }
 0x221   :  { %v210_v29 = vmul.f32 %v246_v9, %v204_v27 }
 0x222   :  { %v197_v30 = vsub.f32 1.5, %v196_v28 }
 0x223   :  { %v216_v31 = vadd.f32 %v247_v13, %v210_v29 }
 0x224   :  { %v198_v32 = vmul.f32 %v255_v22, %v197_v30 }
 0x225   :  { %219 = vst.msk [vmem:[%s382_s7 + $0x8] sm:$0xff] %vm37_vm0, %v216_v31 }
 0x226   :  { %v202_v33 = vsel %vm201_vm12, %v255_v22, %v198_v32 }
 0x227   :  { %v205_v34 = vmul.f32 %v202_v33, %v154_v57 }
 0x229   :  { %v211_v35 = vmul.f32 %v246_v9, %v205_v34 }
 0x22b   :  { %v217_v36 = vadd.f32 %v247_v13, %v211_v35 }
 0x22d   :  { %220 = vst.msk [vmem:[%s382_s7 + $0x10] sm:$0xf] %vm138_vm2, %v217_v36 }

// kernel: seq2seq_transformer_forward.35
= control target key start
LH: loop header
LB: loop body
LE: loop exit
PB: predicated region body
PF: predicated region fallthrough
CT: control target
= control target key end

     0   :  { %vm19_vm0 = vcmask 261120   ;;  %vm26_vm1 = vcmask 257024   ;;  %v124_v6 = vmov 32.0   ;;  %s178_s0 = inlined_call_operand.vmem [shape: f32[20,32], index: 0, kind: input, shape index: {}]   ;;  %s179_s1 = inlined_call_operand.vmem [shape: f32[1,32], index: 1, kind: input, shape index: {}]   ;;  %s180_s2 = inlined_call_operand.vmem [shape: f32[1,32], index: 2, kind: input, shape index: {}]   ;;  %s181_s3 = inlined_call_operand.vmem [shape: f32[20,32], index: 3, kind: output, shape index: {}]  }
   0x1   :  { %v14_v0 = vld [vmem:[%s178_s0] sm:$0xff]  ;;  %v16_v1 = vld [vmem:[%s178_s0 + $0x10] sm:$0xf]  ;;  %v15_v4 = vld [vmem:[%s178_s0 + $0x8] sm:$0xff]  ;;  %116 = vrcp.f32 %v124_v6 }
   0x2   :  { %v20_v2 = vsel %vm19_vm0, %v14_v0, 0.0  ;;  %v27_v3 = vsel %vm26_vm1, %v16_v1, 0.0  ;;  %v23_v5 = vsel %vm19_vm0, %v15_v4, 0.0  ;;  %v114_v45 = vld [vmem:[%s179_s1] ss:$0 sm:$0xff] }
   0x3   :  { %21 = vadd.xlane.f32.xlu0 %v20_v2  ;;  %28 = vadd.xlane.f32.xlu1 %v27_v3  ;;  %v115_v48 = vld [vmem:[%s180_s2] ss:$0 sm:$0xff] }
   0x7   :  { %v117_v7 = vpop.eup %116 }
   0x8   :  { %v31_v8 = vmul.f32 32.0, %v117_v7  ;;  %vm35_vm2 = vweird.f32 %v117_v7 }
   0xa   :  { %v32_v9 = vsub.f32 1.0, %v31_v8 }
   0xb   :  { %24 = vadd.xlane.f32.xlu0 %v23_v5 }
   0xc   :  { %v33_v10 = vmul.f32 %v117_v7, %v32_v9 }
   0xe   :  { %v34_v11 = vadd.f32 %v117_v7, %v33_v10 }
  0x10   :  { %v36_v12 = vsel %vm35_vm2, %v117_v7, %v34_v11 }
  0x76   :  { %v22_v13 = vpop.xlane.xlu0 %21  ;;  %v29_v17 = vpop.xlane.xlu1 %28 }
  0x77   :  { %v37_v14 = vmul.f32 %v36_v12, %v22_v13  ;;  %v39_v21 = vmul.f32 %v36_v12, %v29_v17 }
  0x79   :  { %v40_v15 = vsub.f32 %v14_v0, %v37_v14  ;;  %v42_v23 = vsub.f32 %v16_v1, %v39_v21 }
  0x7b   :  { %v43_v16 = vmul.f32 %v40_v15, %v40_v15  ;;  %v45_v26 = vmul.f32 %v42_v23, %v42_v23 }
  0x7d   :  { %v46_v18 = vsel %vm19_vm0, %v43_v16, 0.0  ;;  %v52_v27 = vsel %vm26_vm1, %v45_v26, 0.0 }
  0x7e   :  { %47 = vadd.xlane.f32.xlu1 %v46_v18  ;;  %v25_v19 = vpop.xlane.xlu0 %24 }
  0x7f   :  { %v38_v20 = vmul.f32 %v36_v12, %v25_v19 }
  0x81   :  { %v41_v22 = vsub.f32 %v15_v4, %v38_v20 }
  0x83   :  { %v44_v24 = vmul.f32 %v41_v22, %v41_v22 }
  0x85   :  { %v49_v25 = vsel %vm19_vm0, %v44_v24, 0.0 }
  0x86   :  { %50 = vadd.xlane.f32.xlu2 %v49_v25 }
  0x8e   :  { %53 = vadd.xlane.f32.xlu2 %v52_v27 }
  0xf1   :  { %v48_v28 = vpop.xlane.xlu1 %47 }
  0xf2   :  { %v55_v29 = vmul.f32 %v48_v28, %v36_v12 }
  0xf4   :  { %v58_v30 = vadd.f32 1e-05, %v55_v29 }
  0xf6   :  { %118 = vrsqrt.f32 %v58_v30  ;;  %vm67_vm4 = vweird.f32 %v58_v30 }
  0xf9   :  { %v51_v31 = vpop.xlane.xlu2 %50 }
  0xfa   :  { %v56_v32 = vmul.f32 %v51_v31, %v36_v12 }
  0xfc   :  { %v119_v33 = vpop.eup %118  ;;  %v59_v34 = vadd.f32 1e-05, %v56_v32 }
  0xfd   :  { %v62_v35 = vmul.f32 %v119_v33, %v58_v30  ;;  %vm68_vm3 = vweird.f32 %v119_v33 }
  0xfe   :  { %120 = vrsqrt.f32 %v59_v34  ;;  %vm69_vm5 = vmor %vm67_vm4, %vm68_vm3  ;;  %vm77_vm7 = vweird.f32 %v59_v34 }
  0xff   :  { %v63_v36 = vmul.f32 %v119_v33, %v62_v35 }
 0x101   :  { %v64_v37 = vmul.f32 0.5, %v63_v36  ;;  %v54_v38 = vpop.xlane.xlu2 %53 }
 0x102   :  { %v57_v39 = vmul.f32 %v54_v38, %v36_v12 }
 0x103   :  { %v65_v40 = vsub.f32 1.5, %v64_v37 }
 0x104   :  { %v121_v41 = vpop.eup %120  ;;  %v60_v42 = vadd.f32 1e-05, %v57_v39 }
 0x105   :  { %v66_v43 = vmul.f32 %v119_v33, %v65_v40  ;;  %v72_v44 = vmul.f32 %v121_v41, %v59_v34  ;;  %vm78_vm6 = vweird.f32 %v121_v41 }
 0x106   :  { %122 = vrsqrt.f32 %v60_v42  ;;  %vm79_vm8 = vmor %vm77_vm7, %vm78_vm6  ;;  %vm87_vm10 = vweird.f32 %v60_v42 }
 0x107   :  { %v70_v46 = vsel %vm69_vm5, %v119_v33, %v66_v43  ;;  %v73_v47 = vmul.f32 %v121_v41, %v72_v44 }
 0x108   :  { %v91_v49 = vmul.f32 %v70_v46, %v40_v15 }
 0x109   :  { %v74_v50 = vmul.f32 0.5, %v73_v47 }
 0x10a   :  { %v97_v51 = vmul.f32 %v114_v45, %v91_v49 }
 0x10b   :  { %v75_v52 = vsub.f32 1.5, %v74_v50 }
 0x10c   :  { %v123_v53 = vpop.eup %122  ;;  %v103_v54 = vadd.f32 %v115_v48, %v97_v51 }
 0x10d   :  { %v76_v55 = vmul.f32 %v121_v41, %v75_v52  ;;  %v82_v56 = vmul.f32 %v123_v53, %v60_v42  ;;  %vm88_vm9 = vweird.f32 %v123_v53 }
 0x10e   :  { %106 = vst.msk [vmem:[%s181_s3] sm:$0xff] %vm19_vm0, %v103_v54  ;;  %vm89_vm11 = vmor %vm87_vm10, %vm88_vm9 }
 0x10f   :  { %v80_v57 = vsel %vm79_vm8, %v121_v41, %v76_v55  ;;  %v83_v58 = vmul.f32 %v123_v53, %v82_v56 }
 0x110   :  { %v92_v59 = vmul.f32 %v80_v57, %v41_v22 }
 0x111   :  { %v84_v60 = vmul.f32 0.5, %v83_v58 }
 0x112   :  { %v98_v61 = vmul.f32 %v114_v45, %v92_v59 }
 0x113   :  { %v85_v62 = vsub.f32 1.5, %v84_v60 }
 0x114   :  { %v104_v63 = vadd.f32 %v115_v48, %v98_v61 }
 0x115   :  { %v86_v0 = vmul.f32 %v123_v53, %v85_v62 }
 0x116   :  { %107 = vst.msk [vmem:[%s181_s3 + $0x8] sm:$0xff] %vm19_vm0, %v104_v63 }
 0x117   :  { %v90_v1 = vsel %vm89_vm11, %v123_v53, %v86_v0 }
 0x118   :  { %v93_v2 = vmul.f32 %v90_v1, %v42_v23 }
 0x11a   :  { %v99_v3 = vmul.f32 %v114_v45, %v93_v2 }
 0x11c   :  { %v105_v4 = vadd.f32 %v115_v48, %v99_v3 }
 0x11e   :  { %108 = vst.msk [vmem:[%s181_s3 + $0x10] sm:$0xf] %vm26_vm1, %v105_v4 }

// kernel: seq2seq_transformer_forward.40
= control target key start
LH: loop header
LB: loop body
LE: loop exit
PB: predicated region body
PF: predicated region fallthrough
CT: control target
= control target key end

     0   :  { %vm25_vm0 = vcmask 261120   ;;  %vm61_vm1 = vcmask 523264   ;;  %vm64_vm2 = vcmask 519168   ;;  %s135_s1 = inlined_call_operand.vmem [shape: f32[32,64], index: 1, kind: input, shape index: {}]   ;;  %s136_s2 = inlined_call_operand.vmem [shape: f32[1,64], index: 2, kind: input, shape index: {}]   ;;  %s137_s0 = inlined_call_operand.vmem [shape: f32[20,32], index: 0, kind: input, shape index: {}]   ;;  %s138_s3 = inlined_call_operand.vmem [shape: f32[20,64], index: 3, kind: output, shape index: {}]  }
   0x1   :  { %v20_v0 = vld [vmem:[%s135_s1 + $0x18] sm:$0xff]  ;;  %v19_v1 = vld [vmem:[%s135_s1 + $0x10] sm:$0xff]  ;;  %v18_v2 = vld [vmem:[%s135_s1 + $0x8] sm:$0xff] }
   0x2   :  { %74 = vmatpush.msra.mxu2 %v20_v0  ;;  %47 = vmatpush.msra.mxu0 %v20_v0  ;;  %v17_v3 = vld [vmem:[%s135_s1] sm:$0xff]  ;;  %v16_v4 = vld [vmem:[%s137_s0 + $0x10] sm:$0xf]  ;;  %v15_v6 = vld [vmem:[%s137_s0 + $0x8] sm:$0xff] }
   0x3   :  { %73 = vmatpush.msra.mxu1 %v20_v0  ;;  %v14_v5 = vld [vmem:[%s137_s0] sm:$0xff] }
   0x4   :  { %76 = vmatpush.msra.mxu2 %v19_v1  ;;  %48 = vmatpush.msra.mxu0 %v19_v1  ;;  %v81_v7 = vld [vmem:[%s136_s2] ss:$0 sm:$0xff] }
   0x5   :  { %75 = vmatpush.msra.mxu1 %v19_v1 }
   0x6   :  { %78 = vmatpush.msra.mxu2 %v18_v2  ;;  %49 = vmatpush.msra.mxu0 %v18_v2 }
   0x7   :  { %77 = vmatpush.msra.mxu1 %v18_v2 }
   0x8   :  { %80 = vmatpush.msra.mxu2 %v17_v3  ;;  %50 = vmatpush.msra.mxu0 %v17_v3 }
   0x9   :  { %72 = vmatmul.msk.f32.vlgmr.msra.gmra.mxu2 %vm25_vm0, %v16_v4  ;;  %79 = vmatpush.msra.mxu1 %v17_v3 }
   0xa   :  { %70 = vmatmul.msk.f32.vlgmr.msra.gmra.mxu0 %vm25_vm0, %v14_v5  ;;  %71 = vmatmul.msk.f32.vlgmr.msra.gmra.mxu1 %vm25_vm0, %v15_v6 }
  0x87   :  { %v52_v8 = vpop.f32.mrf.mxu0  ;;  %v55_v9 = vpop.f32.mrf.mxu1 }
  0x88   :  { %v53_v10 = vadd.f32 %v81_v7, %v52_v8  ;;  %v56_v11 = vadd.f32 %v81_v7, %v55_v9 }
  0x8a   :  { %62 = vst.msk [vmem:[%s138_s3] sm:$0xff] %vm61_vm1, %v53_v10 }
  0x8b   :  { %63 = vst.msk [vmem:[%s138_s3 + $0x8] sm:$0xff] %vm61_vm1, %v56_v11 }
  0x8c   :  { %v58_v12 = vpop.f32.mrf.mxu2 }
  0x8d   :  { %v59_v13 = vadd.f32 %v81_v7, %v58_v12 }
  0x8f   :  { %65 = vst.msk [vmem:[%s138_s3 + $0x10] sm:$0xf] %vm64_vm2, %v59_v13 }

// kernel: seq2seq_transformer_forward.36
= control target key start
LH: loop header
LB: loop body
LE: loop exit
PB: predicated region body
PF: predicated region fallthrough
CT: control target
= control target key end

     0   :  { %vm24_vm0 = vcmask 261120   ;;  %vm54_vm1 = vcmask 785408   ;;  %s115_s1 = inlined_call_operand.vmem [shape: f32[32,96], index: 1, kind: input, shape index: {}]   ;;  %s116_s2 = inlined_call_operand.vmem [shape: f32[1,96], index: 2, kind: input, shape index: {}]   ;;  %s117_s0 = inlined_call_operand.vmem [shape: f32[16,32], index: 0, kind: input, shape index: {}]   ;;  %s118_s3 = inlined_call_operand.vmem [shape: f32[16,96], index: 3, kind: output, shape index: {}]  }
   0x1   :  { %v19_v0 = vld [vmem:[%s115_s1 + $0x18] sm:$0xff]  ;;  %v18_v1 = vld [vmem:[%s115_s1 + $0x10] sm:$0xff]  ;;  %v17_v2 = vld [vmem:[%s115_s1 + $0x8] sm:$0xff] }
   0x2   :  { %43 = vmatpush.msra.mxu0 %v19_v0  ;;  %63 = vmatpush.msra.mxu1 %v19_v0  ;;  %v16_v3 = vld [vmem:[%s115_s1] sm:$0xff]  ;;  %v15_v5 = vld [vmem:[%s117_s0 + $0x8] sm:$0xff] }
   0x3   :  { %v14_v4 = vld [vmem:[%s117_s0] sm:$0xff] }
   0x4   :  { %44 = vmatpush.msra.mxu0 %v18_v1  ;;  %64 = vmatpush.msra.mxu1 %v18_v1  ;;  %v67_v6 = vld [vmem:[%s116_s2] ss:$0 sm:$0xff] }
   0x6   :  { %45 = vmatpush.msra.mxu0 %v17_v2  ;;  %65 = vmatpush.msra.mxu1 %v17_v2 }
   0x8   :  { %46 = vmatpush.msra.mxu0 %v16_v3  ;;  %66 = vmatpush.msra.mxu1 %v16_v3 }
   0x9   :  { %61 = vmatmul.msk.f32.vlgmr.msra.gmra.mxu0 %vm24_vm0, %v14_v4  ;;  %62 = vmatmul.msk.f32.vlgmr.msra.gmra.mxu1 %vm24_vm0, %v15_v5 }
  0x86   :  { %v48_v7 = vpop.f32.mrf.mxu0  ;;  %v51_v8 = vpop.f32.mrf.mxu1 }
  0x87   :  { %v49_v9 = vadd.f32 %v67_v6, %v48_v7  ;;  %v52_v10 = vadd.f32 %v67_v6, %v51_v8 }
  0x89   :  { %55 = vst.msk [vmem:[%s118_s3] sm:$0xff] %vm54_vm1, %v49_v9 }
  0x8a   :  { %56 = vst.msk [vmem:[%s118_s3 + $0x8] sm:$0xff] %vm54_vm1, %v52_v10 }

// kernel: seq2seq_transformer_forward.38
= control target key start
LH: loop header
LB: loop body
LE: loop exit
PB: predicated region body
PF: predicated region fallthrough
CT: control target
= control target key end

     0   :  { %vm33_vm0 = vcmask 261120   ;;  %v152_v17 = vmov 32.0   ;;  %s235_s1 = inlined_call_operand.vmem [shape: f32[32,32], index: 1, kind: input, shape index: {}]   ;;  %s236_s2 = inlined_call_operand.vmem [shape: f32[1,32], index: 2, kind: input, shape index: {}]   ;;  %s237_s0 = inlined_call_operand.vmem [shape: f32[16,32], index: 0, kind: input, shape index: {}]   ;;  %s238_s3 = inlined_call_operand.vmem [shape: f32[16,32], index: 3, kind: input, shape index: {}]   ;;  %s239_s4 = inlined_call_operand.vmem [shape: f32[1,32], index: 4, kind: input, shape index: {}]   ;;  %s240_s5 = inlined_call_operand.vmem [shape: f32[1,32], index: 5, kind: input, shape index: {}]   ;;  %s241_s6 = inlined_call_operand.vmem [shape: f32[16,32], index: 6, kind: output, shape index: {}]  }
   0x1   :  { %v28_v0 = vld [vmem:[%s235_s1 + $0x18] sm:$0xff]  ;;  %v27_v1 = vld [vmem:[%s235_s1 + $0x10] sm:$0xff]  ;;  %v26_v2 = vld [vmem:[%s235_s1 + $0x8] sm:$0xff]  ;;  %146 = vrcp.f32 %v152_v17 }
   0x2   :  { %52 = vmatpush.msra.mxu0 %v28_v0  ;;  %138 = vmatpush.msra.mxu1 %v28_v0  ;;  %v25_v3 = vld [vmem:[%s235_s1] sm:$0xff]  ;;  %v24_v5 = vld [vmem:[%s237_s0 + $0x8] sm:$0xff] }
   0x3   :  { %v23_v4 = vld [vmem:[%s237_s0] sm:$0xff]  ;;  %v64_v13 = vld [vmem:[%s238_s3 + $0x8] sm:$0xff] }
   0x4   :  { %53 = vmatpush.msra.mxu0 %v27_v1  ;;  %139 = vmatpush.msra.mxu1 %v27_v1  ;;  %v143_v6 = vld [vmem:[%s236_s2] ss:$0 sm:$0xff] }
   0x5   :  { %v63_v8 = vld [vmem:[%s238_s3] sm:$0xff] }
   0x6   :  { %54 = vmatpush.msra.mxu0 %v26_v2  ;;  %140 = vmatpush.msra.mxu1 %v26_v2  ;;  %v144_v48 = vld [vmem:[%s239_s4] ss:$0 sm:$0xff] }
   0x7   :  { %v147_v18 = vpop.eup %146  ;;  %v145_v51 = vld [vmem:[%s240_s5] ss:$0 sm:$0xff] }
   0x8   :  { %55 = vmatpush.msra.mxu0 %v25_v3  ;;  %141 = vmatpush.msra.mxu1 %v25_v3  ;;  %v76_v19 = vmul.f32 32.0, %v147_v18  ;;  %vm80_vm1 = vweird.f32 %v147_v18 }
   0x9   :  { %136 = vmatmul.msk.f32.vlgmr.msra.gmra.mxu0 %vm33_vm0, %v23_v4  ;;  %137 = vmatmul.msk.f32.vlgmr.msra.gmra.mxu1 %vm33_vm0, %v24_v5 }
   0xa   :  { %v77_v20 = vsub.f32 1.0, %v76_v19 }
   0xc   :  { %v78_v21 = vmul.f32 %v147_v18, %v77_v20 }
   0xe   :  { %v79_v22 = vadd.f32 %v147_v18, %v78_v21 }
  0x10   :  { %v81_v23 = vsel %vm80_vm1, %v147_v18, %v79_v22 }
  0x86   :  { %v57_v7 = vpop.f32.mrf.mxu0  ;;  %v60_v9 = vpop.f32.mrf.mxu1 }
  0x87   :  { %v58_v10 = vadd.f32 %v143_v6, %v57_v7  ;;  %v61_v12 = vadd.f32 %v143_v6, %v60_v9 }
  0x89   :  { %v65_v11 = vadd.f32 %v63_v8, %v58_v10  ;;  %v66_v15 = vadd.f32 %v64_v13, %v61_v12 }
  0x8b   :  { %v69_v14 = vsel %vm33_vm0, %v65_v11, 0.0  ;;  %v72_v16 = vsel %vm33_vm0, %v66_v15, 0.0 }
  0x8c   :  { %70 = vadd.xlane.f32.xlu0 %v69_v14 }
  0x94   :  { %73 = vadd.xlane.f32.xlu0 %v72_v16 }
  0xff   :  { %v71_v24 = vpop.xlane.xlu0 %70 }
 0x100   :  { %v82_v25 = vmul.f32 %v81_v23, %v71_v24 }
 0x102   :  { %v84_v26 = vsub.f32 %v65_v11, %v82_v25 }
 0x104   :  { %v86_v27 = vmul.f32 %v84_v26, %v84_v26 }
 0x106   :  { %v88_v28 = vsel %vm33_vm0, %v86_v27, 0.0 }
 0x107   :  { %89 = vadd.xlane.f32.xlu1 %v88_v28  ;;  %v74_v29 = vpop.xlane.xlu0 %73 }
 0x108   :  { %v83_v30 = vmul.f32 %v81_v23, %v74_v29 }
 0x10a   :  { %v85_v31 = vsub.f32 %v66_v15, %v83_v30 }
 0x10c   :  { %v87_v32 = vmul.f32 %v85_v31, %v85_v31 }
 0x10e   :  { %v91_v33 = vsel %vm33_vm0, %v87_v32, 0.0 }
 0x10f   :  { %92 = vadd.xlane.f32.xlu1 %v91_v33 }
 0x17a   :  { %v90_v34 = vpop.xlane.xlu1 %89 }
 0x17b   :  { %v94_v35 = vmul.f32 %v90_v34, %v81_v23 }
 0x17d   :  { %v96_v36 = vadd.f32 1e-05, %v94_v35 }
 0x17f   :  { %148 = vrsqrt.f32 %v96_v36  ;;  %vm104_vm3 = vweird.f32 %v96_v36 }
 0x182   :  { %v93_v37 = vpop.xlane.xlu1 %92 }
 0x183   :  { %v95_v38 = vmul.f32 %v93_v37, %v81_v23 }
 0x185   :  { %v149_v39 = vpop.eup %148  ;;  %v97_v40 = vadd.f32 1e-05, %v95_v38 }
 0x186   :  { %v99_v41 = vmul.f32 %v149_v39, %v96_v36  ;;  %vm105_vm2 = vweird.f32 %v149_v39 }
 0x187   :  { %150 = vrsqrt.f32 %v97_v40  ;;  %vm106_vm4 = vmor %vm104_vm3, %vm105_vm2  ;;  %vm114_vm6 = vweird.f32 %v97_v40 }
 0x188   :  { %v100_v42 = vmul.f32 %v149_v39, %v99_v41 }
 0x18a   :  { %v101_v43 = vmul.f32 0.5, %v100_v42 }
 0x18c   :  { %v102_v44 = vsub.f32 1.5, %v101_v43 }
 0x18d   :  { %v151_v45 = vpop.eup %150 }
 0x18e   :  { %v103_v46 = vmul.f32 %v149_v39, %v102_v44  ;;  %v109_v47 = vmul.f32 %v151_v45, %v97_v40  ;;  %vm115_vm5 = vweird.f32 %v151_v45 }
 0x18f   :  { %vm116_vm7 = vmor %vm114_vm6, %vm115_vm5 }
 0x190   :  { %v107_v49 = vsel %vm106_vm4, %v149_v39, %v103_v46  ;;  %v110_v50 = vmul.f32 %v151_v45, %v109_v47 }
 0x191   :  { %v118_v52 = vmul.f32 %v107_v49, %v84_v26 }
 0x192   :  { %v111_v53 = vmul.f32 0.5, %v110_v50 }
 0x193   :  { %v123_v54 = vmul.f32 %v144_v48, %v118_v52 }
 0x194   :  { %v112_v55 = vsub.f32 1.5, %v111_v53 }
 0x195   :  { %v128_v56 = vadd.f32 %v145_v51, %v123_v54 }
 0x196   :  { %v113_v57 = vmul.f32 %v151_v45, %v112_v55 }
 0x197   :  { %130 = vst.msk [vmem:[%s241_s6] sm:$0xff] %vm33_vm0, %v128_v56 }
 0x198   :  { %v117_v58 = vsel %vm116_vm7, %v151_v45, %v113_v57 }
 0x199   :  { %v119_v59 = vmul.f32 %v117_v58, %v85_v31 }
 0x19b   :  { %v124_v60 = vmul.f32 %v144_v48, %v119_v59 }
 0x19d   :  { %v129_v61 = vadd.f32 %v145_v51, %v124_v60 }
 0x19f   :  { %131 = vst.msk [vmem:[%s241_s6 + $0x8] sm:$0xff] %vm33_vm0, %v129_v61 }

// kernel: seq2seq_transformer_forward.39
= control target key start
LH: loop header
LB: loop body
LE: loop exit
PB: predicated region body
PF: predicated region fallthrough
CT: control target
= control target key end

     0   :  { %vm24_vm0 = vcmask 261120   ;;  %s114_s1 = inlined_call_operand.vmem [shape: f32[32,32], index: 1, kind: input, shape index: {}]   ;;  %s115_s2 = inlined_call_operand.vmem [shape: f32[1,32], index: 2, kind: input, shape index: {}]   ;;  %s116_s0 = inlined_call_operand.vmem [shape: f32[16,32], index: 0, kind: input, shape index: {}]   ;;  %s117_s3 = inlined_call_operand.vmem [shape: f32[16,32], index: 3, kind: output, shape index: {}]  }
   0x1   :  { %v19_v0 = vld [vmem:[%s114_s1 + $0x18] sm:$0xff]  ;;  %v18_v1 = vld [vmem:[%s114_s1 + $0x10] sm:$0xff]  ;;  %v17_v2 = vld [vmem:[%s114_s1 + $0x8] sm:$0xff] }
   0x2   :  { %43 = vmatpush.msra.mxu0 %v19_v0  ;;  %62 = vmatpush.msra.mxu1 %v19_v0  ;;  %v16_v3 = vld [vmem:[%s114_s1] sm:$0xff]  ;;  %v15_v5 = vld [vmem:[%s116_s0 + $0x8] sm:$0xff] }
   0x3   :  { %v14_v4 = vld [vmem:[%s116_s0] sm:$0xff] }
   0x4   :  { %44 = vmatpush.msra.mxu0 %v18_v1  ;;  %63 = vmatpush.msra.mxu1 %v18_v1  ;;  %v66_v6 = vld [vmem:[%s115_s2] ss:$0 sm:$0xff] }
   0x6   :  { %45 = vmatpush.msra.mxu0 %v17_v2  ;;  %64 = vmatpush.msra.mxu1 %v17_v2 }
   0x8   :  { %46 = vmatpush.msra.mxu0 %v16_v3  ;;  %65 = vmatpush.msra.mxu1 %v16_v3 }
   0x9   :  { %60 = vmatmul.msk.f32.vlgmr.msra.gmra.mxu0 %vm24_vm0, %v14_v4  ;;  %61 = vmatmul.msk.f32.vlgmr.msra.gmra.mxu1 %vm24_vm0, %v15_v5 }
  0x86   :  { %v48_v7 = vpop.f32.mrf.mxu0  ;;  %v51_v8 = vpop.f32.mrf.mxu1 }
  0x87   :  { %v49_v9 = vadd.f32 %v66_v6, %v48_v7  ;;  %v52_v10 = vadd.f32 %v66_v6, %v51_v8 }
  0x89   :  { %54 = vst.msk [vmem:[%s117_s3] sm:$0xff] %vm24_vm0, %v49_v9 }
  0x8a   :  { %55 = vst.msk [vmem:[%s117_s3 + $0x8] sm:$0xff] %vm24_vm0, %v52_v10 }

// kernel: seq2seq_transformer_forward.37
= control target key start
LH: loop header
LB: loop body
LE: loop exit
PB: predicated region body
PF: predicated region fallthrough
CT: control target
= control target key end

     0   :  { %s701_s15 = smov 0   ;;  %s757_s0 = inlined_call_operand.vmem [shape: f32[2,4,8,8], index: 0, kind: input, shape index: {}]   ;;  %s758_s1 = inlined_call_operand.vmem [shape: f32[2,4,8,8], index: 1, kind: input, shape index: {}]   ;;  %s759_s2 = inlined_call_operand.vmem [shape: f32[2,4,8,8], index: 2, kind: input, shape index: {}]   ;;  %s760_s3 = inlined_call_operand.vmem [shape: f32[2,8,8], index: 3, kind: input, shape index: {}]   ;;  %s761_s4 = inlined_call_operand.vmem [shape: f32[2,4,8,8], index: 4, kind: output, shape index: {}]  }
   0x1 LB: > { %s612_s16 = sadd.s32 4294967295, %s674_s15   ;;  %p616_p0 = scmp.ge.s32.totalorder %s674_s15, 1  ;;  %s674_s15 = sphi %s701_s15, %s14_s15  }
   0x2   : > { %p191_p1 = scmp.lt.s32.totalorder %s674_s15, 3 }
   0x4   : > { %p192_p2 = pnand %p616_p0, %p191_p1 }
   0x5   : > { %p231_p3 = scmp.lt.s32.totalorder (!%p192_p2), %s612_s16, 1 }
   0x6   : > { %195 = sbr.rel (%p192_p2) target bundleno = 549 (0x225), region = 36 }
   0xb   : > { %s763_s16 = smov (!%p231_p3, %s612_s16), 1  ;;  %vm268_vm0 = vcmask 64512  }
   0xc   : > { %s709_s17 = sshll.u32 %s763_s16, 5  ;;  %s623_s24 = sshll.u32 %s763_s16, 3 }
   0xd   : > { %s240_s20 = scalar_lea.vmem %s758_s1, %s709_s17  ;;  %s235_s23 = scalar_lea.vmem %s757_s0, %s709_s17 }
   0xe   : > { %v259_v0 = vld [vmem:[%s240_s20] sm:$0xff]  ;;  %v261_v1 = vld [vmem:[%s240_s20 + $0x10] sm:$0xff]  ;;  %v260_v4 = vld [vmem:[%s240_s20 + $0x8] sm:$0xff]  ;;  %s249_s27 = scalar_lea.vmem %s760_s3, %s623_s24  ;;  %s245_s30 = scalar_lea.vmem %s759_s2, %s709_s17 }
   0xf   : > { %v255_v2 = vld [vmem:[%s235_s23] sm:$0xff]  ;;  %626 = vmatpush.xpose.msk.msra.mxu0 %vm268_vm0, %v259_v0  ;;  %630 = vmatpush.xpose.msk.msra.mxu2 %vm268_vm0, %v261_v1  ;;  %v257_v3 = vld [vmem:[%s235_s23 + $0x10] sm:$0xff]  ;;  %v262_v5 = vld [vmem:[%s240_s20 + $0x18] sm:$0xff]  ;;  %s254_s7 = scalar_lea.vmem %s761_s4, %s709_s17 }
  0x10   : > { %628 = vmatpush.xpose.msk.msra.mxu1 %vm268_vm0, %v260_v4  ;;  %632 = vmatpush.xpose.msk.msra.mxu3 %vm268_vm0, %v262_v5  ;;  %v256_v6 = vld [vmem:[%s235_s23 + $0x8] sm:$0xff]  ;;  %v258_v7 = vld [vmem:[%s235_s23 + $0x18] sm:$0xff]  ;;  %v267_v9 = vld [vmem:[%s249_s27] sm:$0xff] }
  0x11   : > { %v263_v45 = vld [vmem:[%s245_s30] sm:$0xff]  ;;  %v265_v46 = vld [vmem:[%s245_s30 + $0x10] sm:$0xff]  ;;  %v264_v47 = vld [vmem:[%s245_s30 + $0x8] sm:$0xff] }
  0x12   : > { %627 = vmatmul.msk.f32.vlgmr.msra.gmra.mxu0 %vm268_vm0, %v255_v2  ;;  %631 = vmatmul.msk.f32.vlgmr.msra.gmra.mxu2 %vm268_vm0, %v257_v3  ;;  %v266_v48 = vld [vmem:[%s245_s30 + $0x18] sm:$0xff] }
  0x13   : > { %629 = vmatmul.msk.f32.vlgmr.msra.gmra.mxu1 %vm268_vm0, %v256_v6  ;;  %633 = vmatmul.msk.f32.vlgmr.msra.gmra.mxu3 %vm268_vm0, %v258_v7 }
  0x14   : > { %443 = vmatpush.msrb.mxu0 %v263_v45  ;;  %489 = vmatpush.msrb.mxu2 %v265_v46 }
  0x15   : > { %466 = vmatpush.msrb.mxu1 %v264_v47  ;;  %512 = vmatpush.msrb.mxu3 %v266_v48 }
  0x8f   : > { %v292_v8 = vpop.f32.mrf.mxu0 }
  0x90   : > { %v373_v10 = vmul.f32 0.35355338, %v292_v8  ;;  %v318_v11 = vpop.f32.mrf.mxu1 }
  0x91   : > { %v374_v13 = vmul.f32 0.35355338, %v318_v11 }
  0x92   : > { %v377_v12 = vadd.f32 %v373_v10, %v267_v9 }
  0x93   : > { %v378_v18 = vadd.f32 %v374_v13, %v267_v9 }
  0x94   : > { %v381_v14 = vsel %vm268_vm0, %v377_v12, -inf }
  0x95   : > { %v344_v15 = vpop.f32.mrf.mxu2  ;;  %382 = vmax.xlane.f32.xlu1 %v381_v14  ;;  %v384_v22 = vsel %vm268_vm0, %v378_v18, -inf }
  0x96   : > { %v375_v16 = vmul.f32 0.35355338, %v344_v15  ;;  %v370_v17 = vpop.f32.mrf.mxu3 }
  0x97   : > { %v376_v20 = vmul.f32 0.35355338, %v370_v17 }
  0x98   : > { %v379_v19 = vadd.f32 %v375_v16, %v267_v9 }
  0x99   : > { %v380_v23 = vadd.f32 %v376_v20, %v267_v9 }
  0x9a   : > { %v387_v21 = vsel %vm268_vm0, %v379_v19, -inf }
  0x9b   : > { %388 = vmax.xlane.f32.xlu0 %v387_v21  ;;  %v390_v24 = vsel %vm268_vm0, %v380_v23, -inf }
  0x9d   : > { %385 = vmax.xlane.f32.xlu1 %v384_v22 }
  0xa3   : > { %391 = vmax.xlane.f32.xlu0 %v390_v24 }
 0x108   : > { %v383_v25 = vpop.xlane.xlu1 %382 }
 0x109   : > { %v393_v26 = vsub.f32 %v377_v12, %v383_v25 }
 0x10b   : > { %v397_v27 = vmul.f32 1.442695, %v393_v26 }
 0x10d   : > { %652 = vpow2.f32 %v397_v27 }
 0x10e   : > { %v389_v28 = vpop.xlane.xlu0 %388 }
 0x10f   : > { %v395_v29 = vsub.f32 %v379_v19, %v389_v28 }
 0x110   : > { %v386_v30 = vpop.xlane.xlu1 %385 }
 0x111   : > { %v401_v31 = vmul.f32 1.442695, %v395_v29  ;;  %v394_v32 = vsub.f32 %v378_v18, %v386_v30 }
 0x113   : > { %v653_v33 = vpop.eup %652  ;;  %654 = vpow2.f32 %v401_v31  ;;  %v399_v34 = vmul.f32 1.442695, %v394_v32 }
 0x114   : > { %v405_v35 = vsel %vm268_vm0, %v653_v33, 0.0 }
 0x115   : > { %656 = vpow2.f32 %v399_v34  ;;  %406 = vadd.xlane.f32.xlu0 %v405_v35 }
 0x116   : > { %v392_v36 = vpop.xlane.xlu0 %391 }
 0x117   : > { %v396_v37 = vsub.f32 %v380_v23, %v392_v36 }
 0x119   : > { %v655_v38 = vpop.eup %654  ;;  %v403_v39 = vmul.f32 1.442695, %v396_v37 }
 0x11a   : > { %v411_v40 = vsel %vm268_vm0, %v655_v38, 0.0 }
 0x11b   : > { %v657_v41 = vpop.eup %656  ;;  %658 = vpow2.f32 %v403_v39  ;;  %412 = vadd.xlane.f32.xlu2 %v411_v40 }
 0x11c   : > { %v408_v42 = vsel %vm268_vm0, %v657_v41, 0.0 }
 0x11d   : > { %409 = vadd.xlane.f32.xlu1 %v408_v42 }
 0x121   : > { %v659_v43 = vpop.eup %658 }
 0x122   : > { %v414_v44 = vsel %vm268_vm0, %v659_v43, 0.0 }
 0x123   : > { %415 = vadd.xlane.f32.xlu2 %v414_v44 }
 0x188   : > { %v407_v49 = vpop.xlane.xlu0 %406 }
 0x189   : > { %660 = vrcp.f32 %v407_v49 }
 0x18e   : > { %v413_v50 = vpop.xlane.xlu2 %412 }
 0x18f   : > { %v661_v51 = vpop.eup %660  ;;  %662 = vrcp.f32 %v413_v50 }
 0x190   : > { %v421_v52 = vmul.f32 %v661_v51, %v653_v33  ;;  %v410_v53 = vpop.xlane.xlu1 %409 }
 0x191   : > { %664 = vrcp.f32 %v410_v53 }
 0x192   : > { %634 = vmatmul.msk.f32.vlgmr.msrb.gmra.mxu0 %vm268_vm0, %v421_v52 }
 0x195   : > { %v663_v54 = vpop.eup %662 }
 0x196   : > { %v416_v55 = vpop.xlane.xlu2 %415  ;;  %v423_v56 = vmul.f32 %v663_v54, %v655_v38 }
 0x197   : > { %v665_v57 = vpop.eup %664  ;;  %666 = vrcp.f32 %v416_v55 }
 0x198   : > { %v422_v58 = vmul.f32 %v665_v57, %v657_v41  ;;  %636 = vmatmul.msk.f32.vlgmr.msrb.gmra.mxu2 %vm268_vm0, %v423_v56 }
 0x19a   : > { %635 = vmatmul.msk.f32.vlgmr.msrb.gmra.mxu1 %vm268_vm0, %v422_v58 }
 0x19d   : > { %v667_v59 = vpop.eup %666 }
 0x19e   : > { %v424_v60 = vmul.f32 %v667_v59, %v659_v43 }
 0x1a0   : > { %637 = vmatmul.msk.f32.vlgmr.msrb.gmra.mxu3 %vm268_vm0, %v424_v60 }
 0x20f   : > { %v445_v61 = vpop.f32.mrf.mxu0 }
 0x210   : > { %517 = vst.msk [vmem:[%s254_s7] sm:$0xff] %vm268_vm0, %v445_v61 }
 0x217   : > { %v468_v62 = vpop.f32.mrf.mxu1 }
 0x218   : > { %518 = vst.msk [vmem:[%s254_s7 + $0x8] sm:$0xff] %vm268_vm0, %v468_v62 }
 0x21b   : > { %v491_v63 = vpop.f32.mrf.mxu2 }
 0x21c   : > { %519 = vst.msk [vmem:[%s254_s7 + $0x10] sm:$0xff] %vm268_vm0, %v491_v63 }
 0x223   : > { %v514_v0 = vpop.f32.mrf.mxu3 }
 0x224   : > { %520 = vst.msk [vmem:[%s254_s7 + $0x18] sm:$0xff] %vm268_vm0, %v514_v0 }
 0x225 PF: > { %s14_s15 = sadd.s32 1, %s674_s15  }
 0x226   : > { %p11_p4 = scmp.ge.s32.totalorder %s14_s15, 4  }
 0x228   :  { %13 = sbr.rel (!%p11_p4) target bundleno = 1 (0x1), region = 75 }

// kernel: seq2seq_transformer_forward.43
= control target key start
LH: loop header
LB: loop body
LE: loop exit
PB: predicated region body
PF: predicated region fallthrough
CT: control target
= control target key end

     0   :  { %vm36_vm0 = vcmask 261120   ;;  %vm76_vm1 = vcmask 523264   ;;  %v210_v30 = vmov 32.0   ;;  %s319_s1 = inlined_call_operand.vmem [shape: f32[32,64], index: 1, kind: input, shape index: {}]   ;;  %s320_s3 = inlined_call_operand.vmem [shape: f32[64,32], index: 3, kind: input, shape index: {}]   ;;  %s321_s0 = inlined_call_operand.vmem [shape: f32[16,32], index: 0, kind: input, shape index: {}]   ;;  %s322_s2 = inlined_call_operand.vmem [shape: f32[1,64], index: 2, kind: input, shape index: {}]   ;;  %s323_s4 = inlined_call_operand.vmem [shape: f32[1,32], index: 4, kind: input, shape index: {}]   ;;  %s324_s5 = inlined_call_operand.vmem [shape: f32[1,32], index: 5, kind: input, shape index: {}]   ;;  %s325_s6 = inlined_call_operand.vmem [shape: f32[1,32], index: 6, kind: input, shape index: {}]   ;;  %s326_s7 = inlined_call_operand.vmem [shape: f32[16,32], index: 7, kind: output, shape index: {}]  }
   0x1   :  { %v31_v0 = vld [vmem:[%s319_s1 + $0x18] sm:$0xff]  ;;  %v30_v1 = vld [vmem:[%s319_s1 + $0x10] sm:$0xff]  ;;  %v29_v2 = vld [vmem:[%s319_s1 + $0x8] sm:$0xff]  ;;  %204 = vrcp.f32 %v210_v30 }
   0x2   :  { %55 = vmatpush.msra.mxu0 %v31_v0  ;;  %187 = vmatpush.msra.mxu3 %v31_v0  ;;  %v75_v3 = vld [vmem:[%s320_s3 + $0x38] sm:$0xff]  ;;  %v74_v4 = vld [vmem:[%s320_s3 + $0x30] sm:$0xff]  ;;  %v28_v5 = vld [vmem:[%s319_s1] sm:$0xff] }
   0x3   :  { %91 = vmatpush.msra.mxu1 %v75_v3  ;;  %191 = vmatpush.msra.mxu2 %v75_v3  ;;  %v26_v6 = vld [vmem:[%s321_s0] sm:$0xff]  ;;  %v27_v7 = vld [vmem:[%s321_s0 + $0x8] sm:$0xff]  ;;  %v71_v10 = vld [vmem:[%s320_s3 + $0x18] sm:$0xff] }
   0x4   :  { %56 = vmatpush.msra.mxu0 %v30_v1  ;;  %188 = vmatpush.msra.mxu3 %v30_v1  ;;  %v73_v8 = vld [vmem:[%s320_s3 + $0x28] sm:$0xff]  ;;  %v72_v9 = vld [vmem:[%s320_s3 + $0x20] sm:$0xff]  ;;  %v70_v11 = vld [vmem:[%s320_s3 + $0x10] sm:$0xff] }
   0x5   :  { %92 = vmatpush.msra.mxu1 %v74_v4  ;;  %192 = vmatpush.msra.mxu2 %v74_v4  ;;  %v69_v12 = vld [vmem:[%s320_s3 + $0x8] sm:$0xff]  ;;  %v68_v13 = vld [vmem:[%s320_s3] sm:$0xff] }
   0x6   :  { %57 = vmatpush.msra.mxu0 %v29_v2  ;;  %189 = vmatpush.msra.mxu3 %v29_v2  ;;  %v200_v14 = vld [vmem:[%s322_s2] ss:$0 sm:$0xff] }
   0x7   :  { %93 = vmatpush.msra.mxu1 %v73_v8  ;;  %193 = vmatpush.msra.mxu2 %v73_v8  ;;  %v201_v21 = vld [vmem:[%s323_s4] ss:$0 sm:$0xff]  ;;  %v205_v31 = vpop.eup %204 }
   0x8   :  { %58 = vmatpush.msra.mxu0 %v28_v5  ;;  %190 = vmatpush.msra.mxu3 %v28_v5  ;;  %v123_v32 = vmul.f32 32.0, %v205_v31  ;;  %vm127_vm2 = vweird.f32 %v205_v31  ;;  %v202_v59 = vld [vmem:[%s324_s5] ss:$0 sm:$0xff] }
   0x9   :  { %183 = vmatmul.msk.f32.vlgmr.msra.gmra.mxu0 %vm36_vm0, %v26_v6  ;;  %184 = vmatmul.msk.f32.vlgmr.msra.gmra.mxu3 %vm36_vm0, %v27_v7  ;;  %v203_v62 = vld [vmem:[%s325_s6] ss:$0 sm:$0xff] }
   0xa   :  { %94 = vmatpush.msra.mxu1 %v72_v9  ;;  %194 = vmatpush.msra.mxu2 %v72_v9  ;;  %v124_v33 = vsub.f32 1.0, %v123_v32 }
   0xc   :  { %95 = vmatpush.msra.mxu1 %v71_v10  ;;  %195 = vmatpush.msra.mxu2 %v71_v10  ;;  %v125_v34 = vmul.f32 %v205_v31, %v124_v33 }
   0xe   :  { %96 = vmatpush.msra.mxu1 %v70_v11  ;;  %196 = vmatpush.msra.mxu2 %v70_v11  ;;  %v126_v35 = vadd.f32 %v205_v31, %v125_v34 }
  0x10   :  { %97 = vmatpush.msra.mxu1 %v69_v12  ;;  %197 = vmatpush.msra.mxu2 %v69_v12  ;;  %v128_v36 = vsel %vm127_vm2, %v205_v31, %v126_v35 }
  0x12   :  { %98 = vmatpush.msra.mxu1 %v68_v13  ;;  %198 = vmatpush.msra.mxu2 %v68_v13 }
  0x86   :  { %v60_v15 = vpop.f32.mrf.mxu0 }
  0x87   :  { %v61_v16 = vadd.f32 %v200_v14, %v60_v15 }
  0x89   :  { %v66_v17 = vmax.f32 %v61_v16, 0.0 }
  0x8b   :  { %185 = vmatmul.msk.f32.vlgmr.msra.gmra.mxu1 %vm76_vm1, %v66_v17 }
  0x8c   :  { %v63_v18 = vpop.f32.mrf.mxu3 }
  0x8d   :  { %v64_v19 = vadd.f32 %v200_v14, %v63_v18 }
  0x8f   :  { %v67_v20 = vmax.f32 %v64_v19, 0.0 }
  0x91   :  { %186 = vmatmul.msk.f32.vlgmr.msra.gmra.mxu2 %vm76_vm1, %v67_v20 }
 0x108   :  { %v100_v22 = vpop.f32.mrf.mxu1 }
 0x109   :  { %v106_v23 = vadd.f32 %v100_v22, %v26_v6 }
 0x10b   :  { %v112_v24 = vadd.f32 %v201_v21, %v106_v23 }
 0x10d   :  { %v116_v25 = vsel %vm36_vm0, %v112_v24, 0.0 }
 0x10e   :  { %117 = vadd.xlane.f32.xlu0 %v116_v25 }
 0x114   :  { %v103_v26 = vpop.f32.mrf.mxu2 }
 0x115   :  { %v107_v27 = vadd.f32 %v103_v26, %v27_v7 }
 0x117   :  { %v113_v28 = vadd.f32 %v201_v21, %v107_v27 }
 0x119   :  { %v119_v29 = vsel %vm36_vm0, %v113_v28, 0.0 }
 0x11a   :  { %120 = vadd.xlane.f32.xlu0 %v119_v29 }
 0x181   :  { %v118_v37 = vpop.xlane.xlu0 %117 }
 0x182   :  { %v129_v38 = vmul.f32 %v128_v36, %v118_v37 }
 0x184   :  { %v131_v39 = vsub.f32 %v112_v24, %v129_v38 }
 0x186   :  { %v133_v40 = vmul.f32 %v131_v39, %v131_v39 }
 0x188   :  { %v135_v41 = vsel %vm36_vm0, %v133_v40, 0.0 }
 0x189   :  { %136 = vadd.xlane.f32.xlu1 %v135_v41 }
 0x18d   :  { %v121_v42 = vpop.xlane.xlu0 %120 }
 0x18e   :  { %v130_v43 = vmul.f32 %v128_v36, %v121_v42 }
 0x190   :  { %v132_v44 = vsub.f32 %v113_v28, %v130_v43 }
 0x192   :  { %v134_v45 = vmul.f32 %v132_v44, %v132_v44 }
 0x194   :  { %v138_v46 = vsel %vm36_vm0, %v134_v45, 0.0 }
 0x195   :  { %139 = vadd.xlane.f32.xlu1 %v138_v46 }
 0x1fc   :  { %v137_v47 = vpop.xlane.xlu1 %136 }
 0x1fd   :  { %v141_v48 = vmul.f32 %v137_v47, %v128_v36 }
 0x1ff   :  { %v143_v49 = vadd.f32 1e-05, %v141_v48 }
 0x201   :  { %206 = vrsqrt.f32 %v143_v49  ;;  %vm151_vm4 = vweird.f32 %v143_v49 }
 0x207   :  { %v207_v50 = vpop.eup %206 }
 0x208   :  { %v146_v51 = vmul.f32 %v207_v50, %v143_v49  ;;  %v140_v52 = vpop.xlane.xlu1 %139  ;;  %vm152_vm3 = vweird.f32 %v207_v50 }
 0x209   :  { %v142_v53 = vmul.f32 %v140_v52, %v128_v36  ;;  %vm153_vm5 = vmor %vm151_vm4, %vm152_vm3 }
 0x20a   :  { %v147_v54 = vmul.f32 %v207_v50, %v146_v51 }
 0x20b   :  { %v144_v55 = vadd.f32 1e-05, %v142_v53 }
 0x20c   :  { %v148_v56 = vmul.f32 0.5, %v147_v54 }
 0x20d   :  { %208 = vrsqrt.f32 %v144_v55  ;;  %vm161_vm7 = vweird.f32 %v144_v55 }
 0x20e   :  { %v149_v57 = vsub.f32 1.5, %v148_v56 }
 0x210   :  { %v150_v58 = vmul.f32 %v207_v50, %v149_v57 }
 0x212   :  { %v154_v60 = vsel %vm153_vm5, %v207_v50, %v150_v58 }
 0x213   :  { %v209_v61 = vpop.eup %208  ;;  %v165_v63 = vmul.f32 %v154_v60, %v131_v39 }
 0x214   :  { %v156_v0 = vmul.f32 %v209_v61, %v144_v55  ;;  %vm162_vm6 = vweird.f32 %v209_v61 }
 0x215   :  { %v170_v1 = vmul.f32 %v202_v59, %v165_v63  ;;  %vm163_vm8 = vmor %vm161_vm7, %vm162_vm6 }
 0x216   :  { %v157_v2 = vmul.f32 %v209_v61, %v156_v0 }
 0x217   :  { %v175_v3 = vadd.f32 %v203_v62, %v170_v1 }
 0x218   :  { %v158_v4 = vmul.f32 0.5, %v157_v2 }
 0x219   :  { %177 = vst.msk [vmem:[%s326_s7] sm:$0xff] %vm36_vm0, %v175_v3 }
 0x21a   :  { %v159_v5 = vsub.f32 1.5, %v158_v4 }
 0x21c   :  { %v160_v6 = vmul.f32 %v209_v61, %v159_v5 }
 0x21e   :  { %v164_v7 = vsel %vm163_vm8, %v209_v61, %v160_v6 }
 0x21f   :  { %v166_v8 = vmul.f32 %v164_v7, %v132_v44 }
 0x221   :  { %v171_v9 = vmul.f32 %v202_v59, %v166_v8 }
 0x223   :  { %v176_v10 = vadd.f32 %v203_v62, %v171_v9 }
 0x225   :  { %178 = vst.msk [vmem:[%s326_s7 + $0x8] sm:$0xff] %vm36_vm0, %v176_v10 }

// kernel: seq2seq_transformer_forward.52
= control target key start
LH: loop header
LB: loop body
LE: loop exit
PB: predicated region body
PF: predicated region fallthrough
CT: control target
= control target key end

     0   :  { %vm18_vm0 = vcmask 261120   ;;  %v95_v4 = vmov 32.0   ;;  %s140_s0 = inlined_call_operand.vmem [shape: f32[16,32], index: 0, kind: input, shape index: {}]   ;;  %s141_s1 = inlined_call_operand.vmem [shape: f32[1,32], index: 1, kind: input, shape index: {}]   ;;  %s142_s2 = inlined_call_operand.vmem [shape: f32[1,32], index: 2, kind: input, shape index: {}]   ;;  %s143_s3 = inlined_call_operand.vmem [shape: f32[16,32], index: 3, kind: output, shape index: {}]  }
   0x1   :  { %v14_v0 = vld [vmem:[%s140_s0] sm:$0xff]  ;;  %v15_v2 = vld [vmem:[%s140_s0 + $0x8] sm:$0xff]  ;;  %89 = vrcp.f32 %v95_v4 }
   0x2   :  { %v19_v1 = vsel %vm18_vm0, %v14_v0, 0.0  ;;  %v22_v3 = vsel %vm18_vm0, %v15_v2, 0.0  ;;  %v87_v35 = vld [vmem:[%s141_s1] ss:$0 sm:$0xff] }
   0x3   :  { %20 = vadd.xlane.f32.xlu0 %v19_v1  ;;  %v88_v38 = vld [vmem:[%s142_s2] ss:$0 sm:$0xff] }
   0x7   :  { %v90_v5 = vpop.eup %89 }
   0x8   :  { %v26_v6 = vmul.f32 32.0, %v90_v5  ;;  %vm30_vm1 = vweird.f32 %v90_v5 }
   0xa   :  { %v27_v7 = vsub.f32 1.0, %v26_v6 }
   0xb   :  { %23 = vadd.xlane.f32.xlu0 %v22_v3 }
   0xc   :  { %v28_v8 = vmul.f32 %v90_v5, %v27_v7 }
   0xe   :  { %v29_v9 = vadd.f32 %v90_v5, %v28_v8 }
  0x10   :  { %v31_v10 = vsel %vm30_vm1, %v90_v5, %v29_v9 }
  0x76   :  { %v21_v11 = vpop.xlane.xlu0 %20 }
  0x77   :  { %v32_v12 = vmul.f32 %v31_v10, %v21_v11 }
  0x79   :  { %v34_v13 = vsub.f32 %v14_v0, %v32_v12 }
  0x7b   :  { %v36_v14 = vmul.f32 %v34_v13, %v34_v13 }
  0x7d   :  { %v38_v15 = vsel %vm18_vm0, %v36_v14, 0.0 }
  0x7e   :  { %39 = vadd.xlane.f32.xlu1 %v38_v15  ;;  %v24_v16 = vpop.xlane.xlu0 %23 }
  0x7f   :  { %v33_v17 = vmul.f32 %v31_v10, %v24_v16 }
  0x81   :  { %v35_v18 = vsub.f32 %v15_v2, %v33_v17 }
  0x83   :  { %v37_v19 = vmul.f32 %v35_v18, %v35_v18 }
  0x85   :  { %v41_v20 = vsel %vm18_vm0, %v37_v19, 0.0 }
  0x86   :  { %42 = vadd.xlane.f32.xlu1 %v41_v20 }
  0xf1   :  { %v40_v21 = vpop.xlane.xlu1 %39 }
  0xf2   :  { %v44_v22 = vmul.f32 %v40_v21, %v31_v10 }
  0xf4   :  { %v46_v23 = vadd.f32 1e-05, %v44_v22 }
  0xf6   :  { %91 = vrsqrt.f32 %v46_v23  ;;  %vm54_vm3 = vweird.f32 %v46_v23 }
  0xf9   :  { %v43_v24 = vpop.xlane.xlu1 %42 }
  0xfa   :  { %v45_v25 = vmul.f32 %v43_v24, %v31_v10 }
  0xfc   :  { %v92_v26 = vpop.eup %91  ;;  %v47_v27 = vadd.f32 1e-05, %v45_v25 }
  0xfd   :  { %v49_v28 = vmul.f32 %v92_v26, %v46_v23  ;;  %vm55_vm2 = vweird.f32 %v92_v26 }
  0xfe   :  { %93 = vrsqrt.f32 %v47_v27  ;;  %vm56_vm4 = vmor %vm54_vm3, %vm55_vm2  ;;  %vm64_vm6 = vweird.f32 %v47_v27 }
  0xff   :  { %v50_v29 = vmul.f32 %v92_v26, %v49_v28 }
 0x101   :  { %v51_v30 = vmul.f32 0.5, %v50_v29 }
 0x103   :  { %v52_v31 = vsub.f32 1.5, %v51_v30 }
 0x104   :  { %v94_v32 = vpop.eup %93 }
 0x105   :  { %v53_v33 = vmul.f32 %v92_v26, %v52_v31  ;;  %v59_v34 = vmul.f32 %v94_v32, %v47_v27  ;;  %vm65_vm5 = vweird.f32 %v94_v32 }
 0x106   :  { %vm66_vm7 = vmor %vm64_vm6, %vm65_vm5 }
 0x107   :  { %v57_v36 = vsel %vm56_vm4, %v92_v26, %v53_v33  ;;  %v60_v37 = vmul.f32 %v94_v32, %v59_v34 }
 0x108   :  { %v68_v39 = vmul.f32 %v57_v36, %v34_v13 }
 0x109   :  { %v61_v40 = vmul.f32 0.5, %v60_v37 }
 0x10a   :  { %v73_v41 = vmul.f32 %v87_v35, %v68_v39 }
 0x10b   :  { %v62_v42 = vsub.f32 1.5, %v61_v40 }
 0x10c   :  { %v78_v43 = vadd.f32 %v88_v38, %v73_v41 }
 0x10d   :  { %v63_v44 = vmul.f32 %v94_v32, %v62_v42 }
 0x10e   :  { %80 = vst.msk [vmem:[%s143_s3] sm:$0xff] %vm18_vm0, %v78_v43 }
 0x10f   :  { %v67_v45 = vsel %vm66_vm7, %v94_v32, %v63_v44 }
 0x110   :  { %v69_v46 = vmul.f32 %v67_v45, %v35_v18 }
 0x112   :  { %v74_v47 = vmul.f32 %v87_v35, %v69_v46 }
 0x114   :  { %v79_v48 = vadd.f32 %v88_v38, %v74_v47 }
 0x116   :  { %81 = vst.msk [vmem:[%s143_s3 + $0x8] sm:$0xff] %vm18_vm0, %v79_v48 }

// kernel: seq2seq_transformer_forward.41
= control target key start
LH: loop header
LB: loop body
LE: loop exit
PB: predicated region body
PF: predicated region fallthrough
CT: control target
= control target key end

     0   :  { %s743_s15 = smov 0   ;;  %s810_s0 = inlined_call_operand.vmem [shape: f32[2,4,8,8], index: 0, kind: input, shape index: {}]   ;;  %s811_s1 = inlined_call_operand.vmem [shape: f32[2,4,10,8], index: 1, kind: input, shape index: {}]   ;;  %s812_s2 = inlined_call_operand.vmem [shape: f32[2,4,10,8], index: 2, kind: input, shape index: {}]   ;;  %s813_s3 = inlined_call_operand.vmem [shape: f32[2,8,10], index: 3, kind: input, shape index: {}]   ;;  %s814_s4 = inlined_call_operand.vmem [shape: f32[2,4,8,8], index: 4, kind: output, shape index: {}]  }
   0x1 LB: > { %s646_s16 = sadd.s32 4294967295, %s716_s15   ;;  %p650_p0 = scmp.ge.s32.totalorder %s716_s15, 1  ;;  %s716_s15 = sphi %s743_s15, %s14_s15  }
   0x2   : > { %p191_p1 = scmp.lt.s32.totalorder %s716_s15, 3 }
   0x4   : > { %p192_p2 = pnand %p650_p0, %p191_p1 }
   0x5   : > { %p231_p3 = scmp.lt.s32.totalorder (!%p192_p2), %s646_s16, 1 }
   0x6   : > { %195 = sbr.rel (%p192_p2) target bundleno = 554 (0x22a), region = 36 }
   0xb   : > { %s816_s16 = smov (!%p231_p3, %s646_s16), 1  ;;  %vm276_vm0 = vcmask 64512   ;;  %vm401_vm1 = vcmask 80896   ;;  %vm449_vm2 = vcmask 1041408  }
   0xc   : > { %s683_s17 = sshll.u32 %s816_s16, 6  ;;  %s682_s21 = sshll.u32 %s816_s16, 5 }
   0xd   : > { %s240_s20 = scalar_lea.vmem %s811_s1, %s683_s17  ;;  %s235_s24 = scalar_lea.vmem %s810_s0, %s682_s21 }
   0xe   : > { %v260_v0 = vld [vmem:[%s240_s20 + $0x8] sm:$0x3]  ;;  %v259_v2 = vld [vmem:[%s240_s20] sm:$0xff]  ;;  %v262_v4 = vld [vmem:[%s240_s20 + $0x18] sm:$0x3]  ;;  %s657_s25 = sshll.u32 %s816_s16, 3  ;;  %s245_s5 = scalar_lea.vmem %s812_s2, %s683_s17 }
   0xf   : > { %v264_v1 = vld [vmem:[%s240_s20 + $0x28] sm:$0x3]  ;;  %660 = vmatpush.xpose.msk.msra.mxu0 %vm276_vm0, %v260_v0  ;;  %v263_v3 = vld [vmem:[%s240_s20 + $0x20] sm:$0xff]  ;;  %v266_v5 = vld [vmem:[%s240_s20 + $0x38] sm:$0x3]  ;;  %663 = vmatpush.xpose.msk.msra.mxu1 %vm276_vm0, %v262_v4  ;;  %s249_s28 = scalar_lea.vmem %s813_s3, %s657_s25  ;;  %s254_s8 = scalar_lea.vmem %s814_s4, %s682_s21 }
  0x10   : > { %666 = vmatpush.xpose.msk.msra.mxu2 %vm276_vm0, %v264_v1  ;;  %669 = vmatpush.xpose.msk.msra.mxu3 %vm276_vm0, %v266_v5  ;;  %v261_v6 = vld [vmem:[%s240_s20 + $0x10] sm:$0xff]  ;;  %v255_v8 = vld [vmem:[%s235_s24] sm:$0xff]  ;;  %v256_v10 = vld [vmem:[%s235_s24 + $0x8] sm:$0xff] }
  0x11   : > { %v265_v7 = vld [vmem:[%s240_s20 + $0x30] sm:$0xff]  ;;  %v258_v11 = vld [vmem:[%s235_s24 + $0x18] sm:$0xff]  ;;  %v275_v13 = vld [vmem:[%s249_s28] sm:$0xff] }
  0x12   : > { %v257_v9 = vld [vmem:[%s235_s24 + $0x10] sm:$0xff]  ;;  %v268_v49 = vld [vmem:[%s245_s5 + $0x8] sm:$0x3]  ;;  %v267_v50 = vld [vmem:[%s245_s5] sm:$0xff] }
  0x13   : > { %661 = vmatpush.xpose.msk.msra.mxu0 %vm276_vm0, %v259_v2  ;;  %664 = vmatpush.xpose.msk.msra.mxu1 %vm276_vm0, %v261_v6  ;;  %v272_v51 = vld [vmem:[%s245_s5 + $0x28] sm:$0x3]  ;;  %v270_v52 = vld [vmem:[%s245_s5 + $0x18] sm:$0x3]  ;;  %v271_v53 = vld [vmem:[%s245_s5 + $0x20] sm:$0xff] }
  0x14   : > { %667 = vmatpush.xpose.msk.msra.mxu2 %vm276_vm0, %v263_v3  ;;  %670 = vmatpush.xpose.msk.msra.mxu3 %vm276_vm0, %v265_v7  ;;  %v269_v54 = vld [vmem:[%s245_s5 + $0x10] sm:$0xff]  ;;  %v274_v55 = vld [vmem:[%s245_s5 + $0x38] sm:$0x3] }
  0x15   : > { %v273_v56 = vld [vmem:[%s245_s5 + $0x30] sm:$0xff] }
  0x16   : > { %662 = vmatmul.msk.f32.vlgmr.msra.gmra.mxu0 %vm276_vm0, %v255_v8  ;;  %665 = vmatmul.msk.f32.vlgmr.msra.gmra.mxu1 %vm276_vm0, %v256_v10 }
  0x17   : > { %668 = vmatmul.msk.f32.vlgmr.msra.gmra.mxu2 %vm276_vm0, %v257_v9  ;;  %671 = vmatmul.msk.f32.vlgmr.msra.gmra.mxu3 %vm276_vm0, %v258_v11 }
  0x18   : > { %672 = vmatpush.msk.msrb.mxu0 %vm449_vm2, %v268_v49  ;;  %676 = vmatpush.msk.msrb.mxu2 %vm449_vm2, %v272_v51 }
  0x19   : > { %674 = vmatpush.msk.msrb.mxu1 %vm449_vm2, %v270_v52  ;;  %678 = vmatpush.msk.msrb.mxu3 %vm449_vm2, %v274_v55 }
  0x1a   : > { %468 = vmatpush.msrb.mxu0 %v267_v50  ;;  %520 = vmatpush.msrb.mxu2 %v271_v53 }
  0x1b   : > { %494 = vmatpush.msrb.mxu1 %v269_v54  ;;  %546 = vmatpush.msrb.mxu3 %v273_v56 }
  0x93   : > { %v303_v12 = vpop.f32.mrf.mxu0  ;;  %v332_v15 = vpop.f32.mrf.mxu1 }
  0x94   : > { %v393_v14 = vmul.f32 0.35355338, %v303_v12  ;;  %v394_v17 = vmul.f32 0.35355338, %v332_v15 }
  0x96   : > { %v397_v16 = vadd.f32 %v393_v14, %v275_v13  ;;  %v398_v21 = vadd.f32 %v394_v17, %v275_v13 }
  0x98   : > { %v402_v18 = vsel %vm401_vm1, %v397_v16, -inf  ;;  %v405_v26 = vsel %vm401_vm1, %v398_v21, -inf }
  0x99   : > { %403 = vmax.xlane.f32.xlu1 %v402_v18 }
  0x9a   : > { %v361_v19 = vpop.f32.mrf.mxu2  ;;  %v390_v22 = vpop.f32.mrf.mxu3 }
  0x9b   : > { %v395_v20 = vmul.f32 0.35355338, %v361_v19  ;;  %v396_v24 = vmul.f32 0.35355338, %v390_v22 }
  0x9d   : > { %v399_v23 = vadd.f32 %v395_v20, %v275_v13  ;;  %v400_v27 = vadd.f32 %v396_v24, %v275_v13 }
  0x9f   : > { %v408_v25 = vsel %vm401_vm1, %v399_v23, -inf  ;;  %v411_v28 = vsel %vm401_vm1, %v400_v27, -inf }
  0xa0   : > { %409 = vmax.xlane.f32.xlu0 %v408_v25 }
  0xa1   : > { %406 = vmax.xlane.f32.xlu1 %v405_v26 }
  0xa8   : > { %412 = vmax.xlane.f32.xlu0 %v411_v28 }
 0x10c   : > { %v404_v29 = vpop.xlane.xlu1 %403 }
 0x10d   : > { %v414_v30 = vsub.f32 %v397_v16, %v404_v29 }
 0x10f   : > { %v418_v31 = vmul.f32 1.442695, %v414_v30 }
 0x111   : > { %694 = vpow2.f32 %v418_v31 }
 0x113   : > { %v410_v32 = vpop.xlane.xlu0 %409 }
 0x114   : > { %v416_v33 = vsub.f32 %v399_v23, %v410_v32  ;;  %v407_v34 = vpop.xlane.xlu1 %406 }
 0x115   : > { %v415_v36 = vsub.f32 %v398_v21, %v407_v34 }
 0x116   : > { %v422_v35 = vmul.f32 1.442695, %v416_v33 }
 0x117   : > { %v695_v37 = vpop.eup %694  ;;  %v420_v38 = vmul.f32 1.442695, %v415_v36 }
 0x118   : > { %696 = vpow2.f32 %v422_v35  ;;  %v426_v39 = vsel %vm401_vm1, %v695_v37, 0.0 }
 0x119   : > { %698 = vpow2.f32 %v420_v38  ;;  %427 = vadd.xlane.f32.xlu0 %v426_v39 }
 0x11b   : > { %v413_v40 = vpop.xlane.xlu0 %412 }
 0x11c   : > { %v417_v41 = vsub.f32 %v400_v27, %v413_v40 }
 0x11e   : > { %v697_v42 = vpop.eup %696  ;;  %v424_v43 = vmul.f32 1.442695, %v417_v41 }
 0x11f   : > { %v432_v44 = vsel %vm401_vm1, %v697_v42, 0.0  ;;  %v699_v45 = vpop.eup %698 }
 0x120   : > { %700 = vpow2.f32 %v424_v43  ;;  %433 = vadd.xlane.f32.xlu2 %v432_v44  ;;  %v429_v46 = vsel %vm401_vm1, %v699_v45, 0.0 }
 0x121   : > { %430 = vadd.xlane.f32.xlu1 %v429_v46 }
 0x126   : > { %v701_v47 = vpop.eup %700 }
 0x127   : > { %v435_v48 = vsel %vm401_vm1, %v701_v47, 0.0 }
 0x128   : > { %436 = vadd.xlane.f32.xlu2 %v435_v48 }
 0x18c   : > { %v428_v57 = vpop.xlane.xlu0 %427 }
 0x18d   : > { %702 = vrcp.f32 %v428_v57 }
 0x193   : > { %v434_v58 = vpop.xlane.xlu2 %433  ;;  %v703_v59 = vpop.eup %702 }
 0x194   : > { %704 = vrcp.f32 %v434_v58  ;;  %v442_v60 = vmul.f32 %v703_v59, %v695_v37  ;;  %v431_v61 = vpop.xlane.xlu1 %430 }
 0x195   : > { %706 = vrcp.f32 %v431_v61 }
 0x196   : > { %673 = vmatmul.msk.f32.vlgmr.msrb.gmra.mxu0 %vm401_vm1, %v442_v60 }
 0x19a   : > { %v705_v62 = vpop.eup %704 }
 0x19b   : > { %v437_v63 = vpop.xlane.xlu2 %436  ;;  %v444_v0 = vmul.f32 %v705_v62, %v697_v42  ;;  %v707_v1 = vpop.eup %706 }
 0x19c   : > { %708 = vrcp.f32 %v437_v63  ;;  %v443_v2 = vmul.f32 %v707_v1, %v699_v45 }
 0x19d   : > { %677 = vmatmul.msk.f32.vlgmr.msrb.gmra.mxu2 %vm401_vm1, %v444_v0 }
 0x19e   : > { %675 = vmatmul.msk.f32.vlgmr.msrb.gmra.mxu1 %vm401_vm1, %v443_v2 }
 0x1a2   : > { %v709_v3 = vpop.eup %708 }
 0x1a3   : > { %v445_v4 = vmul.f32 %v709_v3, %v701_v47 }
 0x1a5   : > { %679 = vmatmul.msk.f32.vlgmr.msrb.gmra.mxu3 %vm401_vm1, %v445_v4 }
 0x213   : > { %v470_v5 = vpop.f32.mrf.mxu0 }
 0x214   : > { %551 = vst.msk [vmem:[%s254_s8] sm:$0xff] %vm276_vm0, %v470_v5 }
 0x21b   : > { %v496_v6 = vpop.f32.mrf.mxu1 }
 0x21c   : > { %552 = vst.msk [vmem:[%s254_s8 + $0x8] sm:$0xff] %vm276_vm0, %v496_v6 }
 0x220   : > { %v522_v7 = vpop.f32.mrf.mxu2 }
 0x221   : > { %553 = vst.msk [vmem:[%s254_s8 + $0x10] sm:$0xff] %vm276_vm0, %v522_v7 }
 0x228   : > { %v548_v8 = vpop.f32.mrf.mxu3 }
 0x229   : > { %554 = vst.msk [vmem:[%s254_s8 + $0x18] sm:$0xff] %vm276_vm0, %v548_v8 }
 0x22a PF: > { %s14_s15 = sadd.s32 1, %s716_s15  }
 0x22b   : > { %p11_p4 = scmp.ge.s32.totalorder %s14_s15, 4  }
 0x22d   :  { %13 = sbr.rel (!%p11_p4) target bundleno = 1 (0x1), region = 75 }

// kernel: seq2seq_transformer_forward.53
= control target key start
LH: loop header
LB: loop body
LE: loop exit
PB: predicated region body
PF: predicated region fallthrough
CT: control target
= control target key end

     0   :  { %s159_s0 = inlined_call_operand.vmem [shape: f32[16,32], index: 0, kind: input, shape index: {}]   ;;  %s160_s1 = inlined_call_operand.vmem [shape: f32[32,60], index: 1, kind: input, shape index: {}]   ;;  %s161_s2 = inlined_call_operand.vmem [shape: f32[1,60], index: 2, kind: input, shape index: {}]   ;;  %s162_s3 = inlined_call_operand.hbm [shape: f32[16,60], index: 3, kind: output, shape index: {}]  }
   0x1   :  { %v20_v0 = vld [vmem:[%s160_s1 + $0x18] sm:$0xff]  ;;  %v19_v1 = vld [vmem:[%s160_s1 + $0x10] sm:$0xff]  ;;  %v18_v2 = vld [vmem:[%s160_s1 + $0x8] sm:$0xff] }
   0x2   :  { %44 = vmatpush.msra.mxu0 %v20_v0  ;;  %78 = vmatpush.msra.mxu1 %v20_v0 }
   0x3   :  { %8 = vsyncpa [#allocation3], 0  ;;  %v17_v3 = vld [vmem:[%s160_s1] sm:$0xff]  ;;  %vm25_vm0 = vcmask 261120   ;;  %v16_v5 = vld [vmem:[%s159_s0 + $0x8] sm:$0xff]  ;;  %s112_s1 = smov [#allocation2]  }
   0x4   :  { %45 = vmatpush.msra.mxu0 %v19_v1  ;;  %79 = vmatpush.msra.mxu1 %v19_v1  ;;  %v15_v4 = vld [vmem:[%s159_s0] sm:$0xff]  ;;  %s62_s26 = sshll.u32 %s112_s1, 4  ;;  %s64_s29 = sshll.u32 %s162_s3, 4  ;;  %vm55_vm1 = vcmask 490496   ;;  %s63_s26 = int_to_ptr.vmem [resolvable:$true] %s62_s26  ;;  %s65_s29 = int_to_ptr.hbm [resolvable:$true] %s64_s29 }
   0x5   :  { %v85_v6 = vld [vmem:[%s161_s2] ss:$0 sm:$0xff]  ;;  %s113_s0 = smov 128   ;;  %s114_s30 = smov 8  }
   0x6   :  { %46 = vmatpush.msra.mxu0 %v18_v2  ;;  %80 = vmatpush.msra.mxu1 %v18_v2 }
   0x8   :  { %47 = vmatpush.msra.mxu0 %v17_v3  ;;  %81 = vmatpush.msra.mxu1 %v17_v3 }
   0x9   :  { %76 = vmatmul.msk.f32.vlgmr.msra.gmra.mxu0 %vm25_vm0, %v15_v4  ;;  %77 = vmatmul.msk.f32.vlgmr.msra.gmra.mxu1 %vm25_vm0, %v16_v5 }
  0x86   :  { %v49_v7 = vpop.f32.mrf.mxu0  ;;  %v52_v8 = vpop.f32.mrf.mxu1 }
  0x87   :  { %v50_v9 = vadd.f32 %v85_v6, %v49_v7  ;;  %v53_v10 = vadd.f32 %v85_v6, %v52_v8 }
  0x89   :  { %56 = vst.msk [vmem:[#allocation2] sm:$0xff] %vm55_vm1, %v50_v9 }
  0x8a   :  { %57 = vst.msk [vmem:[#allocation2 + $0x8] sm:$0xff] %vm55_vm1, %v53_v10 }
  0x8b   :  { %70 = dma.vmem_to_hbm [thread:$0]  %s63_s26, 256, %s65_s29, [#allocation3], %s113_s0, %s113_s0, %s114_s30  }
  0x8c   :  { %110 = dma.done.wait [#allocation3], 256  }
  0x8d   :  { %111 = vsyncadd [#allocation3], 4294967040 }
  0x8e   :  { %75 = vsyncpa [#allocation3], 1 }

</bundles_post_ra>
